<compile_context>
chip_gen: v5e
topology: v5e:2x2
jax: 0.10.0
libtpu: 0.0.40
codegen_flags: <defaults>
</compile_context>

<pallas_src>
import functools

import jax
import jax.numpy as jnp
from jax.experimental import pallas as pl
from jax.experimental.pallas import tpu as pltpu

LATENT_DIM = 2
IN_DIM = 28 * 28   # 784
HID_DIM = 400


def vae_kernel(x_ref, w1_ref, b1_ref, wenc_ref, benc_ref,
               w3_ref, b3_ref, w4_ref, b4_ref, eps_ref,
               recon_ref, mulv_ref):
    x = x_ref[...]                                       # (TB, 784) f32

    # ---- encode: h1 = relu(x @ W1 + b1)  (bf16 operands, f32 accumulate) ----
    h1 = jnp.dot(x.astype(jnp.bfloat16), w1_ref[...],
                 preferred_element_type=jnp.float32) + b1_ref[...]
    h1 = jnp.maximum(h1, 0.0)

    # ---- fused fc21|fc22: one (400, 2*LATENT) matmul -> [mu | logvar] ----
    mulv = jnp.dot(h1.astype(jnp.bfloat16), wenc_ref[...],
                   preferred_element_type=jnp.float32) + benc_ref[...]
    mu = mulv[:, :LATENT_DIM]                            # (TB, LATENT)
    logvar = mulv[:, LATENT_DIM:]                        # (TB, LATENT)

    # ---- reparameterize: z = mu + eps * exp(0.5 * logvar)  (f32 on VPU/EUP) ----
    std = jnp.exp(0.5 * logvar)
    z = mu + eps_ref[...] * std                          # (TB, LATENT)

    # ---- decode fc3 (K = LATENT_DIM = 2): VPU broadcast FMAs, no MXU pass ----
    w3 = w3_ref[...]                                     # (LATENT, 400) f32
    h3 = jnp.broadcast_to(b3_ref[...], (z.shape[0], HID_DIM))
    for j in range(LATENT_DIM):                          # static, tiny
        h3 = h3 + z[:, j:j + 1] * w3[j:j + 1, :]
    h3 = jnp.maximum(h3, 0.0)

    # ---- decode fc4 + sigmoid ----
    logits = jnp.dot(h3.astype(jnp.bfloat16), w4_ref[...],
                     preferred_element_type=jnp.float32) + b4_ref[...]
    # sigmoid: exp on EUP, reciprocal on EUP (approx) -> stays off the VALU
    recon = pl.reciprocal(1.0 + jnp.exp(-logits), approx=True)

    recon_ref[...] = recon.astype(recon_ref.dtype)
    mulv_ref[...] = mulv.astype(mulv_ref.dtype)


def _round_up(n, m):
    return ((n + m - 1) // m) * m


@functools.partial(jax.jit, static_argnames=("block_b",))
def vae_forward(x, params, eps, *, block_b=256):
    """x: (B, C, H, W) or (B, 784). Returns (recon, mu, logvar)."""
    B = x.shape[0]
    x_flat = x.reshape(B, IN_DIM).astype(jnp.float32)
    eps = eps.astype(jnp.float32)

    (w1, b1, wenc, benc, w3, b3, w4, b4) = params

    # Batch tiling: TB multiple of 8 (sublane), capped at block_b.
    b_pad8 = _round_up(B, 8)
    TB = min(b_pad8, block_b)
    B_pad = _round_up(b_pad8, TB)
    if B_pad != B:
        pad = B_pad - B
        x_flat = jnp.pad(x_flat, ((0, pad), (0, 0)))
        eps = jnp.pad(eps, ((0, pad), (0, 0)))
    nb = B_pad // TB

    # Batch-tiled specs for activations; full-block (grid-invariant) specs for
    # parameters so they are not re-fetched per step.
    def batch_spec(feat):
        return pl.BlockSpec((TB, feat), lambda i: (i, 0))

    def full_spec(arr):
        return pl.BlockSpec(arr.shape, lambda i: (0, 0))

    in_specs = [
        batch_spec(IN_DIM),                 # x
        full_spec(w1), full_spec(b1),
        full_spec(wenc), full_spec(benc),
        full_spec(w3), full_spec(b3),
        full_spec(w4), full_spec(b4),
        batch_spec(LATENT_DIM),             # eps
    ]
    out_specs = (
        batch_spec(IN_DIM),                 # recon
        batch_spec(2 * LATENT_DIM),         # [mu | logvar] packed
    )

    flops = 2 * B_pad * (IN_DIM * HID_DIM            # fc1
                         + HID_DIM * 2 * LATENT_DIM  # fused fc21/fc22
                         + LATENT_DIM * HID_DIM      # fc3 (VPU)
                         + HID_DIM * IN_DIM)         # fc4
    weight_bytes = (w1.size + wenc.size + w4.size) * 2 + (w3.size * 4) \
        + (b1.size + benc.size + b3.size + b4.size) * 4
    bytes_accessed = weight_bytes + B_pad * (IN_DIM * 4 * 2          # x + recon
                                             + LATENT_DIM * 4        # eps
                                             + 2 * LATENT_DIM * 4)   # mu|logvar
    transcendentals = B_pad * (IN_DIM + 2 * LATENT_DIM)

    recon_pad, mulv_pad = pl.pallas_call(
        vae_kernel,
        grid=(nb,),
        out_shape=(
            jax.ShapeDtypeStruct((B_pad, IN_DIM), jnp.float32),
            jax.ShapeDtypeStruct((B_pad, 2 * LATENT_DIM), jnp.float32),
        ),
        in_specs=in_specs,
        out_specs=out_specs,
        compiler_params=pltpu.CompilerParams(
            dimension_semantics=("parallel",),
            vmem_limit_bytes=32 << 20,
        ),
        cost_estimate=pl.CostEstimate(
            flops=flops,
            transcendentals=transcendentals,
            bytes_accessed=bytes_accessed,
        ),
    )(x_flat, w1, b1, wenc, benc, w3, b3, w4, b4, eps)

    recon = recon_pad[:B]
    mu = mulv_pad[:B, :LATENT_DIM]
    logvar = mulv_pad[:B, LATENT_DIM:]
    return recon, mu, logvar


def init_params(key):
    """Deterministic init matching PyTorch layer shapes, stored (in, out).
    MXU-feeding weights (fc1, fused fc21|fc22, fc4) are bf16; fc3 (used on the
    VPU) and all biases stay f32."""
    ks = jax.random.split(key, 10)

    def lin(kw, kb, fan_in, fan_out, w_dtype):
        bound = 1.0 / jnp.sqrt(fan_in)
        w = jax.random.uniform(kw, (fan_in, fan_out), jnp.float32, -bound, bound)
        b = jax.random.uniform(kb, (1, fan_out), jnp.float32, -bound, bound)
        return w.astype(w_dtype), b

    w1, b1 = lin(ks[0], ks[1], IN_DIM, HID_DIM, jnp.bfloat16)        # fc1
    w21, b21 = lin(ks[2], ks[3], HID_DIM, LATENT_DIM, jnp.bfloat16)  # fc21
    w22, b22 = lin(ks[4], ks[5], HID_DIM, LATENT_DIM, jnp.bfloat16)  # fc22
    w3, b3 = lin(ks[6], ks[7], LATENT_DIM, HID_DIM, jnp.float32)     # fc3 (VPU)
    w4, b4 = lin(ks[8], ks[9], HID_DIM, IN_DIM, jnp.bfloat16)        # fc4

    # Fuse fc21/fc22 into one matmul: [mu | logvar].
    wenc = jnp.concatenate([w21, w22], axis=1)                       # (400, 2L) bf16
    benc = jnp.concatenate([b21, b22], axis=1)                       # (1, 2L) f32
    return (w1, b1, wenc, benc, w3, b3, w4, b4)


if __name__ == "__main__":
    key = jax.random.PRNGKey(0)
    k_params, k_x, k_eps = jax.random.split(key, 3)

    B = 8
    # MNIST-shaped input (NCHW), flattened inside the wrapper like x.view(-1, 784)
    x = jax.random.normal(k_x, (B, 1, 28, 28), dtype=jnp.float32)
    eps = jax.random.normal(k_eps, (B, LATENT_DIM), dtype=jnp.float32)

    params = init_params(k_params)

    recon, mu, logvar = vae_forward(x, params, eps)
    jax.block_until_ready((recon, mu, logvar))

    assert recon.shape == (B, IN_DIM)
    assert mu.shape == (B, LATENT_DIM)
    assert logvar.shape == (B, LATENT_DIM)
    assert bool(jnp.all(jnp.isfinite(recon)))
    assert bool(jnp.all((recon >= 0.0) & (recon <= 1.0)))
    print("KERNEL_OK")
</pallas_src>

<mosaic_0001>
module attributes {stable_mosaic.version = 11 : i64} {
  func.func @vae_kernel(%arg0: i32, %arg1: memref<8x784xf32, #tpu.memory_space<vmem>>, %arg2: memref<784x400xbf16, #tpu.memory_space<vmem>>, %arg3: memref<1x400xf32, #tpu.memory_space<vmem>>, %arg4: memref<400x4xbf16, #tpu.memory_space<vmem>>, %arg5: memref<1x4xf32, #tpu.memory_space<vmem>>, %arg6: memref<2x400xf32, #tpu.memory_space<vmem>>, %arg7: memref<1x400xf32, #tpu.memory_space<vmem>>, %arg8: memref<400x784xbf16, #tpu.memory_space<vmem>>, %arg9: memref<1x784xf32, #tpu.memory_space<vmem>>, %arg10: memref<8x2xf32, #tpu.memory_space<vmem>>, %arg11: memref<8x784xf32, #tpu.memory_space<vmem>>, %arg12: memref<8x4xf32, #tpu.memory_space<vmem>>) attributes {dimension_semantics = [#tpu.dimension_semantics<parallel>], iteration_bounds = array<i64: 1>, scalar_prefetch = 0 : i64, scratch_operands = 0 : i64, tpu.core_type = #tpu.core_type<tc>, window_params = [{transform_indices = @transform_0, window_bounds = array<i64: 8, 784>}, {pipeline_mode = #tpu.pipeline_mode<synchronous>, transform_indices = @transform_1, window_bounds = array<i64: 784, 400>}, {pipeline_mode = #tpu.pipeline_mode<synchronous>, transform_indices = @transform_2, window_bounds = array<i64: 1, 400>}, {pipeline_mode = #tpu.pipeline_mode<synchronous>, transform_indices = @transform_3, window_bounds = array<i64: 400, 4>}, {pipeline_mode = #tpu.pipeline_mode<synchronous>, transform_indices = @transform_4, window_bounds = array<i64: 1, 4>}, {pipeline_mode = #tpu.pipeline_mode<synchronous>, transform_indices = @transform_5, window_bounds = array<i64: 2, 400>}, {pipeline_mode = #tpu.pipeline_mode<synchronous>, transform_indices = @transform_6, window_bounds = array<i64: 1, 400>}, {pipeline_mode = #tpu.pipeline_mode<synchronous>, transform_indices = @transform_7, window_bounds = array<i64: 400, 784>}, {pipeline_mode = #tpu.pipeline_mode<synchronous>, transform_indices = @transform_8, window_bounds = array<i64: 1, 784>}, {transform_indices = @transform_9, window_bounds = array<i64: 8, 2>}, {transform_indices = @transform_10, window_bounds = array<i64: 8, 784>}, {transform_indices = @transform_11, window_bounds = array<i64: 8, 4>}]} {
    %c0 = arith.constant 0 : index
    %c0_0 = arith.constant 0 : index
    %0 = vector.load %arg1[%c0, %c0_0] : memref<8x784xf32, #tpu.memory_space<vmem>>, vector<8x784xf32>
    %1 = arith.truncf %0 : vector<8x784xf32> to vector<8x784xbf16>
    %c0_1 = arith.constant 0 : index
    %c0_2 = arith.constant 0 : index
    %2 = vector.load %arg2[%c0_1, %c0_2] : memref<784x400xbf16, #tpu.memory_space<vmem>>, vector<784x400xbf16>
    %cst = arith.constant dense<0.000000e+00> : vector<8x400xf32>
    %3 = tpu.matmul %1, %2, %cst {dimension_numbers = #tpu.dot_dimension_numbers<[1], [0], [0], [1], [0, 0, 1, 1], [], []>} : vector<8x784xbf16>, vector<784x400xbf16>, vector<8x400xf32> -> vector<8x400xf32>
    %c0_3 = arith.constant 0 : index
    %c0_4 = arith.constant 0 : index
    %4 = vector.load %arg3[%c0_3, %c0_4] : memref<1x400xf32, #tpu.memory_space<vmem>>, vector<1x400xf32>
    %5 = vector.broadcast %4 : vector<1x400xf32> to vector<8x400xf32>
    %6 = arith.addf %3, %5 : vector<8x400xf32>
    %cst_5 = arith.constant 0.000000e+00 : f32
    %7 = vector.broadcast %cst_5 : f32 to vector<8x400xf32>
    %8 = arith.maximumf %6, %7 : vector<8x400xf32>
    %9 = arith.truncf %8 : vector<8x400xf32> to vector<8x400xbf16>
    %c0_6 = arith.constant 0 : index
    %c0_7 = arith.constant 0 : index
    %10 = vector.load %arg4[%c0_6, %c0_7] : memref<400x4xbf16, #tpu.memory_space<vmem>>, vector<400x4xbf16>
    %cst_8 = arith.constant dense<0.000000e+00> : vector<8x4xf32>
    %11 = tpu.matmul %9, %10, %cst_8 {dimension_numbers = #tpu.dot_dimension_numbers<[1], [0], [0], [1], [0, 0, 1, 1], [], []>} : vector<8x400xbf16>, vector<400x4xbf16>, vector<8x4xf32> -> vector<8x4xf32>
    %c0_9 = arith.constant 0 : index
    %c0_10 = arith.constant 0 : index
    %12 = vector.load %arg5[%c0_9, %c0_10] : memref<1x4xf32, #tpu.memory_space<vmem>>, vector<1x4xf32>
    %13 = vector.broadcast %12 : vector<1x4xf32> to vector<8x4xf32>
    %14 = arith.addf %11, %13 : vector<8x4xf32>
    %15 = vector.extract_strided_slice %14 {offsets = [0, 0], sizes = [8, 2], strides = [1, 1]} : vector<8x4xf32> to vector<8x2xf32>
    %16 = vector.extract_strided_slice %14 {offsets = [0, 2], sizes = [8, 2], strides = [1, 1]} : vector<8x4xf32> to vector<8x2xf32>
    %cst_11 = arith.constant 5.000000e-01 : f32
    %17 = vector.broadcast %cst_11 : f32 to vector<8x2xf32>
    %18 = arith.mulf %17, %16 : vector<8x2xf32>
    %19 = math.exp %18 : vector<8x2xf32>
    %c0_12 = arith.constant 0 : index
    %c0_13 = arith.constant 0 : index
    %20 = vector.load %arg10[%c0_12, %c0_13] : memref<8x2xf32, #tpu.memory_space<vmem>>, vector<8x2xf32>
    %21 = arith.mulf %20, %19 : vector<8x2xf32>
    %22 = arith.addf %15, %21 : vector<8x2xf32>
    %c0_14 = arith.constant 0 : index
    %c0_15 = arith.constant 0 : index
    %23 = vector.load %arg6[%c0_14, %c0_15] : memref<2x400xf32, #tpu.memory_space<vmem>>, vector<2x400xf32>
    %c0_16 = arith.constant 0 : index
    %c0_17 = arith.constant 0 : index
    %24 = vector.load %arg7[%c0_16, %c0_17] : memref<1x400xf32, #tpu.memory_space<vmem>>, vector<1x400xf32>
    %25 = vector.shape_cast %24 : vector<1x400xf32> to vector<1x400xf32>
    %26 = vector.broadcast %25 : vector<1x400xf32> to vector<8x400xf32>
    %27 = vector.extract_strided_slice %22 {offsets = [0, 0], sizes = [8, 1], strides = [1, 1]} : vector<8x2xf32> to vector<8x1xf32>
    %28 = vector.extract_strided_slice %23 {offsets = [0, 0], sizes = [1, 400], strides = [1, 1]} : vector<2x400xf32> to vector<1x400xf32>
    %29 = vector.broadcast %27 : vector<8x1xf32> to vector<8x400xf32>
    %30 = vector.broadcast %28 : vector<1x400xf32> to vector<8x400xf32>
    %31 = arith.mulf %29, %30 : vector<8x400xf32>
    %32 = arith.addf %26, %31 : vector<8x400xf32>
    %33 = vector.extract_strided_slice %22 {offsets = [0, 1], sizes = [8, 1], strides = [1, 1]} : vector<8x2xf32> to vector<8x1xf32>
    %34 = vector.extract_strided_slice %23 {offsets = [1, 0], sizes = [1, 400], strides = [1, 1]} : vector<2x400xf32> to vector<1x400xf32>
    %35 = vector.broadcast %33 : vector<8x1xf32> to vector<8x400xf32>
    %36 = vector.broadcast %34 : vector<1x400xf32> to vector<8x400xf32>
    %37 = arith.mulf %35, %36 : vector<8x400xf32>
    %38 = arith.addf %32, %37 : vector<8x400xf32>
    %cst_18 = arith.constant 0.000000e+00 : f32
    %39 = vector.broadcast %cst_18 : f32 to vector<8x400xf32>
    %40 = arith.maximumf %38, %39 : vector<8x400xf32>
    %41 = arith.truncf %40 : vector<8x400xf32> to vector<8x400xbf16>
    %c0_19 = arith.constant 0 : index
    %c0_20 = arith.constant 0 : index
    %42 = vector.load %arg8[%c0_19, %c0_20] : memref<400x784xbf16, #tpu.memory_space<vmem>>, vector<400x784xbf16>
    %cst_21 = arith.constant dense<0.000000e+00> : vector<8x784xf32>
    %43 = tpu.matmul %41, %42, %cst_21 {dimension_numbers = #tpu.dot_dimension_numbers<[1], [0], [0], [1], [0, 0, 1, 1], [], []>} : vector<8x400xbf16>, vector<400x784xbf16>, vector<8x784xf32> -> vector<8x784xf32>
    %c0_22 = arith.constant 0 : index
    %c0_23 = arith.constant 0 : index
    %44 = vector.load %arg9[%c0_22, %c0_23] : memref<1x784xf32, #tpu.memory_space<vmem>>, vector<1x784xf32>
    %45 = vector.broadcast %44 : vector<1x784xf32> to vector<8x784xf32>
    %46 = arith.addf %43, %45 : vector<8x784xf32>
    %cst_24 = arith.constant 0.000000e+00 : f32
    %47 = vector.broadcast %cst_24 : f32 to vector<8x784xf32>
    %48 = arith.subf %47, %46 : vector<8x784xf32>
    %49 = math.exp %48 : vector<8x784xf32>
    %cst_25 = arith.constant 1.000000e+00 : f32
    %50 = vector.broadcast %cst_25 : f32 to vector<8x784xf32>
    %51 = arith.addf %50, %49 : vector<8x784xf32>
    %52 = tpu.reciprocal %51 {approx = true} : vector<8x784xf32> -> vector<8x784xf32>
    %c0_26 = arith.constant 0 : index
    %c0_27 = arith.constant 0 : index
    %53 = vector.load %arg11[%c0_26, %c0_27] : memref<8x784xf32, #tpu.memory_space<vmem>>, vector<8x784xf32>
    tpu.vector_store %arg11[%c0_26, %c0_27], %52 {strides = array<i32>} : memref<8x784xf32, #tpu.memory_space<vmem>>, vector<8x784xf32>,
    %c0_28 = arith.constant 0 : index
    %c0_29 = arith.constant 0 : index
    %54 = vector.load %arg12[%c0_28, %c0_29] : memref<8x4xf32, #tpu.memory_space<vmem>>, vector<8x4xf32>
    tpu.vector_store %arg12[%c0_28, %c0_29], %14 {strides = array<i32>} : memref<8x4xf32, #tpu.memory_space<vmem>>, vector<8x4xf32>,
    return
  }
  func.func @transform_0(%arg0: i32) -> (i32, i32) {
    %c0_i32 = arith.constant 0 : i32
    %c0_i32_0 = arith.constant 0 : i32
    return %arg0, %c0_i32 : i32, i32
  }
  func.func @transform_1(%arg0: i32) -> (i32, i32) {
    %c0_i32 = arith.constant 0 : i32
    %c0_i32_0 = arith.constant 0 : i32
    %c0_i32_1 = arith.constant 0 : i32
    return %c0_i32, %c0_i32_0 : i32, i32
  }
  func.func @transform_2(%arg0: i32) -> (i32, i32) {
    %c0_i32 = arith.constant 0 : i32
    %c0_i32_0 = arith.constant 0 : i32
    %c0_i32_1 = arith.constant 0 : i32
    return %c0_i32, %c0_i32_0 : i32, i32
  }
  func.func @transform_3(%arg0: i32) -> (i32, i32) {
    %c0_i32 = arith.constant 0 : i32
    %c0_i32_0 = arith.constant 0 : i32
    %c0_i32_1 = arith.constant 0 : i32
    return %c0_i32, %c0_i32_0 : i32, i32
  }
  func.func @transform_4(%arg0: i32) -> (i32, i32) {
    %c0_i32 = arith.constant 0 : i32
    %c0_i32_0 = arith.constant 0 : i32
    %c0_i32_1 = arith.constant 0 : i32
    return %c0_i32, %c0_i32_0 : i32, i32
  }
  func.func @transform_5(%arg0: i32) -> (i32, i32) {
    %c0_i32 = arith.constant 0 : i32
    %c0_i32_0 = arith.constant 0 : i32
    %c0_i32_1 = arith.constant 0 : i32
    return %c0_i32, %c0_i32_0 : i32, i32
  }
  func.func @transform_6(%arg0: i32) -> (i32, i32) {
    %c0_i32 = arith.constant 0 : i32
    %c0_i32_0 = arith.constant 0 : i32
    %c0_i32_1 = arith.constant 0 : i32
    return %c0_i32, %c0_i32_0 : i32, i32
  }
  func.func @transform_7(%arg0: i32) -> (i32, i32) {
    %c0_i32 = arith.constant 0 : i32
    %c0_i32_0 = arith.constant 0 : i32
    %c0_i32_1 = arith.constant 0 : i32
    return %c0_i32, %c0_i32_0 : i32, i32
  }
  func.func @transform_8(%arg0: i32) -> (i32, i32) {
    %c0_i32 = arith.constant 0 : i32
    %c0_i32_0 = arith.constant 0 : i32
    %c0_i32_1 = arith.constant 0 : i32
    return %c0_i32, %c0_i32_0 : i32, i32
  }
  func.func @transform_9(%arg0: i32) -> (i32, i32) {
    %c0_i32 = arith.constant 0 : i32
    %c0_i32_0 = arith.constant 0 : i32
    return %arg0, %c0_i32 : i32, i32
  }
  func.func @transform_10(%arg0: i32) -> (i32, i32) {
    %c0_i32 = arith.constant 0 : i32
    %c0_i32_0 = arith.constant 0 : i32
    return %arg0, %c0_i32 : i32, i32
  }
  func.func @transform_11(%arg0: i32) -> (i32, i32) {
    %c0_i32 = arith.constant 0 : i32
    %c0_i32_0 = arith.constant 0 : i32
    return %arg0, %c0_i32 : i32, i32
  }
}

</mosaic_0001>

<bundles_post_ra>
// kernel: vae_forward.1
= control target key start
LH: loop header
LB: loop body
LE: loop exit
PB: predicated region body
PF: predicated region fallthrough
CT: control target
= control target key end

     0   :  { %vm1239_vm0 = vcmask 130048   ;;  %s8091_s0 = inlined_call_operand.vmem [shape: f32[8,784], index: 0, kind: input, shape index: {}]   ;;  %s8092_s1 = inlined_call_operand.vmem [shape: bf16[784,400], index: 1, kind: input, shape index: {}]   ;;  %s8093_s2 = inlined_call_operand.vmem [shape: f32[1,400], index: 2, kind: input, shape index: {}]   ;;  %s8094_s3 = inlined_call_operand.vmem [shape: bf16[400,4], index: 3, kind: input, shape index: {}]   ;;  %s8095_s4 = inlined_call_operand.vmem [shape: f32[1,4], index: 4, kind: input, shape index: {}]   ;;  %s8096_s5 = inlined_call_operand.vmem [shape: f32[2,400], index: 5, kind: input, shape index: {}]   ;;  %s8097_s6 = inlined_call_operand.vmem [shape: f32[1,400], index: 6, kind: input, shape index: {}]   ;;  %s8098_s7 = inlined_call_operand.vmem [shape: bf16[400,784], index: 7, kind: input, shape index: {}]   ;;  %s8099_s8 = inlined_call_operand.vmem [shape: f32[1,784], index: 8, kind: input, shape index: {}]   ;;  %s8100_s9 = inlined_call_operand.vmem [shape: f32[8,2], index: 9, kind: input, shape index: {}]   ;;  %s8101_s10 = inlined_call_operand.hbm [shape: f32[8,784], index: 10, kind: output, shape index: {0}]   ;;  %s8102_s11 = inlined_call_operand.vmem [shape: f32[8,4], index: 11, kind: output, shape index: {1}]  }
   0x1   :  { %v3614_v0 = vld [vmem:[%s8092_s1 + $0xe0] sm:$0xf]  ;;  %v5126_v1 = vld [vmem:[%s8092_s1 + $0xec] sm:$0xf0] }
   0x2   :  { %v3742_v2 = vld [vmem:[%s8092_s1 + $0x1e0] sm:$0xf]  ;;  %v3615_v3 = vor.u32 %v5126_v1, %v3614_v0  ;;  %v5158_v4 = vld [vmem:[%s8092_s1 + $0x1ec] sm:$0xf0] }
   0x3   :  { %v3870_v5 = vld [vmem:[%s8092_s1 + $0x2e0] sm:$0xf]  ;;  %v5190_v6 = vld [vmem:[%s8092_s1 + $0x2ec] sm:$0xf0]  ;;  %v3743_v7 = vor.u32 %v5158_v4, %v3742_v2 }
   0x4   :  { %v3871_v8 = vor.u32 %v5190_v6, %v3870_v5  ;;  %v3998_v9 = vld [vmem:[%s8092_s1 + $0x3e0] sm:$0xf]  ;;  %v5222_v10 = vld [vmem:[%s8092_s1 + $0x3ec] sm:$0xf0]  ;;  %1243 = vmatpush.bf16.msra.mxu0 %v3615_v3 }
   0x5   :  { %v3598_v11 = vld [vmem:[%s8092_s1 + $0xc0] sm:$0xf]  ;;  %v3999_v12 = vor.u32 %v5222_v10, %v3998_v9  ;;  %v5122_v13 = vld [vmem:[%s8092_s1 + $0xcc] sm:$0xf0]  ;;  %1256 = vmatpush.bf16.msra.mxu1 %v3743_v7 }
   0x6   :  { %v3726_v14 = vld [vmem:[%s8092_s1 + $0x1c0] sm:$0xf]  ;;  %v5154_v15 = vld [vmem:[%s8092_s1 + $0x1cc] sm:$0xf0]  ;;  %1269 = vmatpush.bf16.msra.mxu2 %v3871_v8  ;;  %v3599_v16 = vor.u32 %v5122_v13, %v3598_v11 }
   0x7   :  { %v3727_v17 = vor.u32 %v5154_v15, %v3726_v14  ;;  %v3854_v18 = vld [vmem:[%s8092_s1 + $0x2c0] sm:$0xf]  ;;  %v5186_v19 = vld [vmem:[%s8092_s1 + $0x2cc] sm:$0xf0]  ;;  %1282 = vmatpush.bf16.msra.mxu3 %v3999_v12 }
   0x8   :  { %v3982_v20 = vld [vmem:[%s8092_s1 + $0x3c0] sm:$0xf]  ;;  %v3855_v21 = vor.u32 %v5186_v19, %v3854_v18  ;;  %v5218_v22 = vld [vmem:[%s8092_s1 + $0x3cc] sm:$0xf0]  ;;  %1244 = vmatpush.bf16.msra.mxu0 %v3599_v16 }
   0x9   :  { %v3582_v23 = vld [vmem:[%s8092_s1 + $0xa0] sm:$0xf]  ;;  %v5118_v24 = vld [vmem:[%s8092_s1 + $0xac] sm:$0xf0]  ;;  %v3983_v25 = vor.u32 %v5218_v22, %v3982_v20  ;;  %1257 = vmatpush.bf16.msra.mxu1 %v3727_v17 }
   0xa   :  { %v3710_v26 = vld [vmem:[%s8092_s1 + $0x1a0] sm:$0xf]  ;;  %v5150_v27 = vld [vmem:[%s8092_s1 + $0x1ac] sm:$0xf0]  ;;  %v3583_v29 = vor.u32 %v5118_v24, %v3582_v23  ;;  %1270 = vmatpush.bf16.msra.mxu2 %v3855_v21 }
   0xb   :  { %v3838_v28 = vld [vmem:[%s8092_s1 + $0x2a0] sm:$0xf]  ;;  %v5182_v30 = vld [vmem:[%s8092_s1 + $0x2ac] sm:$0xf0]  ;;  %v3711_v33 = vor.u32 %v5150_v27, %v3710_v26  ;;  %1283 = vmatpush.bf16.msra.mxu3 %v3983_v25 }
   0xc   :  { %v3966_v31 = vld [vmem:[%s8092_s1 + $0x3a0] sm:$0xf]  ;;  %v5214_v32 = vld [vmem:[%s8092_s1 + $0x3ac] sm:$0xf0]  ;;  %v3839_v34 = vor.u32 %v5182_v30, %v3838_v28  ;;  %1245 = vmatpush.bf16.msra.mxu0 %v3583_v29 }
   0xd   :  { %v3566_v35 = vld [vmem:[%s8092_s1 + $0x80] sm:$0xf]  ;;  %v5114_v36 = vld [vmem:[%s8092_s1 + $0x8c] sm:$0xf0]  ;;  %v3967_v38 = vor.u32 %v5214_v32, %v3966_v31  ;;  %1258 = vmatpush.bf16.msra.mxu1 %v3711_v33  ;;  %v5124_v33 = vld [vmem:[%s8092_s1 + $0xe4] sm:$0xf] }
   0xe   :  { %v3694_v37 = vld [vmem:[%s8092_s1 + $0x180] sm:$0xf]  ;;  %v5146_v39 = vld [vmem:[%s8092_s1 + $0x18c] sm:$0xf0]  ;;  %v3567_v44 = vor.u32 %v5114_v36, %v3566_v35  ;;  %1271 = vmatpush.bf16.msra.mxu2 %v3839_v34  ;;  %v3616_v34 = vld [vmem:[%s8092_s1 + $0xf0] sm:$0xf0] }
   0xf   :  { %v3822_v40 = vld [vmem:[%s8092_s1 + $0x280] sm:$0xf]  ;;  %v5178_v41 = vld [vmem:[%s8092_s1 + $0x28c] sm:$0xf0]  ;;  %v3695_v45 = vor.u32 %v5146_v39, %v3694_v37  ;;  %1284 = vmatpush.bf16.msra.mxu3 %v3967_v38 }
  0x10   :  { %v3950_v42 = vld [vmem:[%s8092_s1 + $0x380] sm:$0xf]  ;;  %v5210_v43 = vld [vmem:[%s8092_s1 + $0x38c] sm:$0xf0]  ;;  %v3823_v46 = vor.u32 %v5178_v41, %v3822_v40  ;;  %1246 = vmatpush.bf16.msra.mxu0 %v3567_v44  ;;  %v3744_v44 = vld [vmem:[%s8092_s1 + $0x1f0] sm:$0xf0] }
  0x11   :  { %v3550_v47 = vld [vmem:[%s8092_s1 + $0x60] sm:$0xf]  ;;  %v5110_v48 = vld [vmem:[%s8092_s1 + $0x6c] sm:$0xf0]  ;;  %v3951_v50 = vor.u32 %v5210_v43, %v3950_v42  ;;  %1259 = vmatpush.bf16.msra.mxu1 %v3695_v45  ;;  %v5156_v43 = vld [vmem:[%s8092_s1 + $0x1e4] sm:$0xf] }
  0x12   :  { %v3678_v49 = vld [vmem:[%s8092_s1 + $0x160] sm:$0xf]  ;;  %v5142_v51 = vld [vmem:[%s8092_s1 + $0x16c] sm:$0xf0]  ;;  %v3551_v56 = vor.u32 %v5110_v48, %v3550_v47  ;;  %1272 = vmatpush.bf16.msra.mxu2 %v3823_v46  ;;  %v42_v45 = vld [vmem:[%s8091_s0 + $0x18] sm:$0xff]  ;;  %v3619_v47 = vor.u32 %v5124_v33, %v3616_v34 }
  0x13   :  { %v3806_v52 = vld [vmem:[%s8092_s1 + $0x260] sm:$0xf]  ;;  %v5174_v53 = vld [vmem:[%s8092_s1 + $0x26c] sm:$0xf0]  ;;  %v3679_v57 = vor.u32 %v5142_v51, %v3678_v49  ;;  %1285 = vmatpush.bf16.msra.mxu3 %v3951_v50 }
  0x14   :  { %v3934_v54 = vld [vmem:[%s8092_s1 + $0x360] sm:$0xf]  ;;  %v5206_v55 = vld [vmem:[%s8092_s1 + $0x36c] sm:$0xf0]  ;;  %v3807_v58 = vor.u32 %v5174_v53, %v3806_v52  ;;  %1247 = vmatpush.bf16.msra.mxu0 %v3551_v56  ;;  %v5120_v53 = vld [vmem:[%s8092_s1 + $0xc4] sm:$0xf] }
  0x15   :  { %v3534_v59 = vld [vmem:[%s8092_s1 + $0x40] sm:$0xf]  ;;  %v5106_v60 = vld [vmem:[%s8092_s1 + $0x4c] sm:$0xf0]  ;;  %v3935_v62 = vor.u32 %v5206_v55, %v3934_v54  ;;  %1260 = vmatpush.bf16.msra.mxu1 %v3679_v57  ;;  %v3600_v54 = vld [vmem:[%s8092_s1 + $0xd0] sm:$0xf0]  ;;  %v5873_v57 = vpack.c.bf16 %v42_v45, %v42_v45 }
  0x16   :  { %v3662_v61 = vld [vmem:[%s8092_s1 + $0x140] sm:$0xf]  ;;  %v5138_v63 = vld [vmem:[%s8092_s1 + $0x14c] sm:$0xf0]  ;;  %v3535_v4 = vor.u32 %v5106_v60, %v3534_v59  ;;  %1273 = vmatpush.bf16.msra.mxu2 %v3807_v58  ;;  %v40_v58 = vld [vmem:[%s8091_s0 + $0x8] sm:$0xff]  ;;  %v3747_v59 = vor.u32 %v5156_v43, %v3744_v44 }
  0x17   :  { %v3790_v0 = vld [vmem:[%s8092_s1 + $0x240] sm:$0xf]  ;;  %v5170_v1 = vld [vmem:[%s8092_s1 + $0x24c] sm:$0xf0]  ;;  %v3663_v5 = vor.u32 %v5138_v63, %v3662_v61  ;;  %1286 = vmatpush.bf16.msra.mxu3 %v3935_v62  ;;  %v5152_v61 = vld [vmem:[%s8092_s1 + $0x1c4] sm:$0xf] }
  0x18   :  { %v3918_v2 = vld [vmem:[%s8092_s1 + $0x340] sm:$0xf]  ;;  %v5202_v3 = vld [vmem:[%s8092_s1 + $0x34c] sm:$0xf0]  ;;  %v3791_v6 = vor.u32 %v5170_v1, %v3790_v0  ;;  %1248 = vmatpush.bf16.msra.mxu0 %v3535_v4  ;;  %v3728_v62 = vld [vmem:[%s8092_s1 + $0x1d0] sm:$0xf0]  ;;  %v3603_v0 = vor.u32 %v5120_v53, %v3600_v54 }
  0x19   :  { %v3518_v7 = vld [vmem:[%s8092_s1 + $0x20] sm:$0xf]  ;;  %v5102_v8 = vld [vmem:[%s8092_s1 + $0x2c] sm:$0xf0]  ;;  %v3919_v10 = vor.u32 %v5202_v3, %v3918_v2  ;;  %1261 = vmatpush.bf16.msra.mxu1 %v3663_v5  ;;  %v5116_v5 = vld [vmem:[%s8092_s1 + $0xa4] sm:$0xf] }
  0x1a   :  { %v3646_v9 = vld [vmem:[%s8092_s1 + $0x120] sm:$0xf]  ;;  %v5134_v11 = vld [vmem:[%s8092_s1 + $0x12c] sm:$0xf0]  ;;  %v3519_v16 = vor.u32 %v5102_v8, %v3518_v7  ;;  %1274 = vmatpush.bf16.msra.mxu2 %v3791_v6  ;;  %v3584_v6 = vld [vmem:[%s8092_s1 + $0xb0] sm:$0xf0]  ;;  %v5904_v7 = vpack.c.bf16 %v40_v58, %v40_v58  ;;  %v3731_v8 = vor.u32 %v5152_v61, %v3728_v62 }
  0x1b   :  { %v3774_v12 = vld [vmem:[%s8092_s1 + $0x220] sm:$0xf]  ;;  %v5166_v13 = vld [vmem:[%s8092_s1 + $0x22c] sm:$0xf0]  ;;  %v3647_v20 = vor.u32 %v5134_v11, %v3646_v9  ;;  %1287 = vmatpush.bf16.msra.mxu3 %v3919_v10  ;;  %v5148_v10 = vld [vmem:[%s8092_s1 + $0x1a4] sm:$0xf] }
  0x1c   :  { %v3902_v14 = vld [vmem:[%s8092_s1 + $0x320] sm:$0xf]  ;;  %v5198_v15 = vld [vmem:[%s8092_s1 + $0x32c] sm:$0xf0]  ;;  %v3775_v21 = vor.u32 %v5166_v13, %v3774_v12  ;;  %1249 = vmatpush.bf16.msra.mxu0 %v3519_v16  ;;  %v3712_v11 = vld [vmem:[%s8092_s1 + $0x1b0] sm:$0xf0]  ;;  %v3587_v13 = vor.u32 %v5116_v5, %v3584_v6 }
  0x1d   :  { %v3502_v17 = vld [vmem:[%s8092_s1] sm:$0xf]  ;;  %v5098_v18 = vld [vmem:[%s8092_s1 + $0xc] sm:$0xf0]  ;;  %v3903_v25 = vor.u32 %v5198_v15, %v3902_v14  ;;  %1262 = vmatpush.bf16.msra.mxu1 %v3647_v20  ;;  %v3715_v20 = vor.u32 %v5148_v10, %v3712_v11  ;;  %v5104_v43 = vld [vmem:[%s8092_s1 + $0x44] sm:$0xf] }
  0x1e   :  { %v3630_v19 = vld [vmem:[%s8092_s1 + $0x100] sm:$0xf]  ;;  %v5130_v22 = vld [vmem:[%s8092_s1 + $0x10c] sm:$0xf0]  ;;  %v3503_v32 = vor.u32 %v5098_v18, %v3502_v17  ;;  %1275 = vmatpush.bf16.msra.mxu2 %v3775_v21  ;;  %v5112_v18 = vld [vmem:[%s8092_s1 + $0x84] sm:$0xf] }
  0x1f   :  { %v3758_v23 = vld [vmem:[%s8092_s1 + $0x200] sm:$0xf]  ;;  %v5162_v24 = vld [vmem:[%s8092_s1 + $0x20c] sm:$0xf0]  ;;  %v3631_v36 = vor.u32 %v5130_v22, %v3630_v19  ;;  %1288 = vmatpush.bf16.msra.mxu3 %v3903_v25  ;;  %v3568_v19 = vld [vmem:[%s8092_s1 + $0x90] sm:$0xf0] }
  0x20   :  { %v3886_v26 = vld [vmem:[%s8092_s1 + $0x300] sm:$0xf]  ;;  %v5194_v27 = vld [vmem:[%s8092_s1 + $0x30c] sm:$0xf0]  ;;  %v3759_v37 = vor.u32 %v5162_v24, %v3758_v23  ;;  %1250 = vmatpush.bf16.msra.mxu0 %v3503_v32  ;;  %v5144_v22 = vld [vmem:[%s8092_s1 + $0x184] sm:$0xf]  ;;  %v3571_v25 = vor.u32 %v5112_v18, %v3568_v19 }
  0x21   :  { %v4126_v28 = vld [vmem:[%s8092_s1 + $0x4e0] sm:$0xf]  ;;  %v5254_v29 = vld [vmem:[%s8092_s1 + $0x4ec] sm:$0xf0]  ;;  %v3887_v41 = vor.u32 %v5194_v27, %v3886_v26  ;;  %1263 = vmatpush.bf16.msra.mxu1 %v3631_v36  ;;  %v3696_v23 = vld [vmem:[%s8092_s1 + $0x190] sm:$0xf0] }
  0x22   :  { %v4254_v30 = vld [vmem:[%s8092_s1 + $0x5e0] sm:$0xf]  ;;  %v5286_v31 = vld [vmem:[%s8092_s1 + $0x5ec] sm:$0xf0]  ;;  %v4127_v42 = vor.u32 %v5254_v29, %v4126_v28  ;;  %1276 = vmatpush.bf16.msra.mxu2 %v3759_v37  ;;  %v3699_v33 = vor.u32 %v5144_v22, %v3696_v23  ;;  %v3680_v36 = vld [vmem:[%s8092_s1 + $0x170] sm:$0xf0] }
  0x23   :  { %v41_v35 = vld [vmem:[%s8091_s0 + $0x10] sm:$0xff]  ;;  %v4270_v38 = vld [vmem:[%s8092_s1 + $0x600] sm:$0xf]  ;;  %v4255_v46 = vor.u32 %v5286_v31, %v4254_v30  ;;  %1289 = vmatpush.bf16.msra.mxu3 %v3887_v41  ;;  %v5108_v30 = vld [vmem:[%s8092_s1 + $0x64] sm:$0xf] }
  0x24   :  { %v5290_v39 = vld [vmem:[%s8092_s1 + $0x60c] sm:$0xf0]  ;;  %v39_v40 = vld [vmem:[%s8091_s0] sm:$0xff]  ;;  %v5860_v51 = vpack.c.bf16 %v41_v35, %v41_v35  ;;  %1295 = vmatpush.bf16.msrb.mxu0 %v4127_v42  ;;  %1264 = vmatmul.bf16.vlgmr.msra.gmra.mxu1 %v5904_v7  ;;  %v3552_v31 = vld [vmem:[%s8092_s1 + $0x70] sm:$0xf0] }
  0x25   :  { %v4110_v48 = vld [vmem:[%s8092_s1 + $0x4c0] sm:$0xf]  ;;  %v5250_v49 = vld [vmem:[%s8092_s1 + $0x4cc] sm:$0xf0]  ;;  %v5871_v55 = vpack.c.bf16 %v39_v40, %v39_v40  ;;  %v4271_v56 = vor.u32 %v5290_v39, %v4270_v38  ;;  %1308 = vmatpush.bf16.msrb.mxu1 %v4255_v46  ;;  %v5140_v35 = vld [vmem:[%s8092_s1 + $0x164] sm:$0xf]  ;;  %v3555_v38 = vor.u32 %v5108_v30, %v3552_v31 }
  0x26   :  { %v4238_v50 = vld [vmem:[%s8092_s1 + $0x5c0] sm:$0xf]  ;;  %v5282_v52 = vld [vmem:[%s8092_s1 + $0x5cc] sm:$0xf0]  ;;  %v4111_v60 = vor.u32 %v5250_v49, %v4110_v48  ;;  %1277 = vmatmul.bf16.vlgmr.msra.gmra.mxu2 %v5860_v51  ;;  %1290 = vmatmul.bf16.vlgmr.msra.gmra.mxu3 %v5873_v57  ;;  %v3536_v44 = vld [vmem:[%s8092_s1 + $0x50] sm:$0xf0]  ;;  %v3683_v46 = vor.u32 %v5140_v35, %v3680_v36 }
  0x27   :  { %1334 = vmatpush.bf16.msrb.mxu3 %v3619_v47  ;;  %v4239_v63 = vor.u32 %v5282_v52, %v4238_v50  ;;  %v4094_v1 = vld [vmem:[%s8092_s1 + $0x4a0] sm:$0xf]  ;;  %v5246_v2 = vld [vmem:[%s8092_s1 + $0x4ac] sm:$0xf0]  ;;  %1251 = vmatmul.bf16.vlgmr.msra.gmra.mxu0 %v5871_v55  ;;  %v5136_v48 = vld [vmem:[%s8092_s1 + $0x144] sm:$0xf]  ;;  %v3539_v52 = vor.u32 %v5104_v43, %v3536_v44 }
  0x28   :  { %v4222_v3 = vld [vmem:[%s8092_s1 + $0x5a0] sm:$0xf]  ;;  %v5278_v4 = vld [vmem:[%s8092_s1 + $0x5ac] sm:$0xf0]  ;;  %1328 = vmatpush.bf16.msrb.mxu2 %v4271_v56  ;;  %1296 = vmatpush.bf16.msrb.mxu0 %v4111_v60  ;;  %v4095_v9 = vor.u32 %v5246_v2, %v4094_v1  ;;  %v3664_v49 = vld [vmem:[%s8092_s1 + $0x150] sm:$0xf0] }
  0x29   :  { %1309 = vmatpush.bf16.msrb.mxu1 %v4239_v63  ;;  %v4223_v12 = vor.u32 %v5278_v4, %v4222_v3  ;;  %v4078_v14 = vld [vmem:[%s8092_s1 + $0x480] sm:$0xf]  ;;  %v5242_v15 = vld [vmem:[%s8092_s1 + $0x48c] sm:$0xf0]  ;;  %v3520_v60 = vld [vmem:[%s8092_s1 + $0x30] sm:$0xf0]  ;;  %v3667_v61 = vor.u32 %v5136_v48, %v3664_v49 }
  0x2a   :  { %v4206_v16 = vld [vmem:[%s8092_s1 + $0x580] sm:$0xf]  ;;  %v5274_v17 = vld [vmem:[%s8092_s1 + $0x58c] sm:$0xf0]  ;;  %v4079_v21 = vor.u32 %v5242_v15, %v4078_v14  ;;  %v5132_v63 = vld [vmem:[%s8092_s1 + $0x124] sm:$0xf] }
  0x2b   :  { %1335 = vmatpush.bf16.msrb.mxu3 %v3603_v0  ;;  %v4207_v24 = vor.u32 %v5274_v17, %v4206_v16  ;;  %v4062_v26 = vld [vmem:[%s8092_s1 + $0x460] sm:$0xf]  ;;  %v5238_v27 = vld [vmem:[%s8092_s1 + $0x46c] sm:$0xf0]  ;;  %v3648_v0 = vld [vmem:[%s8092_s1 + $0x130] sm:$0xf0] }
  0x2c   :  { %1347 = vmatpush.bf16.msra.mxu2 %v3747_v59  ;;  %1297 = vmatpush.bf16.msrb.mxu0 %v4095_v9  ;;  %v4190_v28 = vld [vmem:[%s8092_s1 + $0x560] sm:$0xf]  ;;  %v5270_v29 = vld [vmem:[%s8092_s1 + $0x56c] sm:$0xf0]  ;;  %v4063_v34 = vor.u32 %v5238_v27, %v4062_v26  ;;  %v5100_v59 = vld [vmem:[%s8092_s1 + $0x24] sm:$0xf]  ;;  %v3651_v14 = vor.u32 %v5132_v63, %v3648_v0 }
  0x2d   :  { %1310 = vmatpush.bf16.msrb.mxu1 %v4223_v12  ;;  %v45_v32 = vld [vmem:[%s8091_s0 + $0x30] sm:$0xff]  ;;  %v4191_v37 = vor.u32 %v5270_v29, %v4190_v28  ;;  %v4046_v39 = vld [vmem:[%s8092_s1 + $0x440] sm:$0xf]  ;;  %v3523_v3 = vor.u32 %v5100_v59, %v3520_v60  ;;  %v5188_v10 = vld [vmem:[%s8092_s1 + $0x2e4] sm:$0xf] }
  0x2e   :  { %v5234_v40 = vld [vmem:[%s8092_s1 + $0x44c] sm:$0xf0]  ;;  %v4174_v41 = vld [vmem:[%s8092_s1 + $0x540] sm:$0xf]  ;;  %v5983_v45 = vpack.c.bf16 %v45_v32, %v45_v32  ;;  %v3504_v9 = vld [vmem:[%s8092_s1 + $0x10] sm:$0xf0] }
  0x2f   :  { %1336 = vmatpush.bf16.msrb.mxu3 %v3587_v13  ;;  %v5266_v42 = vld [vmem:[%s8092_s1 + $0x54c] sm:$0xf0]  ;;  %v4047_v47 = vor.u32 %v5234_v40, %v4046_v39  ;;  %v4030_v53 = vld [vmem:[%s8092_s1 + $0x420] sm:$0xf]  ;;  %v3872_v11 = vld [vmem:[%s8092_s1 + $0x2f0] sm:$0xf0] }
  0x30   :  { %1348 = vmatpush.bf16.msra.mxu2 %v3731_v8  ;;  %1298 = vmatpush.bf16.msrb.mxu0 %v4079_v21  ;;  %v4175_v50 = vor.u32 %v5266_v42, %v4174_v41  ;;  %v5230_v54 = vld [vmem:[%s8092_s1 + $0x42c] sm:$0xf0]  ;;  %v4158_v56 = vld [vmem:[%s8092_s1 + $0x520] sm:$0xf]  ;;  %v5096_v8 = vld [vmem:[%s8092_s1 + $0x4] sm:$0xf] }
  0x31   :  { %1311 = vmatpush.bf16.msrb.mxu1 %v4207_v24  ;;  %v5262_v58 = vld [vmem:[%s8092_s1 + $0x52c] sm:$0xf0]  ;;  %v4031_v62 = vor.u32 %v5230_v54, %v4030_v53  ;;  %v4014_v1 = vld [vmem:[%s8092_s1 + $0x400] sm:$0xf]  ;;  %v5220_v12 = vld [vmem:[%s8092_s1 + $0x3e4] sm:$0xf]  ;;  %v3875_v24 = vor.u32 %v5188_v10, %v3872_v11 }
  0x32   :  { %v4159_v2 = vor.u32 %v5262_v58, %v4158_v56  ;;  %v5226_v4 = vld [vmem:[%s8092_s1 + $0x40c] sm:$0xf0]  ;;  %v4142_v5 = vld [vmem:[%s8092_s1 + $0x500] sm:$0xf]  ;;  %v4000_v13 = vld [vmem:[%s8092_s1 + $0x3f0] sm:$0xf0] }
  0x33   :  { %1337 = vmatpush.bf16.msrb.mxu3 %v3571_v25  ;;  %v5258_v6 = vld [vmem:[%s8092_s1 + $0x50c] sm:$0xf0]  ;;  %v4015_v15 = vor.u32 %v5226_v4, %v4014_v1  ;;  %v5252_v16 = vld [vmem:[%s8092_s1 + $0x4e4] sm:$0xf]  ;;  %v4128_v17 = vld [vmem:[%s8092_s1 + $0x4f0] sm:$0xf0]  ;;  %v4003_v25 = vor.u32 %v5220_v12, %v4000_v13 }
  0x34   :  { %1349 = vmatpush.bf16.msra.mxu2 %v3715_v20  ;;  %1299 = vmatpush.bf16.msrb.mxu0 %v4063_v34  ;;  %v43_v18 = vld [vmem:[%s8091_s0 + $0x20] sm:$0xff]  ;;  %v4143_v19 = vor.u32 %v5258_v6, %v4142_v5  ;;  %v3507_v20 = vor.u32 %v5096_v8, %v3504_v9  ;;  %v3632_v22 = vld [vmem:[%s8092_s1 + $0x110] sm:$0xf0]  ;;  %v44_v23 = vld [vmem:[%s8091_s0 + $0x28] sm:$0xff]  ;;  %v4131_v29 = vor.u32 %v5252_v16, %v4128_v17 }
  0x35   :  { %1312 = vmatpush.bf16.msrb.mxu1 %v4191_v37  ;;  %v5128_v21 = vld [vmem:[%s8092_s1 + $0x104] sm:$0xf]  ;;  %v4256_v27 = vld [vmem:[%s8092_s1 + $0x5f0] sm:$0xf0]  ;;  %v6074_v30 = vpack.c.bf16 %v43_v18, %v43_v18  ;;  %v6085_v35 = vpack.c.bf16 %v44_v23, %v44_v23 }
  0x36   :  { %4284 = vmatmul.msk.bf16.vlgmr.msrb.gmra.mxu2 %vm1239_vm0, %v5983_v45  ;;  %v5284_v26 = vld [vmem:[%s8092_s1 + $0x5e4] sm:$0xf]  ;;  %v3856_v31 = vld [vmem:[%s8092_s1 + $0x2d0] sm:$0xf0]  ;;  %v3635_v34 = vor.u32 %v5128_v21, %v3632_v22 }
  0x37   :  { %1338 = vmatpush.bf16.msrb.mxu3 %v3555_v38  ;;  %v5184_v28 = vld [vmem:[%s8092_s1 + $0x2c4] sm:$0xf]  ;;  %v4112_v37 = vld [vmem:[%s8092_s1 + $0x4d0] sm:$0xf0]  ;;  %v4259_v38 = vor.u32 %v5284_v26, %v4256_v27 }
  0x38   :  { %1350 = vmatpush.bf16.msra.mxu2 %v3699_v33  ;;  %1300 = vmatpush.bf16.msrb.mxu0 %v4047_v47  ;;  %v5216_v32 = vld [vmem:[%s8092_s1 + $0x3c4] sm:$0xf]  ;;  %v3984_v33 = vld [vmem:[%s8092_s1 + $0x3d0] sm:$0xf0]  ;;  %v3859_v39 = vor.u32 %v5184_v28, %v3856_v31 }
  0x39   :  { %1313 = vmatpush.bf16.msrb.mxu1 %v4175_v50  ;;  %v5248_v36 = vld [vmem:[%s8092_s1 + $0x4c4] sm:$0xf]  ;;  %v3987_v40 = vor.u32 %v5216_v32, %v3984_v33  ;;  %v4240_v42 = vld [vmem:[%s8092_s1 + $0x5d0] sm:$0xf0] }
  0x3a   :  { %v5280_v41 = vld [vmem:[%s8092_s1 + $0x5c4] sm:$0xf]  ;;  %v4115_v44 = vor.u32 %v5248_v36, %v4112_v37  ;;  %v3968_v48 = vld [vmem:[%s8092_s1 + $0x3b0] sm:$0xf0] }
  0x3b   :  { %1339 = vmatpush.bf16.msrb.mxu3 %v3539_v52  ;;  %v5180_v43 = vld [vmem:[%s8092_s1 + $0x2a4] sm:$0xf]  ;;  %v4096_v50 = vld [vmem:[%s8092_s1 + $0x4b0] sm:$0xf0]  ;;  %v4243_v52 = vor.u32 %v5280_v41, %v4240_v42 }
  0x3c   :  { %1351 = vmatpush.bf16.msra.mxu2 %v3683_v46  ;;  %1301 = vmatpush.bf16.msrb.mxu0 %v4031_v62  ;;  %v3840_v46 = vld [vmem:[%s8092_s1 + $0x2b0] sm:$0xf0]  ;;  %v5212_v47 = vld [vmem:[%s8092_s1 + $0x3a4] sm:$0xf] }
  0x3d   :  { %1314 = vmatpush.bf16.msrb.mxu1 %v4159_v2  ;;  %v5244_v49 = vld [vmem:[%s8092_s1 + $0x4a4] sm:$0xf]  ;;  %v3843_v53 = vor.u32 %v5180_v43, %v3840_v46  ;;  %v3971_v54 = vor.u32 %v5212_v47, %v3968_v48  ;;  %v4224_v58 = vld [vmem:[%s8092_s1 + $0x5b0] sm:$0xf0] }
  0x3e   :  { %v5276_v56 = vld [vmem:[%s8092_s1 + $0x5a4] sm:$0xf]  ;;  %v4099_v60 = vor.u32 %v5244_v49, %v4096_v50  ;;  %v3952_v63 = vld [vmem:[%s8092_s1 + $0x390] sm:$0xf0] }
  0x3f   :  { %1340 = vmatpush.bf16.msrb.mxu3 %v3523_v3  ;;  %v5176_v59 = vld [vmem:[%s8092_s1 + $0x284] sm:$0xf]  ;;  %v4080_v1 = vld [vmem:[%s8092_s1 + $0x490] sm:$0xf0]  ;;  %v4227_v2 = vor.u32 %v5276_v56, %v4224_v58  ;;  %v3622_v56 = vld [vmem:[%s8092_s1 + $0xe8] sm:$0xf] }
  0x40   :  { %1352 = vmatpush.bf16.msra.mxu2 %v3667_v61  ;;  %1302 = vmatpush.bf16.msrb.mxu0 %v4015_v15  ;;  %v3824_v61 = vld [vmem:[%s8092_s1 + $0x290] sm:$0xf0]  ;;  %v5208_v62 = vld [vmem:[%s8092_s1 + $0x384] sm:$0xf]  ;;  %v5127_v58 = vld [vmem:[%s8092_s1 + $0xf4] sm:$0xf0] }
  0x41   :  { %1315 = vmatpush.bf16.msrb.mxu1 %v4143_v19  ;;  %v5240_v0 = vld [vmem:[%s8092_s1 + $0x484] sm:$0xf]  ;;  %v3827_v3 = vor.u32 %v5176_v59, %v3824_v61  ;;  %v3955_v4 = vor.u32 %v5208_v62, %v3952_v63  ;;  %v4208_v6 = vld [vmem:[%s8092_s1 + $0x590] sm:$0xf0]  ;;  %v3750_v59 = vld [vmem:[%s8092_s1 + $0x1e8] sm:$0xf] }
  0x42   :  { %v5272_v5 = vld [vmem:[%s8092_s1 + $0x584] sm:$0xf]  ;;  %v4083_v9 = vor.u32 %v5240_v0, %v4080_v1  ;;  %v3808_v10 = vld [vmem:[%s8092_s1 + $0x270] sm:$0xf0]  ;;  %v5159_v61 = vld [vmem:[%s8092_s1 + $0x1f4] sm:$0xf0] }
  0x43   :  { %1341 = vmatpush.bf16.msrb.mxu3 %v3507_v20  ;;  %1303 = vmatmul.bf16.vlgmr.msrb.gmra.mxu0 %v6074_v30  ;;  %v5172_v8 = vld [vmem:[%s8092_s1 + $0x264] sm:$0xf]  ;;  %v3936_v12 = vld [vmem:[%s8092_s1 + $0x370] sm:$0xf0]  ;;  %v4211_v15 = vor.u32 %v5272_v5, %v4208_v6  ;;  %v3623_v6 = vor.u32 %v5127_v58, %v3622_v56 }
  0x44   :  { %1353 = vmatpush.bf16.msra.mxu2 %v3651_v14  ;;  %1360 = vmatpush.bf16.msra.mxu0 %v3875_v24  ;;  %v5204_v11 = vld [vmem:[%s8092_s1 + $0x364] sm:$0xf]  ;;  %v4064_v14 = vld [vmem:[%s8092_s1 + $0x470] sm:$0xf0]  ;;  %v3811_v16 = vor.u32 %v5172_v8, %v3808_v10  ;;  %v5191_v8 = vld [vmem:[%s8092_s1 + $0x2f4] sm:$0xf0] }
  0x45   :  { %1373 = vmatpush.bf16.msra.mxu1 %v4003_v25  ;;  %v5236_v13 = vld [vmem:[%s8092_s1 + $0x464] sm:$0xf]  ;;  %v3939_v17 = vor.u32 %v5204_v11, %v3936_v12  ;;  %v4192_v19 = vld [vmem:[%s8092_s1 + $0x570] sm:$0xf0]  ;;  %v5223_v10 = vld [vmem:[%s8092_s1 + $0x3f4] sm:$0xf0]  ;;  %v3751_v11 = vor.u32 %v5159_v61, %v3750_v59 }
  0x46   :  { %1316 = vmatmul.bf16.vlgmr.msrb.gmra.mxu1 %v6085_v35  ;;  %1342 = vmatmul.bf16.vlgmr.msrb.gmra.mxu3 %v5871_v55  ;;  %v5268_v18 = vld [vmem:[%s8092_s1 + $0x564] sm:$0xf]  ;;  %v4067_v21 = vor.u32 %v5236_v13, %v4064_v14  ;;  %v3792_v22 = vld [vmem:[%s8092_s1 + $0x250] sm:$0xf0]  ;;  %v3606_v13 = vld [vmem:[%s8092_s1 + $0xc8] sm:$0xf] }
  0x47   :  { %1386 = vmatpush.bf16.msra.mxu3 %v4131_v29  ;;  %v5168_v20 = vld [vmem:[%s8092_s1 + $0x244] sm:$0xf]  ;;  %v3920_v24 = vld [vmem:[%s8092_s1 + $0x350] sm:$0xf0]  ;;  %v4195_v27 = vor.u32 %v5268_v18, %v4192_v19  ;;  %v5123_v14 = vld [vmem:[%s8092_s1 + $0xd4] sm:$0xf0] }
  0x48   :  { %1354 = vmatpush.bf16.msra.mxu2 %v3635_v34  ;;  %1361 = vmatpush.bf16.msra.mxu0 %v3859_v39  ;;  %v5200_v23 = vld [vmem:[%s8092_s1 + $0x344] sm:$0xf]  ;;  %v4048_v26 = vld [vmem:[%s8092_s1 + $0x450] sm:$0xf0]  ;;  %v3795_v28 = vor.u32 %v5168_v20, %v3792_v22  ;;  %v3862_v20 = vld [vmem:[%s8092_s1 + $0x2c8] sm:$0xf] }
  0x49   :  { %1374 = vmatpush.bf16.msra.mxu1 %v3987_v40  ;;  %v5232_v25 = vld [vmem:[%s8092_s1 + $0x444] sm:$0xf]  ;;  %v3923_v29 = vor.u32 %v5200_v23, %v3920_v24  ;;  %v4176_v32 = vld [vmem:[%s8092_s1 + $0x550] sm:$0xf0]  ;;  %v5187_v22 = vld [vmem:[%s8092_s1 + $0x2d4] sm:$0xf0] }
  0x4a   :  { %v5264_v31 = vld [vmem:[%s8092_s1 + $0x544] sm:$0xf]  ;;  %v4051_v34 = vor.u32 %v5232_v25, %v4048_v26  ;;  %v3776_v36 = vld [vmem:[%s8092_s1 + $0x230] sm:$0xf0]  ;;  %v3990_v23 = vld [vmem:[%s8092_s1 + $0x3c8] sm:$0xf] }
  0x4b   :  { %1387 = vmatpush.bf16.msra.mxu3 %v4115_v44  ;;  %1355 = vmatmul.bf16.vlgmr.msra.gmra.mxu2 %v5904_v7  ;;  %v5164_v33 = vld [vmem:[%s8092_s1 + $0x224] sm:$0xf]  ;;  %v4032_v40 = vld [vmem:[%s8092_s1 + $0x430] sm:$0xf0]  ;;  %v4179_v41 = vor.u32 %v5264_v31, %v4176_v32  ;;  %v5219_v24 = vld [vmem:[%s8092_s1 + $0x3d4] sm:$0xf0] }
  0x4c   :  { %1399 = vmatpush.bf16.msrb.mxu2 %v4259_v38  ;;  %1362 = vmatpush.bf16.msra.mxu0 %v3843_v53  ;;  %v5196_v37 = vld [vmem:[%s8092_s1 + $0x324] sm:$0xf]  ;;  %v3904_v38 = vld [vmem:[%s8092_s1 + $0x330] sm:$0xf0]  ;;  %v3779_v44 = vor.u32 %v5164_v33, %v3776_v36  ;;  %v3590_v26 = vld [vmem:[%s8092_s1 + $0xa8] sm:$0xf] }
  0x4d   :  { %1375 = vmatpush.bf16.msra.mxu1 %v3971_v54  ;;  %v5228_v39 = vld [vmem:[%s8092_s1 + $0x424] sm:$0xf]  ;;  %v4160_v43 = vld [vmem:[%s8092_s1 + $0x530] sm:$0xf0]  ;;  %v3907_v46 = vor.u32 %v5196_v37, %v3904_v38 }
  0x4e   :  { %v5260_v42 = vld [vmem:[%s8092_s1 + $0x524] sm:$0xf]  ;;  %v3760_v48 = vld [vmem:[%s8092_s1 + $0x210] sm:$0xf0]  ;;  %v4035_v50 = vor.u32 %v5228_v39, %v4032_v40 }
  0x4f   :  { %1388 = vmatpush.bf16.msra.mxu3 %v4099_v60  ;;  %v5160_v47 = vld [vmem:[%s8092_s1 + $0x204] sm:$0xf]  ;;  %v4016_v54 = vld [vmem:[%s8092_s1 + $0x410] sm:$0xf0]  ;;  %v4163_v60 = vor.u32 %v5260_v42, %v4160_v43 }
  0x50   :  { %1400 = vmatpush.bf16.msrb.mxu2 %v4243_v52  ;;  %1363 = vmatpush.bf16.msra.mxu0 %v3827_v3  ;;  %v5192_v49 = vld [vmem:[%s8092_s1 + $0x304] sm:$0xf]  ;;  %v3888_v52 = vld [vmem:[%s8092_s1 + $0x310] sm:$0xf0]  ;;  %v3763_v0 = vor.u32 %v5160_v47, %v3760_v48 }
  0x51   :  { %1376 = vmatpush.bf16.msra.mxu1 %v3955_v4  ;;  %v5224_v53 = vld [vmem:[%s8092_s1 + $0x404] sm:$0xf]  ;;  %v4272_v63 = vld [vmem:[%s8092_s1 + $0x610] sm:$0xf0]  ;;  %v3891_v1 = vor.u32 %v5192_v49, %v3888_v52  ;;  %v3878_v4 = vld [vmem:[%s8092_s1 + $0x2e8] sm:$0xf] }
  0x52   :  { %v5288_v62 = vld [vmem:[%s8092_s1 + $0x604] sm:$0xf]  ;;  %v4144_v3 = vld [vmem:[%s8092_s1 + $0x510] sm:$0xf0]  ;;  %v4019_v5 = vor.u32 %v5224_v53, %v4016_v54  ;;  %v3879_v18 = vor.u32 %v5191_v8, %v3878_v4 }
  0x53   :  { %1389 = vmatpush.bf16.msra.mxu3 %v4083_v9  ;;  %v4006_v9 = vld [vmem:[%s8092_s1 + $0x3e8] sm:$0xf]  ;;  %v4275_v12 = vor.u32 %v5288_v62, %v4272_v63 }
  0x54   :  { %1401 = vmatpush.bf16.msrb.mxu2 %v4227_v2  ;;  %1364 = vmatpush.bf16.msra.mxu0 %v3811_v16  ;;  %v5256_v2 = vld [vmem:[%s8092_s1 + $0x504] sm:$0xf]  ;;  %v3734_v16 = vld [vmem:[%s8092_s1 + $0x1c8] sm:$0xf]  ;;  %v4007_v19 = vor.u32 %v5223_v10, %v4006_v9 }
  0x55   :  { %1377 = vmatpush.bf16.msra.mxu1 %v3939_v17  ;;  %v5155_v17 = vld [vmem:[%s8092_s1 + $0x1d4] sm:$0xf0] }
  0x56   :  { %v3735_v25 = vor.u32 %v5155_v17, %v3734_v16 }
  0x57   :  { %1390 = vmatpush.bf16.msra.mxu3 %v4067_v21  ;;  %v3607_v21 = vor.u32 %v5123_v14, %v3606_v13 }
  0x58   :  { %1402 = vmatpush.bf16.msrb.mxu2 %v4211_v15  ;;  %1365 = vmatpush.bf16.msra.mxu0 %v3795_v28  ;;  %v4147_v15 = vor.u32 %v5256_v2, %v4144_v3  ;;  %v3718_v28 = vld [vmem:[%s8092_s1 + $0x1a8] sm:$0xf] }
  0x59   :  { %1378 = vmatpush.bf16.msra.mxu1 %v3923_v29  ;;  %v5151_v29 = vld [vmem:[%s8092_s1 + $0x1b4] sm:$0xf0] }
  0x5b   :  { %1391 = vmatpush.bf16.msra.mxu3 %v4051_v34 }
  0x5c   :  { %1403 = vmatpush.bf16.msrb.mxu2 %v4195_v27  ;;  %1366 = vmatpush.bf16.msra.mxu0 %v3779_v44  ;;  %v5119_v27 = vld [vmem:[%s8092_s1 + $0xb4] sm:$0xf0] }
  0x5d   :  { %1379 = vmatpush.bf16.msra.mxu1 %v3907_v46 }
  0x5f   :  { %1392 = vmatpush.bf16.msra.mxu3 %v4035_v50 }
  0x60   :  { %1404 = vmatpush.bf16.msrb.mxu2 %v4179_v41  ;;  %1367 = vmatpush.bf16.msra.mxu0 %v3763_v0 }
  0x61   :  { %1380 = vmatpush.bf16.msra.mxu1 %v3891_v1 }
  0x63   :  { %1393 = vmatpush.bf16.msra.mxu3 %v4019_v5  ;;  %1368 = vmatmul.bf16.vlgmr.msra.gmra.mxu0 %v5860_v51 }
  0x64   :  { %1405 = vmatpush.bf16.msrb.mxu2 %v4163_v60  ;;  %1419 = vmatpush.bf16.msrb.mxu0 %v4275_v12 }
  0x65   :  { %1425 = vmatpush.bf16.msrb.mxu1 %v3623_v6 }
  0x67   :  { %1438 = vmatpush.bf16.msrb.mxu3 %v3751_v11 }
  0x68   :  { %1406 = vmatpush.bf16.msrb.mxu2 %v4147_v15 }
  0x69   :  { %17 = vsyncpa [#allocation3], 0  ;;  %1451 = vmatpush.bf16.msra.mxu0 %v3879_v18  ;;  %v3863_v31 = vor.u32 %v5187_v22, %v3862_v20  ;;  %v3991_v32 = vor.u32 %v5219_v24, %v3990_v23  ;;  %v3846_v33 = vld [vmem:[%s8092_s1 + $0x2a8] sm:$0xf]  ;;  %1426 = vmatpush.bf16.msrb.mxu1 %v3607_v21  ;;  %v3591_v34 = vor.u32 %v5119_v27, %v3590_v26  ;;  %v5183_v36 = vld [vmem:[%s8092_s1 + $0x2b4] sm:$0xf0] }
  0x6a   :  { %1394 = vmatmul.bf16.vlgmr.msra.gmra.mxu3 %v6074_v30  ;;  %v3974_v37 = vld [vmem:[%s8092_s1 + $0x3a8] sm:$0xf]  ;;  %v5215_v38 = vld [vmem:[%s8092_s1 + $0x3b4] sm:$0xf0]  ;;  %v3719_v39 = vor.u32 %v5151_v29, %v3718_v28  ;;  %1381 = vmatmul.bf16.vlgmr.msra.gmra.mxu1 %v5873_v57  ;;  %v3847_v44 = vor.u32 %v5183_v36, %v3846_v33  ;;  %vm3478_vm1 = vcmask 31744  }
  0x6b   :  { %1439 = vmatpush.bf16.msrb.mxu3 %v3735_v25  ;;  %1407 = vmatmul.bf16.vlgmr.msrb.gmra.mxu2 %v6085_v35  ;;  %v3574_v40 = vld [vmem:[%s8092_s1 + $0x88] sm:$0xf]  ;;  %v5115_v41 = vld [vmem:[%s8092_s1 + $0x94] sm:$0xf0]  ;;  %v3975_v46 = vor.u32 %v5215_v38, %v3974_v37 }
  0x6c   :  { %1464 = vmatpush.bf16.msra.mxu2 %v4007_v19  ;;  %v3702_v42 = vld [vmem:[%s8092_s1 + $0x188] sm:$0xf]  ;;  %v5147_v43 = vld [vmem:[%s8092_s1 + $0x194] sm:$0xf0]  ;;  %v3575_v48 = vor.u32 %v5115_v41, %v3574_v40 }
  0x6d   :  { %1452 = vmatpush.bf16.msra.mxu0 %v3863_v31  ;;  %v3830_v47 = vld [vmem:[%s8092_s1 + $0x288] sm:$0xf]  ;;  %1427 = vmatpush.bf16.msrb.mxu1 %v3591_v34  ;;  %v5179_v49 = vld [vmem:[%s8092_s1 + $0x294] sm:$0xf0]  ;;  %v3703_v53 = vor.u32 %v5147_v43, %v3702_v42 }
  0x6e   :  { %v3958_v50 = vld [vmem:[%s8092_s1 + $0x388] sm:$0xf]  ;;  %v5211_v52 = vld [vmem:[%s8092_s1 + $0x394] sm:$0xf0]  ;;  %v3831_v60 = vor.u32 %v5179_v49, %v3830_v47  ;;  %v5125_v47 = vld [vmem:[%s8092_s1 + $0xec] sm:$0xf] }
  0x6f   :  { %1440 = vmatpush.bf16.msrb.mxu3 %v3719_v39  ;;  %v3558_v54 = vld [vmem:[%s8092_s1 + $0x68] sm:$0xf]  ;;  %v5111_v56 = vld [vmem:[%s8092_s1 + $0x74] sm:$0xf0]  ;;  %v3959_v61 = vor.u32 %v5211_v52, %v3958_v50  ;;  %v3624_v50 = vld [vmem:[%s8092_s1 + $0xf8] sm:$0xf0] }
  0x70   :  { %1465 = vmatpush.bf16.msra.mxu2 %v3991_v32  ;;  %v3686_v58 = vld [vmem:[%s8092_s1 + $0x168] sm:$0xf]  ;;  %v5143_v59 = vld [vmem:[%s8092_s1 + $0x174] sm:$0xf0]  ;;  %v3559_v63 = vor.u32 %v5111_v56, %v3558_v54 }
  0x71   :  { %1453 = vmatpush.bf16.msra.mxu0 %v3847_v44  ;;  %v3814_v62 = vld [vmem:[%s8092_s1 + $0x268] sm:$0xf]  ;;  %1428 = vmatpush.bf16.msrb.mxu1 %v3575_v48  ;;  %v5175_v0 = vld [vmem:[%s8092_s1 + $0x274] sm:$0xf0]  ;;  %v3687_v3 = vor.u32 %v5143_v59, %v3686_v58 }
  0x72   :  { %v3942_v1 = vld [vmem:[%s8092_s1 + $0x368] sm:$0xf]  ;;  %v5207_v2 = vld [vmem:[%s8092_s1 + $0x374] sm:$0xf0]  ;;  %v3815_v9 = vor.u32 %v5175_v0, %v3814_v62 }
  0x73   :  { %1441 = vmatpush.bf16.msrb.mxu3 %v3703_v53  ;;  %v3542_v4 = vld [vmem:[%s8092_s1 + $0x48] sm:$0xf]  ;;  %v5107_v5 = vld [vmem:[%s8092_s1 + $0x54] sm:$0xf0]  ;;  %v3943_v10 = vor.u32 %v5207_v2, %v3942_v1  ;;  %4285 = vmatmul.msk.bf16.vlgmr.msrb.gmra.mxu0 %vm1239_vm0, %v5983_v45  ;;  %v5157_v1 = vld [vmem:[%s8092_s1 + $0x1ec] sm:$0xf] }
  0x74   :  { %1466 = vmatpush.bf16.msra.mxu2 %v3975_v46  ;;  %v3670_v6 = vld [vmem:[%s8092_s1 + $0x148] sm:$0xf]  ;;  %v5139_v8 = vld [vmem:[%s8092_s1 + $0x154] sm:$0xf0]  ;;  %v3543_v12 = vor.u32 %v5107_v5, %v3542_v4  ;;  %v3752_v2 = vld [vmem:[%s8092_s1 + $0x1f8] sm:$0xf0] }
  0x75   :  { %1454 = vmatpush.bf16.msra.mxu0 %v3831_v60  ;;  %v3798_v11 = vld [vmem:[%s8092_s1 + $0x248] sm:$0xf]  ;;  %1429 = vmatpush.bf16.msrb.mxu1 %v3559_v63  ;;  %v5171_v13 = vld [vmem:[%s8092_s1 + $0x254] sm:$0xf0]  ;;  %v3671_v16 = vor.u32 %v5139_v8, %v3670_v6  ;;  %v3627_v63 = vor.u32 %v5125_v47, %v3624_v50  ;;  %v5121_v4 = vld [vmem:[%s8092_s1 + $0xcc] sm:$0xf] }
  0x76   :  { %v3926_v14 = vld [vmem:[%s8092_s1 + $0x348] sm:$0xf]  ;;  %v5203_v15 = vld [vmem:[%s8092_s1 + $0x354] sm:$0xf0]  ;;  %v3799_v21 = vor.u32 %v5171_v13, %v3798_v11  ;;  %v3608_v5 = vld [vmem:[%s8092_s1 + $0xd8] sm:$0xf0] }
  0x77   :  { %1442 = vmatpush.bf16.msrb.mxu3 %v3687_v3  ;;  %v3526_v17 = vld [vmem:[%s8092_s1 + $0x28] sm:$0xf]  ;;  %v5103_v18 = vld [vmem:[%s8092_s1 + $0x34] sm:$0xf0]  ;;  %v3927_v22 = vor.u32 %v5203_v15, %v3926_v14  ;;  %v3611_v13 = vor.u32 %v5121_v4, %v3608_v5  ;;  %v5153_v14 = vld [vmem:[%s8092_s1 + $0x1cc] sm:$0xf] }
  0x78   :  { %1467 = vmatpush.bf16.msra.mxu2 %v3959_v61  ;;  %v3654_v19 = vld [vmem:[%s8092_s1 + $0x128] sm:$0xf]  ;;  %v5135_v20 = vld [vmem:[%s8092_s1 + $0x134] sm:$0xf0]  ;;  %v3527_v25 = vor.u32 %v5103_v18, %v3526_v17  ;;  %v3736_v15 = vld [vmem:[%s8092_s1 + $0x1d8] sm:$0xf0] }
  0x79   :  { %1455 = vmatpush.bf16.msra.mxu0 %v3815_v9  ;;  %v3782_v23 = vld [vmem:[%s8092_s1 + $0x228] sm:$0xf]  ;;  %v5167_v24 = vld [vmem:[%s8092_s1 + $0x234] sm:$0xf0]  ;;  %1430 = vmatpush.bf16.msrb.mxu1 %v3543_v12  ;;  %v3655_v29 = vor.u32 %v5135_v20, %v3654_v19  ;;  %v5117_v17 = vld [vmem:[%s8092_s1 + $0xac] sm:$0xf] }
  0x7a   :  { %v3910_v26 = vld [vmem:[%s8092_s1 + $0x328] sm:$0xf]  ;;  %v5199_v27 = vld [vmem:[%s8092_s1 + $0x334] sm:$0xf0]  ;;  %v3783_v38 = vor.u32 %v5167_v24, %v3782_v23  ;;  %v3592_v18 = vld [vmem:[%s8092_s1 + $0xb8] sm:$0xf0] }
  0x7b   :  { %v3510_v28 = vld [vmem:[%s8092_s1 + $0x8] sm:$0xf]  ;;  %1443 = vmatpush.bf16.msrb.mxu3 %v3671_v16  ;;  %v5099_v31 = vld [vmem:[%s8092_s1 + $0x14] sm:$0xf0]  ;;  %v3911_v39 = vor.u32 %v5199_v27, %v3910_v26  ;;  %v5149_v26 = vld [vmem:[%s8092_s1 + $0x1ac] sm:$0xf] }
  0x7c   :  { %1468 = vmatpush.bf16.msra.mxu2 %v3943_v10  ;;  %v3638_v32 = vld [vmem:[%s8092_s1 + $0x108] sm:$0xf]  ;;  %v5131_v33 = vld [vmem:[%s8092_s1 + $0x114] sm:$0xf0]  ;;  %v3511_v43 = vor.u32 %v5099_v31, %v3510_v28  ;;  %v3755_v10 = vor.u32 %v5157_v1, %v3752_v2  ;;  %v3720_v27 = vld [vmem:[%s8092_s1 + $0x1b8] sm:$0xf0] }
  0x7d   :  { %v4134_v34 = vld [vmem:[%s8092_s1 + $0x4e8] sm:$0xf]  ;;  %v5255_v36 = vld [vmem:[%s8092_s1 + $0x4f4] sm:$0xf0]  ;;  %1456 = vmatpush.bf16.msra.mxu0 %v3799_v21  ;;  %1431 = vmatpush.bf16.msrb.mxu1 %v3527_v25  ;;  %v3639_v48 = vor.u32 %v5131_v33, %v3638_v32  ;;  %v3595_v25 = vor.u32 %v5117_v17, %v3592_v18  ;;  %v3576_v31 = vld [vmem:[%s8092_s1 + $0x98] sm:$0xf0] }
  0x7e   :  { %v4262_v37 = vld [vmem:[%s8092_s1 + $0x5e8] sm:$0xf]  ;;  %v5287_v40 = vld [vmem:[%s8092_s1 + $0x5f4] sm:$0xf0]  ;;  %v4135_v49 = vor.u32 %v5255_v36, %v4134_v34  ;;  %v3723_v36 = vor.u32 %v5149_v26, %v3720_v27  ;;  %v5137_v4 = vld [vmem:[%s8092_s1 + $0x14c] sm:$0xf] }
  0x7f   :  { %v3766_v41 = vld [vmem:[%s8092_s1 + $0x208] sm:$0xf]  ;;  %v5163_v42 = vld [vmem:[%s8092_s1 + $0x214] sm:$0xf0]  ;;  %1444 = vmatpush.bf16.msrb.mxu3 %v3655_v29  ;;  %v4263_v54 = vor.u32 %v5287_v40, %v4262_v37  ;;  %v5113_v29 = vld [vmem:[%s8092_s1 + $0x8c] sm:$0xf] }
  0x80   :  { %1469 = vmatpush.bf16.msra.mxu2 %v3927_v22  ;;  %v3894_v44 = vld [vmem:[%s8092_s1 + $0x308] sm:$0xf]  ;;  %v5195_v46 = vld [vmem:[%s8092_s1 + $0x314] sm:$0xf0]  ;;  %v3767_v59 = vor.u32 %v5163_v42, %v3766_v41  ;;  %v3739_v22 = vor.u32 %v5153_v14, %v3736_v15  ;;  %v5145_v40 = vld [vmem:[%s8092_s1 + $0x18c] sm:$0xf] }
  0x81   :  { %v4278_v52 = vld [vmem:[%s8092_s1 + $0x608] sm:$0xf]  ;;  %v5291_v53 = vld [vmem:[%s8092_s1 + $0x614] sm:$0xf0]  ;;  %1457 = vmatpush.bf16.msra.mxu0 %v3783_v38  ;;  %v3895_v60 = vor.u32 %v5195_v46, %v3894_v44  ;;  %1432 = vmatpush.bf16.msrb.mxu1 %v3511_v43  ;;  %v3704_v41 = vld [vmem:[%s8092_s1 + $0x198] sm:$0xf0] }
  0x82   :  { %v4118_v56 = vld [vmem:[%s8092_s1 + $0x4c8] sm:$0xf]  ;;  %v5251_v58 = vld [vmem:[%s8092_s1 + $0x4d4] sm:$0xf0]  ;;  %v4279_v0 = vor.u32 %v5291_v53, %v4278_v52  ;;  %v5109_v43 = vld [vmem:[%s8092_s1 + $0x6c] sm:$0xf] }
  0x83   :  { %v4246_v61 = vld [vmem:[%s8092_s1 + $0x5c8] sm:$0xf]  ;;  %v5283_v62 = vld [vmem:[%s8092_s1 + $0x5d4] sm:$0xf0]  ;;  %1445 = vmatpush.bf16.msrb.mxu3 %v3639_v48  ;;  %v4119_v3 = vor.u32 %v5251_v58, %v4118_v56  ;;  %v3560_v44 = vld [vmem:[%s8092_s1 + $0x78] sm:$0xf0] }
  0x84   :  { %1470 = vmatpush.bf16.msra.mxu2 %v3911_v39  ;;  %v4247_v6 = vor.u32 %v5283_v62, %v4246_v61  ;;  %v4102_v8 = vld [vmem:[%s8092_s1 + $0x4a8] sm:$0xf]  ;;  %v5247_v9 = vld [vmem:[%s8092_s1 + $0x4b4] sm:$0xf0]  ;;  %1433 = vmatmul.bf16.vlgmr.msrb.gmra.mxu1 %v5871_v55  ;;  %v3579_v39 = vor.u32 %v5113_v29, %v3576_v31  ;;  %v3563_v53 = vor.u32 %v5109_v43, %v3560_v44  ;;  %v3688_v56 = vld [vmem:[%s8092_s1 + $0x178] sm:$0xf0] }
  0x85   :  { %1477 = vmatpush.bf16.msra.mxu1 %v4135_v49  ;;  %1458 = vmatpush.bf16.msra.mxu0 %v3767_v59  ;;  %v4230_v11 = vld [vmem:[%s8092_s1 + $0x5a8] sm:$0xf]  ;;  %v5279_v12 = vld [vmem:[%s8092_s1 + $0x5b4] sm:$0xf0]  ;;  %v4103_v16 = vor.u32 %v5247_v9, %v4102_v8  ;;  %v3707_v49 = vor.u32 %v5145_v40, %v3704_v41  ;;  %v5105_v59 = vld [vmem:[%s8092_s1 + $0x4c] sm:$0xf] }
  0x86   :  { %1446 = vmatmul.bf16.vlgmr.msrb.gmra.mxu3 %v5904_v7  ;;  %v4231_v19 = vor.u32 %v5279_v12, %v4230_v11  ;;  %v4086_v20 = vld [vmem:[%s8092_s1 + $0x488] sm:$0xf]  ;;  %v5243_v21 = vld [vmem:[%s8092_s1 + $0x494] sm:$0xf0]  ;;  %v3672_v5 = vld [vmem:[%s8092_s1 + $0x158] sm:$0xf0] }
  0x87   :  { %1490 = vmatpush.bf16.msra.mxu3 %v4263_v54  ;;  %v4214_v23 = vld [vmem:[%s8092_s1 + $0x588] sm:$0xf]  ;;  %v5275_v24 = vld [vmem:[%s8092_s1 + $0x594] sm:$0xf0]  ;;  %v4087_v28 = vor.u32 %v5243_v21, %v4086_v20  ;;  %v5141_v54 = vld [vmem:[%s8092_s1 + $0x16c] sm:$0xf]  ;;  %v3675_v15 = vor.u32 %v5137_v4, %v3672_v5 }
  0x88   :  { %1471 = vmatpush.bf16.msra.mxu2 %v3895_v60  ;;  %1459 = vmatmul.bf16.vlgmr.msra.gmra.mxu0 %v5860_v51  ;;  %v4215_v32 = vor.u32 %v5275_v24, %v4214_v23  ;;  %v4070_v33 = vld [vmem:[%s8092_s1 + $0x468] sm:$0xf]  ;;  %v5239_v34 = vld [vmem:[%s8092_s1 + $0x474] sm:$0xf0]  ;;  %v3544_v60 = vld [vmem:[%s8092_s1 + $0x58] sm:$0xf0] }
  0x89   :  { %1510 = vmatpush.bf16.msrb.mxu0 %v4279_v0  ;;  %1478 = vmatpush.bf16.msra.mxu1 %v4119_v3  ;;  %v4198_v37 = vld [vmem:[%s8092_s1 + $0x568] sm:$0xf]  ;;  %v5271_v38 = vld [vmem:[%s8092_s1 + $0x574] sm:$0xf0]  ;;  %v4071_v42 = vor.u32 %v5239_v34, %v4070_v33  ;;  %v3691_v0 = vor.u32 %v5141_v54, %v3688_v56  ;;  %v3547_v3 = vor.u32 %v5105_v59, %v3544_v60  ;;  %v5101_v8 = vld [vmem:[%s8092_s1 + $0x2c] sm:$0xf] }
  0x8a   :  { %v4199_v46 = vor.u32 %v5271_v38, %v4198_v37  ;;  %v4054_v47 = vld [vmem:[%s8092_s1 + $0x448] sm:$0xf]  ;;  %v5235_v48 = vld [vmem:[%s8092_s1 + $0x454] sm:$0xf0]  ;;  %v3528_v9 = vld [vmem:[%s8092_s1 + $0x38] sm:$0xf0] }
  0x8b   :  { %1491 = vmatpush.bf16.msra.mxu3 %v4247_v6  ;;  %1472 = vmatmul.bf16.vlgmr.msra.gmra.mxu2 %v5873_v57  ;;  %v4182_v50 = vld [vmem:[%s8092_s1 + $0x548] sm:$0xf]  ;;  %v5267_v52 = vld [vmem:[%s8092_s1 + $0x554] sm:$0xf0]  ;;  %v4055_v58 = vor.u32 %v5235_v48, %v4054_v47  ;;  %v3880_v17 = vld [vmem:[%s8092_s1 + $0x2f8] sm:$0xf0] }
  0x8c   :  { %1516 = vmatpush.bf16.msrb.mxu2 %v3627_v63  ;;  %v4183_v61 = vor.u32 %v5267_v52, %v4182_v50  ;;  %v4038_v62 = vld [vmem:[%s8092_s1 + $0x428] sm:$0xf]  ;;  %v5231_v63 = vld [vmem:[%s8092_s1 + $0x434] sm:$0xf0]  ;;  %v5221_v18 = vld [vmem:[%s8092_s1 + $0x3ec] sm:$0xf] }
  0x8d   :  { %1529 = vmatpush.bf16.msra.mxu0 %v3755_v10  ;;  %1479 = vmatpush.bf16.msra.mxu1 %v4103_v16  ;;  %v4166_v1 = vld [vmem:[%s8092_s1 + $0x528] sm:$0xf]  ;;  %v5263_v2 = vld [vmem:[%s8092_s1 + $0x534] sm:$0xf0]  ;;  %v4039_v6 = vor.u32 %v5231_v63, %v4038_v62  ;;  %v5189_v16 = vld [vmem:[%s8092_s1 + $0x2ec] sm:$0xf] }
  0x8e   :  { %v4022_v10 = vld [vmem:[%s8092_s1 + $0x408] sm:$0xf]  ;;  %v4167_v11 = vor.u32 %v5263_v2, %v4166_v1  ;;  %v5227_v12 = vld [vmem:[%s8092_s1 + $0x414] sm:$0xf0]  ;;  %v4008_v20 = vld [vmem:[%s8092_s1 + $0x3f8] sm:$0xf0]  ;;  %v3883_v27 = vor.u32 %v5189_v16, %v3880_v17 }
  0x8f   :  { %1492 = vmatpush.bf16.msra.mxu3 %v4231_v19  ;;  %v5259_v14 = vld [vmem:[%s8092_s1 + $0x514] sm:$0xf0]  ;;  %v3531_v19 = vor.u32 %v5101_v8, %v3528_v9  ;;  %v5133_v21 = vld [vmem:[%s8092_s1 + $0x12c] sm:$0xf]  ;;  %v4023_v23 = vor.u32 %v5227_v12, %v4022_v10  ;;  %v4136_v29 = vld [vmem:[%s8092_s1 + $0x4f8] sm:$0xf0]  ;;  %v4011_v31 = vor.u32 %v5221_v18, %v4008_v20 }
  0x90   :  { %1517 = vmatpush.bf16.msrb.mxu2 %v3611_v13  ;;  %v4150_v13 = vld [vmem:[%s8092_s1 + $0x508] sm:$0xf]  ;;  %v5097_v24 = vld [vmem:[%s8092_s1 + $0xc] sm:$0xf]  ;;  %v3864_v34 = vld [vmem:[%s8092_s1 + $0x2d8] sm:$0xf0] }
  0x91   :  { %1530 = vmatpush.bf16.msra.mxu0 %v3739_v22  ;;  %1480 = vmatpush.bf16.msra.mxu1 %v4087_v28  ;;  %v3656_v22 = vld [vmem:[%s8092_s1 + $0x138] sm:$0xf0]  ;;  %v4151_v26 = vor.u32 %v5259_v14, %v4150_v13  ;;  %v5253_v28 = vld [vmem:[%s8092_s1 + $0x4ec] sm:$0xf] }
  0x92   :  { %v5185_v33 = vld [vmem:[%s8092_s1 + $0x2cc] sm:$0xf]  ;;  %v3992_v38 = vld [vmem:[%s8092_s1 + $0x3d8] sm:$0xf0]  ;;  %v4139_v41 = vor.u32 %v5253_v28, %v4136_v29 }
  0x93   :  { %1493 = vmatpush.bf16.msra.mxu3 %v4215_v32  ;;  %v3659_v32 = vor.u32 %v5133_v21, %v3656_v22  ;;  %v3640_v40 = vld [vmem:[%s8092_s1 + $0x118] sm:$0xf0]  ;;  %v3867_v44 = vor.u32 %v5185_v33, %v3864_v34  ;;  %v5181_v50 = vld [vmem:[%s8092_s1 + $0x2ac] sm:$0xf] }
  0x94   :  { %1518 = vmatpush.bf16.msrb.mxu2 %v3595_v25  ;;  %v3512_v25 = vld [vmem:[%s8092_s1 + $0x18] sm:$0xf0]  ;;  %v5213_v54 = vld [vmem:[%s8092_s1 + $0x3ac] sm:$0xf] }
  0x95   :  { %1531 = vmatpush.bf16.msra.mxu0 %v3723_v36  ;;  %1481 = vmatpush.bf16.msra.mxu1 %v4071_v42  ;;  %v5217_v36 = vld [vmem:[%s8092_s1 + $0x3cc] sm:$0xf]  ;;  %v3515_v37 = vor.u32 %v5097_v24, %v3512_v25  ;;  %v4264_v43 = vld [vmem:[%s8092_s1 + $0x5f8] sm:$0xf0] }
  0x96   :  { %v5285_v42 = vld [vmem:[%s8092_s1 + $0x5ec] sm:$0xf]  ;;  %v4120_v47 = vld [vmem:[%s8092_s1 + $0x4d8] sm:$0xf0]  ;;  %v3995_v48 = vor.u32 %v5217_v36, %v3992_v38 }
  0x97   :  { %1494 = vmatpush.bf16.msra.mxu3 %v4199_v46  ;;  %v5249_v46 = vld [vmem:[%s8092_s1 + $0x4cc] sm:$0xf]  ;;  %v3848_v52 = vld [vmem:[%s8092_s1 + $0x2b8] sm:$0xf0] }
  0x98   :  { %1519 = vmatpush.bf16.msrb.mxu2 %v3579_v39  ;;  %4286 = vmatmul.msk.bf16.vlgmr.msrb.gmra.mxu0 %vm1239_vm0, %v5983_v45  ;;  %v5129_v39 = vld [vmem:[%s8092_s1 + $0x10c] sm:$0xf]  ;;  %v3976_v56 = vld [vmem:[%s8092_s1 + $0x3b8] sm:$0xf0] }
  0x99   :  { %1532 = vmatpush.bf16.msra.mxu0 %v3707_v49  ;;  %1482 = vmatpush.bf16.msra.mxu1 %v4055_v58  ;;  %v3643_v49 = vor.u32 %v5129_v39, %v3640_v40  ;;  %v4123_v58 = vor.u32 %v5249_v46, %v4120_v47  ;;  %v5281_v59 = vld [vmem:[%s8092_s1 + $0x5cc] sm:$0xf]  ;;  %v4248_v60 = vld [vmem:[%s8092_s1 + $0x5d8] sm:$0xf0] }
  0x9a   :  { %v5245_v62 = vld [vmem:[%s8092_s1 + $0x4ac] sm:$0xf]  ;;  %v4104_v63 = vld [vmem:[%s8092_s1 + $0x4b8] sm:$0xf0] }
  0x9b   :  { %1495 = vmatpush.bf16.msra.mxu3 %v4183_v61  ;;  %v3851_v61 = vor.u32 %v5181_v50, %v3848_v52  ;;  %v5177_v1 = vld [vmem:[%s8092_s1 + $0x28c] sm:$0xf]  ;;  %v3832_v2 = vld [vmem:[%s8092_s1 + $0x298] sm:$0xf0] }
  0x9c   :  { %1520 = vmatpush.bf16.msrb.mxu2 %v3563_v53  ;;  %v4267_v53 = vor.u32 %v5285_v42, %v4264_v43  ;;  %v5209_v4 = vld [vmem:[%s8092_s1 + $0x38c] sm:$0xf]  ;;  %v3960_v5 = vld [vmem:[%s8092_s1 + $0x398] sm:$0xf0]  ;;  %v3835_v10 = vor.u32 %v5177_v1, %v3832_v2 }
  0x9d   :  { %1533 = vmatpush.bf16.msra.mxu0 %v3691_v0  ;;  %1483 = vmatpush.bf16.msra.mxu1 %v4039_v6  ;;  %v3979_v0 = vor.u32 %v5213_v54, %v3976_v56  ;;  %v4107_v6 = vor.u32 %v5245_v62, %v4104_v63  ;;  %v5277_v8 = vld [vmem:[%s8092_s1 + $0x5ac] sm:$0xf]  ;;  %v4232_v9 = vld [vmem:[%s8092_s1 + $0x5b8] sm:$0xf0]  ;;  %v3963_v12 = vor.u32 %v5209_v4, %v3960_v5 }
  0x9e   :  { %v5173_v13 = vld [vmem:[%s8092_s1 + $0x26c] sm:$0xf]  ;;  %v3816_v14 = vld [vmem:[%s8092_s1 + $0x278] sm:$0xf0] }
  0x9f   :  { %1496 = vmatpush.bf16.msra.mxu3 %v4167_v11  ;;  %v5241_v11 = vld [vmem:[%s8092_s1 + $0x48c] sm:$0xf]  ;;  %v4216_v20 = vld [vmem:[%s8092_s1 + $0x598] sm:$0xf0]  ;;  %v3819_v21 = vor.u32 %v5173_v13, %v3816_v14 }
  0xa0   :  { %1521 = vmatpush.bf16.msrb.mxu2 %v3547_v3  ;;  %v4251_v3 = vor.u32 %v5281_v59, %v4248_v60  ;;  %v5205_v16 = vld [vmem:[%s8092_s1 + $0x36c] sm:$0xf]  ;;  %v4200_v34 = vld [vmem:[%s8092_s1 + $0x578] sm:$0xf0] }
  0xa1   :  { %1534 = vmatpush.bf16.msra.mxu0 %v3675_v15  ;;  %1484 = vmatpush.bf16.msra.mxu1 %v4023_v23  ;;  %v4235_v15 = vor.u32 %v5277_v8, %v4232_v9  ;;  %v5237_v22 = vld [vmem:[%s8092_s1 + $0x46c] sm:$0xf]  ;;  %v4072_v23 = vld [vmem:[%s8092_s1 + $0x478] sm:$0xf0]  ;;  %v6781_v28 = vpop.f32.mrf.mxu1 }
  0xa2   :  { %v5169_v25 = vld [vmem:[%s8092_s1 + $0x24c] sm:$0xf]  ;;  %v4056_v39 = vld [vmem:[%s8092_s1 + $0x458] sm:$0xf0] }
  0xa3   :  { %1497 = vmatpush.bf16.msra.mxu3 %v4151_v26  ;;  %v3800_v26 = vld [vmem:[%s8092_s1 + $0x258] sm:$0xf0]  ;;  %v5201_v29 = vld [vmem:[%s8092_s1 + $0x34c] sm:$0xf] }
  0xa4   :  { %1522 = vmatpush.bf16.msrb.mxu2 %v3531_v19  ;;  %1485 = vmatmul.bf16.vlgmr.msra.gmra.mxu1 %v6074_v30  ;;  %v6761_v17 = vpop.f32.mrf.mxu0  ;;  %v5273_v19 = vld [vmem:[%s8092_s1 + $0x58c] sm:$0xf]  ;;  %v3784_v43 = vld [vmem:[%s8092_s1 + $0x238] sm:$0xf0] }
  0xa5   :  { %1542 = vmatpush.bf16.msrb.mxu1 %v3883_v27  ;;  %1535 = vmatpush.bf16.msra.mxu0 %v3659_v32  ;;  %v4219_v27 = vor.u32 %v5273_v19, %v4216_v20  ;;  %v4075_v32 = vor.u32 %v5237_v22, %v4072_v23  ;;  %v5269_v33 = vld [vmem:[%s8092_s1 + $0x56c] sm:$0xf]  ;;  %v3912_v47 = vld [vmem:[%s8092_s1 + $0x338] sm:$0xf0]  ;;  %v5298_v22 = vld [vmem:[%s8094_s3 + $0x30] sm:$0xff] }
  0xa6   :  { %1498 = vmatmul.bf16.vlgmr.msra.gmra.mxu3 %v6085_v35  ;;  %v5233_v38 = vld [vmem:[%s8092_s1 + $0x44c] sm:$0xf]  ;;  %v4184_v52 = vld [vmem:[%s8092_s1 + $0x558] sm:$0xf0] }
  0xa7   :  { %1555 = vmatpush.bf16.msrb.mxu3 %v4011_v31  ;;  %v3928_v31 = vld [vmem:[%s8092_s1 + $0x358] sm:$0xf0]  ;;  %v5165_v42 = vld [vmem:[%s8092_s1 + $0x22c] sm:$0xf] }
  0xa8   :  { %1523 = vmatpush.bf16.msrb.mxu2 %v3515_v37  ;;  %v3803_v37 = vor.u32 %v5169_v25, %v3800_v26  ;;  %v3931_v40 = vor.u32 %v5201_v29, %v3928_v31  ;;  %v5197_v46 = vld [vmem:[%s8092_s1 + $0x32c] sm:$0xf]  ;;  %v3787_v54 = vor.u32 %v5165_v42, %v3784_v43  ;;  %v4152_v19 = vld [vmem:[%s8092_s1 + $0x518] sm:$0xf0]  ;;  %v5304_v31 = vld [vmem:[%s8094_s3 + $0x60] sm:$0xff] }
  0xa9   :  { %1543 = vmatpush.bf16.msrb.mxu1 %v3867_v44  ;;  %1536 = vmatpush.bf16.msra.mxu0 %v3643_v49  ;;  %v6795_v36 = vpop.f32.mrf.mxu2  ;;  %v4203_v44 = vor.u32 %v5269_v33, %v4200_v34  ;;  %v4059_v49 = vor.u32 %v5233_v38, %v4056_v39  ;;  %v5265_v50 = vld [vmem:[%s8092_s1 + $0x54c] sm:$0xf]  ;;  %v3915_v59 = vor.u32 %v5197_v46, %v3912_v47  ;;  %v1267_v1 = vpop.f32.mrf.mxu1  ;;  %v5307_v20 = vld [vmem:[%s8094_s3 + $0x78] sm:$0xff]  ;;  %v5292_v46 = vld [vmem:[%s8094_s3] sm:$0xff] }
  0xaa   :  { %v5229_v56 = vld [vmem:[%s8092_s1 + $0x42c] sm:$0xf]  ;;  %v4187_v63 = vor.u32 %v5265_v50, %v4184_v52  ;;  %v5303_v34 = vld [vmem:[%s8094_s3 + $0x58] sm:$0xff] }
  0xab   :  { %1556 = vmatpush.bf16.msrb.mxu3 %v3995_v48  ;;  %1524 = vmatmul.bf16.vlgmr.msrb.gmra.mxu2 %v5871_v55  ;;  %v4088_v55 = vld [vmem:[%s8092_s1 + $0x498] sm:$0xf0]  ;;  %v5161_v60 = vld [vmem:[%s8092_s1 + $0x20c] sm:$0xf] }
  0xac   :  { %1568 = vmatpush.bf16.msra.mxu2 %v4139_v41  ;;  %1537 = vmatmul.bf16.vlgmr.msra.gmra.mxu0 %v5904_v7  ;;  %v3944_v7 = vld [vmem:[%s8092_s1 + $0x378] sm:$0xf0]  ;;  %v4091_v18 = vor.u32 %v5241_v11, %v4088_v55  ;;  %v6803_v41 = vpop.f32.mrf.mxu3  ;;  %v1254_v48 = vpop.f32.mrf.mxu0  ;;  %v5193_v62 = vld [vmem:[%s8092_s1 + $0x30c] sm:$0xf] }
  0xad   :  { %1581 = vmatpush.bf16.msrb.mxu0 %v4267_v53  ;;  %1544 = vmatpush.bf16.msrb.mxu1 %v3851_v61  ;;  %v3947_v24 = vor.u32 %v5205_v16, %v3944_v7  ;;  %v6826_v53 = vld [vmem:[%s8093_s2] sm:$0xf]  ;;  %v3768_v61 = vld [vmem:[%s8092_s1 + $0x218] sm:$0xf0]  ;;  %v5289_v2 = vld [vmem:[%s8092_s1 + $0x60c] sm:$0xf] }
  0xae   :  { %v5261_v5 = vld [vmem:[%s8092_s1 + $0x52c] sm:$0xf]  ;;  %v3771_v9 = vor.u32 %v5161_v60, %v3768_v61  ;;  %v4024_v11 = vld [vmem:[%s8092_s1 + $0x418] sm:$0xf0]  ;;  %v251_v55 = vperm.slane %v6826_v53, 0  ;;  %v252_v52 = vperm.slane %v6826_v53, 1 }
  0xaf   :  { %1557 = vmatpush.bf16.msrb.mxu3 %v3979_v0  ;;  %v3896_v0 = vld [vmem:[%s8092_s1 + $0x318] sm:$0xf0]  ;;  %v5297_v26 = vld [vmem:[%s8094_s3 + $0x28] sm:$0xff] }
  0xb0   :  { %1569 = vmatpush.bf16.msra.mxu2 %v4123_v58  ;;  %v4040_v58 = vld [vmem:[%s8092_s1 + $0x438] sm:$0xf0]  ;;  %v5293_v43 = vld [vmem:[%s8094_s3 + $0x8] sm:$0xff] }
  0xb1   :  { %1582 = vmatpush.bf16.msrb.mxu0 %v4251_v3  ;;  %1545 = vmatpush.bf16.msrb.mxu1 %v3835_v10  ;;  %v4280_v3 = vld [vmem:[%s8092_s1 + $0x618] sm:$0xf0]  ;;  %v4043_v4 = vor.u32 %v5229_v56, %v4040_v58  ;;  %v1280_v8 = vpop.f32.mrf.mxu2  ;;  %v5225_v10 = vld [vmem:[%s8092_s1 + $0x40c] sm:$0xf] }
  0xb2   :  { %v4283_v13 = vor.u32 %v5289_v2, %v4280_v3  ;;  %v4027_v7 = vor.u32 %v5225_v10, %v4024_v11  ;;  %v5315_v1 = vld [vmem:[%s8094_s3 + $0xb8] sm:$0xff]  ;;  %v5313_v8 = vld [vmem:[%s8094_s3 + $0xa8] sm:$0xff] }
  0xb3   :  { %1558 = vmatpush.bf16.msrb.mxu3 %v3963_v12  ;;  %v3899_v12 = vor.u32 %v5193_v62, %v3896_v0 }
  0xb4   :  { %1570 = vmatpush.bf16.msra.mxu2 %v4107_v6  ;;  %v4168_v6 = vld [vmem:[%s8092_s1 + $0x538] sm:$0xf0]  ;;  %v1293_v14 = vpop.f32.mrf.mxu3 }
  0xb5   :  { %1583 = vmatpush.bf16.msrb.mxu0 %v4235_v15  ;;  %1546 = vmatpush.bf16.msrb.mxu1 %v3819_v21  ;;  %v5299_v15 = vld [vmem:[%s8094_s3 + $0x38] sm:$0xff]  ;;  %v4171_v16 = vor.u32 %v5261_v5, %v4168_v6  ;;  %v1253_v21 = vadd.f32 %v6761_v17, %v251_v55  ;;  %v5306_v17 = vld [vmem:[%s8094_s3 + $0x70] sm:$0xff] }
  0xb7   :  { %1559 = vmatpush.bf16.msrb.mxu3 %v3947_v24  ;;  %v1266_v25 = vadd.f32 %v6781_v28, %v1253_v21 }
  0xb8   :  { %1571 = vmatpush.bf16.msra.mxu2 %v4091_v18  ;;  %v5257_v18 = vld [vmem:[%s8092_s1 + $0x50c] sm:$0xf] }
  0xb9   :  { %1584 = vmatpush.bf16.msrb.mxu0 %v4219_v27  ;;  %1547 = vmatpush.bf16.msrb.mxu1 %v3803_v37  ;;  %v4155_v23 = vor.u32 %v5257_v18, %v4152_v19  ;;  %v1330_v24 = vpop.f32.mrf.mxu2  ;;  %v5296_v27 = vld [vmem:[%s8094_s3 + $0x20] sm:$0xff] }
  0xbb   :  { %1560 = vmatpush.bf16.msrb.mxu3 %v3931_v40 }
  0xbc   :  { %1572 = vmatpush.bf16.msra.mxu2 %v4075_v32 }
  0xbd   :  { %1585 = vmatpush.bf16.msrb.mxu0 %v4203_v44  ;;  %1548 = vmatpush.bf16.msrb.mxu1 %v3787_v54 }
  0xbf   :  { %1561 = vmatpush.bf16.msrb.mxu3 %v3915_v59 }
  0xc0   :  { %1573 = vmatpush.bf16.msra.mxu2 %v4059_v49  ;;  %v5300_v49 = vld [vmem:[%s8094_s3 + $0x40] sm:$0xff] }
  0xc1   :  { %1586 = vmatpush.bf16.msrb.mxu0 %v4187_v63  ;;  %1549 = vmatpush.bf16.msrb.mxu1 %v3771_v9  ;;  %v1332_v29 = vpop.f32.mrf.mxu2 }
  0xc3   :  { %1562 = vmatpush.bf16.msrb.mxu3 %v3899_v12  ;;  %v1317_v28 = vpop.f32.mrf.mxu1  ;;  %v5312_v12 = vld [vmem:[%s8094_s3 + $0xa0] sm:$0xff] }
  0xc4   :  { %1574 = vmatpush.bf16.msra.mxu2 %v4043_v4  ;;  %1550 = vmatmul.bf16.vlgmr.msrb.gmra.mxu1 %v5860_v51  ;;  %v5305_v51 = vld [vmem:[%s8094_s3 + $0x68] sm:$0xff]  ;;  %v5314_v4 = vld [vmem:[%s8094_s3 + $0xb0] sm:$0xff] }
  0xc5   :  { %1601 = vmatpush.bf16.msra.mxu1 %v4283_v13  ;;  %1587 = vmatpush.bf16.msrb.mxu0 %v4171_v16  ;;  %v5311_v16 = vld [vmem:[%s8094_s3 + $0x98] sm:$0xff] }
  0xc6   :  { %1563 = vmatmul.bf16.vlgmr.msrb.gmra.mxu3 %v5873_v57  ;;  %v1279_v57 = vadd.f32 %v6795_v36, %v1266_v25  ;;  %v5294_v36 = vld [vmem:[%s8094_s3 + $0x10] sm:$0xff] }
  0xc7   :  { %1822 = vmatpush.bf16.msra.mxu3 %v5299_v15 }
  0xc8   :  { %1575 = vmatpush.bf16.msra.mxu2 %v4027_v7  ;;  %v1292_v32 = vadd.f32 %v6803_v41, %v1279_v57  ;;  %v5302_v41 = vld [vmem:[%s8094_s3 + $0x50] sm:$0xff] }
  0xc9   :  { %1835 = vmatpush.bf16.msrb.mxu1 %v5307_v20  ;;  %1588 = vmatpush.bf16.msrb.mxu0 %v4155_v23  ;;  %v1343_v39 = vpop.f32.mrf.mxu3  ;;  %v5310_v7 = vld [vmem:[%s8094_s3 + $0x90] sm:$0xff]  ;;  %v5309_v20 = vld [vmem:[%s8094_s3 + $0x88] sm:$0xff] }
  0xca   :  { %v1344_v56 = vadd.f32 %v1343_v39, %v252_v52 }
  0xcb   :  { %1823 = vmatpush.bf16.msra.mxu3 %v5298_v22  ;;  %1576 = vmatmul.bf16.vlgmr.msra.gmra.mxu2 %v6074_v30  ;;  %v1304_v30 = vpop.f32.mrf.mxu0  ;;  %v1319_v40 = vpop.f32.mrf.mxu1  ;;  %v5308_v22 = vld [vmem:[%s8094_s3 + $0x80] sm:$0xff] }
  0xcc   :  { %1589 = vmatmul.bf16.vlgmr.msrb.gmra.mxu0 %v6085_v35  ;;  %v5295_v35 = vld [vmem:[%s8094_s3 + $0x18] sm:$0xff]  ;;  %v1305_v33 = vadd.f32 %v1304_v30, %v1292_v32  ;;  %1848 = vmatpush.bf16.msrb.mxu2 %v5315_v1 }
  0xcd   :  { %1836 = vmatpush.bf16.msrb.mxu1 %v5306_v17 }
  0xce   :  { %v1318_v37 = vadd.f32 %v1317_v28, %v1305_v33  ;;  %v1356_v42 = vpop.f32.mrf.mxu2 }
  0xcf   :  { %1824 = vmatpush.bf16.msra.mxu3 %v5297_v26  ;;  %v1357_v58 = vadd.f32 %v1356_v42, %v1344_v56  ;;  %v253_v26 = vperm.slane %v6826_v53, 2 }
  0xd0   :  { %v1331_v44 = vadd.f32 %v1330_v24, %v1318_v37  ;;  %1849 = vmatpush.bf16.msrb.mxu2 %v5314_v4 }
  0xd1   :  { %1837 = vmatpush.bf16.msrb.mxu1 %v5305_v51  ;;  %v1345_v48 = vpop.f32.mrf.mxu3 }
  0xd2   :  { %v1607_v47 = vmax.f32 %v1331_v44, 0.0  ;;  %v5316_v44 = vld [vmem:[%s8094_s3 + $0xc0] sm:$0xff] }
  0xd3   :  { %1825 = vmatpush.bf16.msra.mxu3 %v5296_v27  ;;  %v1306_v38 = vpop.f32.mrf.mxu0  ;;  %1868 = vmatpush.bf16.msra.mxu0 %v5316_v44 }
  0xd4   :  { %4287 = vmatmul.msk.bf16.vlgmr.msra.gmra.mxu1 %vm1239_vm0, %v5983_v45  ;;  %v5301_v45 = vld [vmem:[%s8094_s3 + $0x48] sm:$0xff]  ;;  %v1611_v54 = vpack.c.bf16 %v1607_v47, %v1607_v47  ;;  %1850 = vmatpush.bf16.msrb.mxu2 %v5313_v8  ;;  %v5499_v8 = vld [vmem:[%s8095_s4] ss:$0 sm:$0xff]  ;;  %s5556_s4 = smov 126  }
  0xd5   :  { %1838 = vmatpush.bf16.msrb.mxu1 %v5304_v31 }
  0xd6   :  { %v1358_v50 = vpop.f32.mrf.mxu2 }
  0xd7   :  { %1826 = vmatpush.bf16.msra.mxu3 %v5295_v35 }
  0xd8   :  { %1851 = vmatpush.bf16.msrb.mxu2 %v5312_v12 }
  0xd9   :  { %1839 = vmatpush.bf16.msrb.mxu1 %v5303_v34 }
  0xdb   :  { %1827 = vmatpush.bf16.msra.mxu3 %v5294_v36 }
  0xdc   :  { %1852 = vmatpush.bf16.msrb.mxu2 %v5311_v16 }
  0xdd   :  { %1840 = vmatpush.bf16.msrb.mxu1 %v5302_v41 }
  0xdf   :  { %1828 = vmatpush.bf16.msra.mxu3 %v5293_v43 }
  0xe0   :  { %v1369_v59 = vpop.f32.mrf.mxu0  ;;  %1853 = vmatpush.bf16.msrb.mxu2 %v5310_v7 }
  0xe1   :  { %1841 = vmatpush.bf16.msrb.mxu1 %v5301_v45  ;;  %v1370_v60 = vadd.f32 %v1369_v59, %v1357_v58 }
  0xe3   :  { %1829 = vmatpush.bf16.msra.mxu3 %v5292_v46  ;;  %v254_v46 = vperm.slane %v6826_v53, 3 }
  0xe4   :  { %1854 = vmatpush.bf16.msrb.mxu2 %v5309_v20 }
  0xe5   :  { %1842 = vmatpush.bf16.msrb.mxu1 %v5300_v49 }
  0xe6   :  { %1830 = vmatmul.bf16.vlgmr.msra.gmra.mxu3 %v1611_v54 }
  0xe7   :  { %v1382_v61 = vpop.f32.mrf.mxu1 }
  0xe8   :  { %v1383_v62 = vadd.f32 %v1382_v61, %v1370_v60  ;;  %v1371_v63 = vpop.f32.mrf.mxu0  ;;  %1855 = vmatpush.bf16.msrb.mxu2 %v5308_v22  ;;  %v5558_v22 = vmov 0  }
  0xe9   :  { %5496 = vset.pattern.permute.xlu0 %v5558_v22  ;;  %v4923_v22 = vld [vmem:[%s8098_s7 + $0x428] sm:$0xf] }
  0xed   :  { %v1395_v0 = vpop.f32.mrf.mxu3 }
  0xee   :  { %v1396_v2 = vadd.f32 %v1395_v0, %v1383_v62  ;;  %v1408_v3 = vpop.f32.mrf.mxu2 }
  0xef   :  { %v1384_v5 = vpop.f32.mrf.mxu1 }
  0xf0   :  { %v1409_v6 = vadd.f32 %v1408_v3, %v1396_v2  ;;  %v1421_v9 = vpop.f32.mrf.mxu0 }
  0xf2   :  { %v1422_v11 = vadd.f32 %v1421_v9, %v1409_v6 }
  0xf4   :  { %v1608_v13 = vmax.f32 %v1422_v11, 0.0 }
  0xf5   :  { %v1397_v10 = vpop.f32.mrf.mxu3 }
  0xf6   :  { %v1410_v55 = vpop.f32.mrf.mxu2  ;;  %v1612_v14 = vpack.c.bf16 %v1608_v13, %v1608_v13 }
  0xf8   :  { %1843 = vmatmul.bf16.vlgmr.msrb.gmra.mxu1 %v1612_v14  ;;  %v1423_v15 = vpop.f32.mrf.mxu0 }
 0x101   :  { %v1434_v19 = vpop.f32.mrf.mxu1 }
 0x102   :  { %v1435_v27 = vadd.f32 %v1434_v19, %v253_v26  ;;  %v5362_v26 = vld [vmem:[%s8098_s7 + $0x168] sm:$0xf0] }
 0x105   :  { %v1460_v18 = vpop.f32.mrf.mxu0 }
 0x109   :  { %v1447_v21 = vpop.f32.mrf.mxu3  ;;  %v1436_v17 = vpop.f32.mrf.mxu1 }
 0x10a   :  { %v1448_v30 = vadd.f32 %v1447_v21, %v1435_v27  ;;  %v5557_v21 = vmov 1   ;;  %v4559_v17 = vld [vmem:[%s8098_s7 + $0x150] sm:$0xf]  ;;  %v4531_v27 = vld [vmem:[%s8098_s7 + $0x118] sm:$0xf] }
 0x10b   :  { %5497 = vset.pattern.permute.xlu1 %v5557_v21 }
 0x10c   :  { %v1461_v29 = vadd.f32 %v1460_v18, %v1448_v30  ;;  %v5425_v30 = vld [vmem:[%s8098_s7 + $0x360] sm:$0xf0] }
 0x10d   :  { %v1462_v23 = vpop.f32.mrf.mxu0 }
 0x10e   :  { %v1473_v24 = vpop.f32.mrf.mxu2  ;;  %v4587_v23 = vld [vmem:[%s8098_s7 + $0x188] sm:$0xf] }
 0x10f   :  { %v1474_v32 = vadd.f32 %v1473_v24, %v1461_v29  ;;  %v5369_v24 = vld [vmem:[%s8098_s7 + $0x1a0] sm:$0xf0] }
 0x111   :  { %v1449_v25 = vpop.f32.mrf.mxu3 }
 0x112   :  { %v4588_v25 = vor.u32 %v5369_v24, %v4587_v23  ;;  %v5453_v23 = vld [vmem:[%s8098_s7 + $0x440] sm:$0xf0]  ;;  %v4419_v24 = vld [vmem:[%s8098_s7 + $0x38] sm:$0xf] }
 0x114   :  { %3072 = vmatpush.bf16.msrb.mxu3 %v4588_v25 }
 0x115   :  { %v1512_v51 = vpop.f32.mrf.mxu0 }
 0x116   :  { %v1475_v57 = vpop.f32.mrf.mxu2 }
 0x117   :  { %v4560_v57 = vor.u32 %v5362_v26, %v4559_v17  ;;  %v5327_v17 = vld [vmem:[%s8098_s7 + $0x50] sm:$0xf0] }
 0x119   :  { %3073 = vmatpush.bf16.msrb.mxu3 %v4560_v57  ;;  %v4924_v57 = vor.u32 %v5453_v23, %v4923_v22  ;;  %v4645_v22 = vld [vmem:[%s8098_s7 + $0x214] sm:$0xf0]  ;;  %v4839_v23 = vld [vmem:[%s8098_s7 + $0x380] sm:$0xf] }
 0x11d   :  { %v1514_v28 = vpop.f32.mrf.mxu0 }
 0x11e   :  { %v5355_v28 = vld [vmem:[%s8098_s7 + $0x130] sm:$0xf0] }
 0x121   :  { %v1486_v31 = vpop.f32.mrf.mxu1 }
 0x122   :  { %v1487_v35 = vadd.f32 %v1486_v31, %v1474_v32  ;;  %v4783_v31 = vld [vmem:[%s8098_s7 + $0x310] sm:$0xf]  ;;  %v5418_v32 = vld [vmem:[%s8098_s7 + $0x328] sm:$0xf0] }
 0x129   :  { %v1538_v33 = vpop.f32.mrf.mxu0  ;;  %v1499_v34 = vpop.f32.mrf.mxu3 }
 0x12a   :  { %v1500_v36 = vadd.f32 %v1499_v34, %v1487_v35  ;;  %v1488_v37 = vpop.f32.mrf.mxu1  ;;  %v4784_v35 = vor.u32 %v5418_v32, %v4783_v31  ;;  %v4532_v34 = vor.u32 %v5355_v28, %v4531_v27  ;;  %v5338_v27 = vld [vmem:[%s8098_s7 + $0xac] sm:$0xf]  ;;  %v4420_v28 = vor.u32 %v5327_v17, %v4419_v24  ;;  %v4895_v31 = vld [vmem:[%s8098_s7 + $0x3f0] sm:$0xf]  ;;  %v5432_v17 = vld [vmem:[%s8098_s7 + $0x398] sm:$0xf0] }
 0x12b   :  { %v5035_v37 = vld [vmem:[%s8098_s7 + $0x508] sm:$0xf]  ;;  %v5446_v32 = vld [vmem:[%s8098_s7 + $0x408] sm:$0xf0] }
 0x12c   :  { %v1513_v38 = vadd.f32 %v1512_v51, %v1500_v36  ;;  %v4811_v51 = vld [vmem:[%s8098_s7 + $0x348] sm:$0xf]  ;;  %v5411_v36 = vld [vmem:[%s8098_s7 + $0x2f0] sm:$0xf0]  ;;  %3074 = vmatpush.bf16.msrb.mxu3 %v4532_v34  ;;  %v1877_v34 = vld [vmem:[%s8100_s9] sm:$0xff] }
 0x12d   :  { %v4812_v29 = vor.u32 %v5425_v30, %v4811_v51  ;;  %v4643_v51 = vld [vmem:[%s8098_s7 + $0x1f8] sm:$0xf]  ;;  %v4477_v30 = vld [vmem:[%s8098_s7 + $0xc4] sm:$0xf0] }
 0x12e   :  { %v1525_v39 = vpop.f32.mrf.mxu2  ;;  %v1609_v40 = vmax.f32 %v1513_v38, 0.0  ;;  %v5481_v38 = vld [vmem:[%s8098_s7 + $0x520] sm:$0xf0] }
 0x12f   :  { %v1526_v47 = vadd.f32 %v1525_v39, %v254_v46  ;;  %3085 = vmatpush.bf16.msrb.mxu0 %v4812_v29  ;;  %v4503_v39 = vld [vmem:[%s8098_s7 + $0xe0] sm:$0xf]  ;;  %v5383_v29 = vld [vmem:[%s8098_s7 + $0x210] sm:$0xf0] }
 0x130   :  { %v1613_v41 = vpack.c.bf16 %v1609_v40, %v1609_v40  ;;  %v5348_v40 = vld [vmem:[%s8098_s7 + $0xf8] sm:$0xf0] }
 0x131   :  { %v1540_v42 = vpop.f32.mrf.mxu0  ;;  %v1501_v43 = vpop.f32.mrf.mxu3  ;;  %v1539_v49 = vadd.f32 %v1538_v33, %v1526_v47  ;;  %v4755_v33 = vld [vmem:[%s8098_s7 + $0x2d8] sm:$0xf]  ;;  %v5366_v47 = vld [vmem:[%s8098_s7 + $0x18c] sm:$0xf] }
 0x132   :  { %1856 = vmatmul.bf16.vlgmr.msrb.gmra.mxu2 %v1613_v41  ;;  %v5036_v41 = vor.u32 %v5481_v38, %v5035_v37  ;;  %v5063_v42 = vld [vmem:[%s8098_s7 + $0x540] sm:$0xf]  ;;  %v5488_v43 = vld [vmem:[%s8098_s7 + $0x558] sm:$0xf0]  ;;  %v4756_v44 = vor.u32 %v5411_v36, %v4755_v33  ;;  %v4480_v36 = vor.u32 %v5338_v27, %v4477_v30  ;;  %v5422_v37 = vld [vmem:[%s8098_s7 + $0x34c] sm:$0xf] }
 0x133   :  { %3086 = vmatpush.bf16.msrb.mxu0 %v4784_v35  ;;  %v5064_v46 = vor.u32 %v5488_v43, %v5063_v42  ;;  %v4391_v35 = vld [vmem:[%s8098_s7] sm:$0xf]  ;;  %v5320_v33 = vld [vmem:[%s8098_s7 + $0x18] sm:$0xf0]  ;;  %v4813_v38 = vld [vmem:[%s8098_s7 + $0x364] sm:$0xf0] }
 0x134   :  { %3098 = vmatpush.bf16.msra.mxu1 %v5036_v41  ;;  %v4392_v42 = vor.u32 %v5320_v33, %v4391_v35  ;;  %v4615_v43 = vld [vmem:[%s8098_s7 + $0x1c0] sm:$0xf]  ;;  %v5317_v27 = vld [vmem:[%s8098_s7 + $0x4] sm:$0xf] }
 0x135   :  { %3118 = vmatpush.bf16.msra.mxu2 %v5064_v46  ;;  %v5478_v46 = vld [vmem:[%s8098_s7 + $0x50c] sm:$0xf]  ;;  %v4393_v30 = vld [vmem:[%s8098_s7 + $0x1c] sm:$0xf0] }
 0x136   :  { %v1527_v45 = vpop.f32.mrf.mxu2  ;;  %v5065_v35 = vld [vmem:[%s8098_s7 + $0x55c] sm:$0xf0] }
 0x137   :  { %v4727_v45 = vld [vmem:[%s8098_s7 + $0x2a0] sm:$0xf]  ;;  %3087 = vmatpush.bf16.msrb.mxu0 %v4756_v44  ;;  %v5376_v44 = vld [vmem:[%s8098_s7 + $0x1d8] sm:$0xf0] }
 0x141   :  { %v1551_v48 = vpop.f32.mrf.mxu1 }
 0x142   :  { %v1552_v50 = vadd.f32 %v1551_v48, %v1539_v49  ;;  %v4589_v48 = vld [vmem:[%s8098_s7 + $0x1a4] sm:$0xf0]  ;;  %v4504_v49 = vor.u32 %v5348_v40, %v4503_v39  ;;  %v4644_v39 = vor.u32 %v5383_v29, %v4643_v51  ;;  %v4896_v40 = vor.u32 %v5446_v32, %v4895_v31  ;;  %v4617_v31 = vld [vmem:[%s8098_s7 + $0x1dc] sm:$0xf0]  ;;  %v5485_v32 = vld [vmem:[%s8098_s7 + $0x544] sm:$0xf] }
 0x143   :  { %v4840_v51 = vor.u32 %v5432_v17, %v4839_v23  ;;  %v4396_v29 = vor.u32 %v5317_v27, %v4393_v30  ;;  %v4595_v23 = vld [vmem:[%s8098_s7 + $0x190] sm:$0xf]  ;;  %v5426_v27 = vld [vmem:[%s8098_s7 + $0x368] sm:$0xf0] }
 0x144   :  { %3075 = vmatpush.bf16.msrb.mxu3 %v4504_v49  ;;  %v5043_v30 = vld [vmem:[%s8098_s7 + $0x510] sm:$0xf] }
 0x149   :  { %v1564_v52 = vpop.f32.mrf.mxu3  ;;  %v1590_v54 = vpop.f32.mrf.mxu0 }
 0x14a   :  { %v1565_v56 = vadd.f32 %v1564_v52, %v1552_v50  ;;  %v1553_v58 = vpop.f32.mrf.mxu1  ;;  %v5404_v50 = vld [vmem:[%s8098_s7 + $0x2b8] sm:$0xf0]  ;;  %v4592_v52 = vor.u32 %v5366_v47, %v4589_v48  ;;  %v5037_v47 = vld [vmem:[%s8098_s7 + $0x524] sm:$0xf0]  ;;  %v4816_v48 = vor.u32 %v5422_v37, %v4813_v38 }
 0x14b   :  { %v4475_v58 = vld [vmem:[%s8098_s7 + $0xa8] sm:$0xf] }
 0x14c   :  { %3124 = vmatpush.bf16.msrb.mxu2 %v4592_v52  ;;  %v4785_v52 = vld [vmem:[%s8098_s7 + $0x32c] sm:$0xf0]  ;;  %v4925_v37 = vld [vmem:[%s8098_s7 + $0x444] sm:$0xf0] }
 0x14e   :  { %v1577_v59 = vpop.f32.mrf.mxu2 }
 0x14f   :  { %v1578_v60 = vadd.f32 %v1577_v59, %v1565_v56  ;;  %v5474_v56 = vld [vmem:[%s8098_s7 + $0x4e8] sm:$0xf0]  ;;  %v5341_v59 = vld [vmem:[%s8098_s7 + $0xc0] sm:$0xf0] }
 0x151   :  { %v1566_v61 = vpop.f32.mrf.mxu3  ;;  %v1592_v62 = vpop.f32.mrf.mxu0  ;;  %v1591_v63 = vadd.f32 %v1590_v54, %v1578_v60  ;;  %v5007_v54 = vld [vmem:[%s8098_s7 + $0x4d0] sm:$0xf] }
 0x152   :  { %v1603_v0 = vpop.f32.mrf.mxu1  ;;  %v5008_v60 = vor.u32 %v5474_v56, %v5007_v54  ;;  %v5359_v61 = vld [vmem:[%s8098_s7 + $0x154] sm:$0xf]  ;;  %v4561_v62 = vld [vmem:[%s8098_s7 + $0x16c] sm:$0xf0]  ;;  %v4616_v54 = vor.u32 %v5376_v44, %v4615_v43  ;;  %v5040_v56 = vor.u32 %v5478_v46, %v5037_v47  ;;  %v4869_v43 = vld [vmem:[%s8098_s7 + $0x3d4] sm:$0xf0] }
 0x153   :  { %v1604_v1 = vadd.f32 %v1603_v0, %v1591_v63  ;;  %v4728_v63 = vor.u32 %v5404_v50, %v4727_v45  ;;  %v4699_v0 = vld [vmem:[%s8098_s7 + $0x268] sm:$0xf]  ;;  %v5415_v50 = vld [vmem:[%s8098_s7 + $0x314] sm:$0xf]  ;;  %v5429_v46 = vld [vmem:[%s8098_s7 + $0x384] sm:$0xf] }
 0x154   :  { %3099 = vmatpush.bf16.msra.mxu1 %v5008_v60  ;;  %v5408_v60 = vld [vmem:[%s8098_s7 + $0x2dc] sm:$0xf]  ;;  %v4841_v47 = vld [vmem:[%s8098_s7 + $0x39c] sm:$0xf0] }
 0x155   :  { %v1610_v3 = vmax.f32 %v1604_v1, 0.0  ;;  %v4564_v1 = vor.u32 %v5359_v61, %v4561_v62  ;;  %3088 = vmatpush.bf16.msrb.mxu0 %v4728_v63  ;;  %v4757_v61 = vld [vmem:[%s8098_s7 + $0x2f4] sm:$0xf0] }
 0x156   :  { %v1579_v2 = vpop.f32.mrf.mxu2  ;;  %v4760_v63 = vor.u32 %v5408_v60, %v4757_v61  ;;  %v1885_v60 = vld [vmem:[%s8097_s6] sm:$0xf]  ;;  %s3487_s6 = sshll.u32 %s8101_s10, 4  ;;  %s3488_s6 = int_to_ptr.hbm [resolvable:$true] %s3487_s6 }
 0x157   :  { %v1614_v4 = vpack.c.bf16 %v1610_v3, %v1610_v3  ;;  %v4979_v2 = vld [vmem:[%s8098_s7 + $0x498] sm:$0xf]  ;;  %v5467_v3 = vld [vmem:[%s8098_s7 + $0x4b0] sm:$0xf0]  ;;  %3125 = vmatpush.bf16.msrb.mxu2 %v4564_v1  ;;  %v4729_v1 = vld [vmem:[%s8098_s7 + $0x2bc] sm:$0xf0] }
 0x159   :  { %4388 = vmatmul.msk.bf16.vlgmr.msra.gmra.mxu0 %vm1239_vm0, %v1614_v4  ;;  %v4476_v4 = vor.u32 %v5341_v59, %v4475_v58  ;;  %v5471_v58 = vld [vmem:[%s8098_s7 + $0x4d4] sm:$0xf]  ;;  %v4788_v59 = vor.u32 %v5415_v50, %v4785_v52 }
 0x15a   :  { %v1605_v53 = vpop.f32.mrf.mxu1 }
 0x15b   :  { %v5397_v53 = vld [vmem:[%s8098_s7 + $0x280] sm:$0xf0]  ;;  %3076 = vmatpush.bf16.msrb.mxu3 %v4476_v4  ;;  %v4701_v4 = vld [vmem:[%s8098_s7 + $0x284] sm:$0xf0] }
 0x169   :  { %v1831_v5 = vpop.f32.mrf.mxu3 }
 0x16a   :  { %v1832_v9 = vadd.f32 %v5499_v8, %v1831_v5  ;;  %v4980_v5 = vor.u32 %v5467_v3, %v4979_v2  ;;  %v4533_v8 = vld [vmem:[%s8098_s7 + $0x134] sm:$0xf0]  ;;  %v5394_v3 = vld [vmem:[%s8098_s7 + $0x26c] sm:$0xf] }
 0x16c   :  { %3100 = vmatpush.bf16.msra.mxu1 %v4980_v5  ;;  %v5331_v5 = vld [vmem:[%s8098_s7 + $0x74] sm:$0xf] }
 0x171   :  { %v1833_v6 = vpop.f32.mrf.mxu3 }
 0x172   :  { %v5352_v6 = vld [vmem:[%s8098_s7 + $0x11c] sm:$0xf] }
 0x175   :  { %v1844_v10 = vpop.f32.mrf.mxu1 }
 0x176   :  { %v1845_v11 = vadd.f32 %v1844_v10, %v1832_v9  ;;  %v4447_v9 = vld [vmem:[%s8098_s7 + $0x70] sm:$0xf]  ;;  %v5334_v10 = vld [vmem:[%s8098_s7 + $0x88] sm:$0xf0] }
 0x17d   :  { %v1846_v55 = vpop.f32.mrf.mxu1 }
 0x17e   :  { %v4536_v55 = vor.u32 %v5352_v6, %v4533_v8  ;;  %v5387_v6 = vld [vmem:[%s8098_s7 + $0x234] sm:$0xf]  ;;  %v4673_v8 = vld [vmem:[%s8098_s7 + $0x24c] sm:$0xf0] }
 0x180   :  { %3126 = vmatpush.bf16.msrb.mxu2 %v4536_v55  ;;  %v5439_v55 = vld [vmem:[%s8098_s7 + $0x3d0] sm:$0xf0] }
 0x1b5   :  { %v1857_v12 = vpop.f32.mrf.mxu2 }
 0x1b6   :  { %v1858_v14 = vadd.f32 %v1857_v12, %v1845_v11  ;;  %v4951_v11 = vld [vmem:[%s8098_s7 + $0x460] sm:$0xf]  ;;  %v5460_v12 = vld [vmem:[%s8098_s7 + $0x478] sm:$0xf0] }
 0x1bd   :  { %v1859_v13 = vpop.f32.mrf.mxu2 }
 0x1be   :  { %v4700_v13 = vor.u32 %v5397_v53, %v4699_v0  ;;  %v5401_v0 = vld [vmem:[%s8098_s7 + $0x2a4] sm:$0xf]  ;;  %v4704_v53 = vor.u32 %v5394_v3, %v4701_v4 }
 0x1bf   :  { %v4732_v2 = vor.u32 %v5401_v0, %v4729_v1 }
 0x1c0   :  { %3089 = vmatpush.bf16.msrb.mxu0 %v4700_v13 }
 0x1d6   :  { %v1870_v15 = vpop.f32.mrf.mxu0 }
 0x1d7   :  { %v6963_v16 = vadd.f32 %v1870_v15, %v1858_v14  ;;  %v4671_v14 = vld [vmem:[%s8098_s7 + $0x230] sm:$0xf]  ;;  %v4952_v15 = vor.u32 %v5460_v12, %v4951_v11  ;;  %v4867_v11 = vld [vmem:[%s8098_s7 + $0x3b8] sm:$0xf]  ;;  %v5464_v12 = vld [vmem:[%s8098_s7 + $0x49c] sm:$0xf] }
 0x1d8   :  { %v4868_v13 = vor.u32 %v5439_v55, %v4867_v11 }
 0x1d9   :  { %v1874_v7 = vmul.f32 0.5, %v6963_v16  ;;  %3479 = vst.msk [vmem:[%s8102_s11] sm:$0xff] %vm3478_vm1, %v6963_v16  ;;  %3101 = vmatpush.bf16.msra.mxu1 %v4952_v15  ;;  %v5324_v15 = vld [vmem:[%s8098_s7 + $0x3c] sm:$0xf] }
 0x1db   :  { %v1875_v18 = vmul.f32 1.442695, %v1874_v7  ;;  %v5345_v7 = vld [vmem:[%s8098_s7 + $0xe4] sm:$0xf] }
 0x1dd   :  { %5500 = vpow2.f32 %v1875_v18  ;;  %v4505_v18 = vld [vmem:[%s8098_s7 + $0xfc] sm:$0xf0]  ;;  %3102 = vmatpush.bf16.msra.mxu1 %v4924_v57 }
 0x1de   :  { %v1872_v19 = vpop.f32.mrf.mxu0  ;;  %v4508_v25 = vor.u32 %v5345_v7, %v4505_v18  ;;  %v4421_v7 = vld [vmem:[%s8098_s7 + $0x54] sm:$0xf0] }
 0x1df   :  { %v4448_v19 = vor.u32 %v5334_v10, %v4447_v9  ;;  %v4676_v10 = vor.u32 %v5387_v6, %v4673_v8  ;;  %v1889_v6 = vperm.slane %v1885_v60, 2  ;;  %v1890_v8 = vperm.slane %v1885_v60, 3 }
 0x1e0   :  { %3127 = vmatpush.bf16.msrb.mxu2 %v4508_v25  ;;  %v5457_v25 = vld [vmem:[%s8098_s7 + $0x464] sm:$0xf] }
 0x1e1   :  { %3077 = vmatpush.bf16.msrb.mxu3 %v4448_v19  ;;  %3103 = vmatpush.bf16.msra.mxu1 %v4896_v40  ;;  %v4424_v19 = vor.u32 %v5324_v15, %v4421_v7  ;;  %v4897_v40 = vld [vmem:[%s8098_s7 + $0x40c] sm:$0xf0] }
 0x1e3   :  { %v5501_v20 = vpop.eup %5500 }
 0x1e4   :  { %1879 = vrot.lane.b32.xlu0 %v5501_v20, %s5556_s4  ;;  %v5390_v20 = vld [vmem:[%s8098_s7 + $0x248] sm:$0xf0]  ;;  %3128 = vmatpush.bf16.msrb.mxu2 %v4480_v36 }
 0x1e5   :  { %v4672_v26 = vor.u32 %v5390_v20, %v4671_v14  ;;  %3078 = vmatpush.bf16.msrb.mxu3 %v4420_v28  ;;  %v4981_v14 = vld [vmem:[%s8098_s7 + $0x4b4] sm:$0xf0]  ;;  %v5380_v20 = vld [vmem:[%s8098_s7 + $0x1fc] sm:$0xf]  ;;  %3104 = vmatpush.bf16.msra.mxu1 %v4868_v13  ;;  %v5373_v28 = vld [vmem:[%s8098_s7 + $0x1c4] sm:$0xf] }
 0x1e6   :  { %v4984_v18 = vor.u32 %v5464_v12, %v4981_v14  ;;  %v4648_v24 = vor.u32 %v5380_v20, %v4645_v22  ;;  %v4620_v33 = vor.u32 %v5373_v28, %v4617_v31  ;;  %v5450_v36 = vld [vmem:[%s8098_s7 + $0x42c] sm:$0xf] }
 0x1e7   :  { %3090 = vmatpush.bf16.msrb.mxu0 %v4672_v26  ;;  %v4953_v26 = vld [vmem:[%s8098_s7 + $0x47c] sm:$0xf0]  ;;  %v4928_v38 = vor.u32 %v5450_v36, %v4925_v37  ;;  %v5482_v28 = vld [vmem:[%s8098_s7 + $0x528] sm:$0xf0] }
 0x1e8   :  { %v4956_v57 = vor.u32 %v5457_v25, %v4953_v26 }
 0x1e9   :  { %3079 = vmatpush.bf16.msrb.mxu3 %v4392_v42  ;;  %3105 = vmatpush.bf16.msra.mxu1 %v4840_v51  ;;  %v5436_v42 = vld [vmem:[%s8098_s7 + $0x3bc] sm:$0xf]  ;;  %v5370_v51 = vld [vmem:[%s8098_s7 + $0x1a8] sm:$0xf0] }
 0x1ea   :  { %v4872_v44 = vor.u32 %v5436_v42, %v4869_v43  ;;  %v4596_v36 = vor.u32 %v5370_v51, %v4595_v23  ;;  %v4567_v42 = vld [vmem:[%s8098_s7 + $0x158] sm:$0xf]  ;;  %v5044_v43 = vor.u32 %v5482_v28, %v5043_v30  ;;  %v5360_v51 = vld [vmem:[%s8098_s7 + $0x15c] sm:$0xf]  ;;  %v4427_v28 = vld [vmem:[%s8098_s7 + $0x40] sm:$0xf] }
 0x1eb   :  { %3091 = vmatpush.bf16.msrb.mxu0 %v4644_v39  ;;  %v5443_v39 = vld [vmem:[%s8098_s7 + $0x3f4] sm:$0xf] }
 0x1ed   :  { %3137 = vmatpush.bf16.msra.mxu3 %v4816_v48  ;;  %v4844_v48 = vor.u32 %v5429_v46, %v4841_v47  ;;  %v5419_v46 = vld [vmem:[%s8098_s7 + $0x330] sm:$0xf0] }
 0x1ef   :  { %3092 = vmatpush.bf16.msrb.mxu0 %v4616_v54 }
 0x1f1   :  { %3138 = vmatpush.bf16.msra.mxu3 %v4788_v59 }
 0x1f3   :  { %3150 = vmatpush.bf16.msra.mxu0 %v5040_v56 }
 0x1f5   :  { %3139 = vmatpush.bf16.msra.mxu3 %v4760_v63 }
 0x1f9   :  { %3140 = vmatpush.bf16.msra.mxu3 %v4732_v2 }
 0x1fd   :  { %3141 = vmatpush.bf16.msra.mxu3 %v4704_v53 }
 0x201   :  { %3142 = vmatpush.bf16.msra.mxu3 %v4676_v10 }
 0x205   :  { %3143 = vmatpush.bf16.msra.mxu3 %v4648_v24 }
 0x209   :  { %3144 = vmatpush.bf16.msra.mxu3 %v4620_v33 }
 0x256   :  { %v1880_v41 = vpop.permute.xlu0 %1879 }
 0x257   :  { %v1882_v45 = vmul.f32 %v1880_v41, %v1877_v34  ;;  %v5068_v34 = vor.u32 %v5485_v32, %v5065_v35  ;;  %v4900_v41 = vor.u32 %v5443_v39, %v4897_v40 }
 0x259   :  { %v1883_v49 = vadd.f32 %v1882_v45, %v6963_v16  ;;  %v5009_v16 = vld [vmem:[%s8098_s7 + $0x4ec] sm:$0xf0]  ;;  %3170 = vmatpush.bf16.msrb.mxu1 %v5068_v34  ;;  %v1884_v45 = vld [vmem:[%s8096_s5] sm:$0xff] }
 0x25a   :  { %v5012_v62 = vor.u32 %v5471_v58, %v5009_v16  ;;  %v1902_v50 = vperm.slane %v1884_v45, 2  ;;  %v1903_v52 = vperm.slane %v1884_v45, 4  ;;  %v1904_v54 = vperm.slane %v1884_v45, 6  ;;  %v5489_v34 = vld [vmem:[%s8098_s7 + $0x560] sm:$0xf0] }
 0x25b   :  { %1922 = vperm.xlu1 %5497, %v1883_v49   ;;  %1897 = vperm.xlu0 %5496, %v1883_v49   ;;  %v1901_v49 = vperm.slane %v1884_v45, 0  ;;  %v1925_v56 = vperm.slane %v1884_v45, 1  ;;  %v1926_v58 = vperm.slane %v1884_v45, 3  ;;  %v1927_v16 = vperm.slane %v1884_v45, 5 }
 0x25c   :  { %3151 = vmatpush.bf16.msra.mxu0 %v5012_v62  ;;  %v1928_v59 = vperm.slane %v1884_v45, 7  ;;  %v1910_v62 = vperm.slane %v1902_v50, 0  ;;  %v1911_v63 = vperm.slane %v1903_v52, 0  ;;  %v1912_v0 = vperm.slane %v1904_v54, 0  ;;  %v4791_v45 = vld [vmem:[%s8098_s7 + $0x318] sm:$0xf] }
 0x25d   :  { %v1909_v61 = vperm.slane %v1901_v49, 0  ;;  %v1933_v1 = vperm.slane %v1925_v56, 1  ;;  %v1934_v2 = vperm.slane %v1926_v58, 1  ;;  %v1935_v3 = vperm.slane %v1927_v16, 1  ;;  %v5475_v49 = vld [vmem:[%s8098_s7 + $0x4f0] sm:$0xf0] }
 0x25e   :  { %v1936_v4 = vperm.slane %v1928_v59, 1  ;;  %v4792_v52 = vor.u32 %v5419_v46, %v4791_v45  ;;  %v4539_v54 = vld [vmem:[%s8098_s7 + $0x120] sm:$0xf]  ;;  %v5356_v58 = vld [vmem:[%s8098_s7 + $0x138] sm:$0xf0] }
 0x25f   :  { %v4763_v16 = vld [vmem:[%s8098_s7 + $0x2e0] sm:$0xf]  ;;  %v5412_v59 = vld [vmem:[%s8098_s7 + $0x2f8] sm:$0xf0]  ;;  %v4399_v45 = vld [vmem:[%s8098_s7 + $0x8] sm:$0xf] }
 0x260   :  { %3152 = vmatpush.bf16.msra.mxu0 %v4984_v18  ;;  %v5321_v46 = vld [vmem:[%s8098_s7 + $0x20] sm:$0xf0] }
 0x263   :  { %5498 = vset.pattern.permute.xlu0 %v5557_v21  ;;  %v4449_v21 = vld [vmem:[%s8098_s7 + $0x8c] sm:$0xf0] }
 0x264   :  { %v4452_v9 = vor.u32 %v5331_v5, %v4449_v21  ;;  %3153 = vmatpush.bf16.msra.mxu0 %v4956_v57  ;;  %v1887_v5 = vperm.slane %v1885_v60, 0  ;;  %v1888_v21 = vperm.slane %v1885_v60, 1  ;;  %v4819_v57 = vld [vmem:[%s8098_s7 + $0x350] sm:$0xf]  ;;  %v4987_v60 = vld [vmem:[%s8098_s7 + $0x4a0] sm:$0xf] }
 0x265   :  { %v4820_v37 = vor.u32 %v5426_v27, %v4819_v57  ;;  %v4569_v57 = vld [vmem:[%s8098_s7 + $0x174] sm:$0xf0] }
 0x266   :  { %3129 = vmatpush.bf16.msrb.mxu2 %v4452_v9 }
 0x268   :  { %3154 = vmatpush.bf16.msra.mxu0 %v4928_v38 }
 0x26a   :  { %3130 = vmatpush.bf16.msrb.mxu2 %v4424_v19 }
 0x26c   :  { %3155 = vmatpush.bf16.msra.mxu0 %v4900_v41 }
 0x26e   :  { %3131 = vmatpush.bf16.msrb.mxu2 %v4396_v29  ;;  %v5071_v29 = vld [vmem:[%s8098_s7 + $0x548] sm:$0xf] }
 0x26f   :  { %v5072_v47 = vor.u32 %v5489_v34, %v5071_v29  ;;  %v5328_v29 = vld [vmem:[%s8098_s7 + $0x58] sm:$0xf0]  ;;  %v4875_v34 = vld [vmem:[%s8098_s7 + $0x3c0] sm:$0xf] }
 0x270   :  { %3156 = vmatpush.bf16.msra.mxu0 %v4872_v44  ;;  %v5363_v44 = vld [vmem:[%s8098_s7 + $0x170] sm:$0xf0] }
 0x271   :  { %v4568_v50 = vor.u32 %v5363_v44, %v4567_v42  ;;  %v4541_v42 = vld [vmem:[%s8098_s7 + $0x13c] sm:$0xf0] }
 0x274   :  { %3157 = vmatpush.bf16.msra.mxu0 %v4844_v48  ;;  %v5015_v48 = vld [vmem:[%s8098_s7 + $0x4d8] sm:$0xf] }
 0x275   :  { %v5016_v56 = vor.u32 %v5475_v49, %v5015_v48 }
 0x2cd   :  { %v1923_v53 = vpop.permute.xlu1 %1922  ;;  %v1898_v9 = vpop.permute.xlu0 %1897 }
 0x2ce   :  { %v1913_v10 = vmul.f32 %v1909_v61, %v1898_v9  ;;  %v1914_v11 = vmul.f32 %v1910_v62, %v1898_v9  ;;  %v1915_v55 = vmul.f32 %v1911_v63, %v1898_v9  ;;  %v1916_v12 = vmul.f32 %v1912_v0, %v1898_v9  ;;  %v5468_v61 = vld [vmem:[%s8098_s7 + $0x4b8] sm:$0xf0]  ;;  %v4511_v0 = vld [vmem:[%s8098_s7 + $0xe8] sm:$0xf]  ;;  %v5342_v9 = vld [vmem:[%s8098_s7 + $0xc8] sm:$0xf0] }
 0x2cf   :  { %v1937_v13 = vmul.f32 %v1933_v1, %v1923_v53  ;;  %v1938_v14 = vmul.f32 %v1934_v2, %v1923_v53  ;;  %v1939_v15 = vmul.f32 %v1935_v3, %v1923_v53  ;;  %v1940_v7 = vmul.f32 %v1936_v4, %v1923_v53  ;;  %v5349_v2 = vld [vmem:[%s8098_s7 + $0x100] sm:$0xf0]  ;;  %v4735_v3 = vld [vmem:[%s8098_s7 + $0x2a8] sm:$0xf] }
 0x2d0   :  { %v1917_v18 = vadd.f32 %v1913_v10, %v1887_v5  ;;  %v1918_v19 = vadd.f32 %v1914_v11, %v1888_v21  ;;  %v1919_v20 = vadd.f32 %v1915_v55, %v1889_v6  ;;  %v1920_v22 = vadd.f32 %v1916_v12, %v1890_v8  ;;  %v5405_v4 = vld [vmem:[%s8098_s7 + $0x2c0] sm:$0xf0]  ;;  %v4959_v53 = vld [vmem:[%s8098_s7 + $0x468] sm:$0xf]  ;;  %v4483_v8 = vld [vmem:[%s8098_s7 + $0xb0] sm:$0xf] }
 0x2d1   :  { %v4540_v62 = vor.u32 %v5356_v58, %v4539_v54  ;;  %v4764_v63 = vor.u32 %v5412_v59, %v4763_v16  ;;  %v4988_v1 = vor.u32 %v5468_v61, %v4987_v60  ;;  %v5461_v5 = vld [vmem:[%s8098_s7 + $0x480] sm:$0xf0]  ;;  %v4512_v21 = vor.u32 %v5349_v2, %v4511_v0  ;;  %v4707_v11 = vld [vmem:[%s8098_s7 + $0x270] sm:$0xf]  ;;  %v5398_v55 = vld [vmem:[%s8098_s7 + $0x288] sm:$0xf0] }
 0x2d2   :  { %v1941_v24 = vadd.f32 %v1937_v13, %v1917_v18  ;;  %v1942_v17 = vadd.f32 %v1938_v14, %v1918_v19  ;;  %v1943_v25 = vadd.f32 %v1939_v15, %v1919_v20  ;;  %v1944_v26 = vadd.f32 %v1940_v7, %v1920_v22  ;;  %v4931_v12 = vld [vmem:[%s8098_s7 + $0x430] sm:$0xf]  ;;  %v5454_v13 = vld [vmem:[%s8098_s7 + $0x448] sm:$0xf0]  ;;  %v5367_v14 = vld [vmem:[%s8098_s7 + $0x194] sm:$0xf] }
 0x2d3   :  { %v4736_v6 = vor.u32 %v5405_v4, %v4735_v3  ;;  %v4960_v10 = vor.u32 %v5461_v5, %v4959_v53  ;;  %v4597_v15 = vld [vmem:[%s8098_s7 + $0x1ac] sm:$0xf0]  ;;  %v4484_v7 = vor.u32 %v5342_v9, %v4483_v8  ;;  %v4708_v18 = vor.u32 %v5398_v55, %v4707_v11  ;;  %v4455_v19 = vld [vmem:[%s8098_s7 + $0x78] sm:$0xf]  ;;  %v5335_v20 = vld [vmem:[%s8098_s7 + $0x90] sm:$0xf0] }
 0x2d4   :  { %v1945_v31 = vmax.f32 %v1941_v24, 0.0  ;;  %v1946_v32 = vmax.f32 %v1942_v17, 0.0  ;;  %v1947_v35 = vmax.f32 %v1943_v25, 0.0  ;;  %v1948_v33 = vmax.f32 %v1944_v26, 0.0  ;;  %v4679_v24 = vld [vmem:[%s8098_s7 + $0x238] sm:$0xf] }
 0x2d5   :  { %v4932_v22 = vor.u32 %v5454_v13, %v4931_v12  ;;  %v4600_v23 = vor.u32 %v5367_v14, %v4597_v15  ;;  %v5391_v17 = vld [vmem:[%s8098_s7 + $0x250] sm:$0xf0]  ;;  %v4903_v25 = vld [vmem:[%s8098_s7 + $0x3f8] sm:$0xf]  ;;  %v4456_v27 = vor.u32 %v5335_v20, %v4455_v19  ;;  %v5433_v54 = vld [vmem:[%s8098_s7 + $0x3a0] sm:$0xf0] }
 0x2d6   :  { %v7306_v38 = vpack.c.bf16 %v1945_v31, %v1945_v31  ;;  %v7308_v39 = vpack.c.bf16 %v1946_v32, %v1946_v32  ;;  %v7310_v40 = vpack.c.bf16 %v1947_v35, %v1947_v35  ;;  %v7312_v41 = vpack.c.bf16 %v1948_v33, %v1948_v33  ;;  %v5447_v26 = vld [vmem:[%s8098_s7 + $0x410] sm:$0xf0]  ;;  %v4651_v35 = vld [vmem:[%s8098_s7 + $0x200] sm:$0xf]  ;;  %v5384_v33 = vld [vmem:[%s8098_s7 + $0x218] sm:$0xf0] }
 0x2d7   :  { %v4680_v30 = vor.u32 %v5391_v17, %v4679_v24  ;;  %v4904_v31 = vor.u32 %v5447_v26, %v4903_v25  ;;  %v4572_v32 = vor.u32 %v5360_v51, %v4569_v57  ;;  %v4652_v44 = vor.u32 %v5384_v33, %v4651_v35  ;;  %v4513_v58 = vld [vmem:[%s8098_s7 + $0x104] sm:$0xf0]  ;;  %v5423_v16 = vld [vmem:[%s8098_s7 + $0x354] sm:$0xf]  ;;  %v4821_v59 = vld [vmem:[%s8098_s7 + $0x36c] sm:$0xf0] }
 0x2d8   :  { %3080 = vmatmul.bf16.vlgmr.msrb.gmra.mxu3 %v7306_v38  ;;  %3093 = vmatmul.bf16.vlgmr.msrb.gmra.mxu0 %v7308_v39  ;;  %v5479_v60 = vld [vmem:[%s8098_s7 + $0x514] sm:$0xf]  ;;  %v5045_v61 = vld [vmem:[%s8098_s7 + $0x52c] sm:$0xf0]  ;;  %v5486_v0 = vld [vmem:[%s8098_s7 + $0x54c] sm:$0xf]  ;;  %v4824_v4 = vor.u32 %v5423_v16, %v4821_v59 }
 0x2d9   :  { %3106 = vmatmul.bf16.vlgmr.msra.gmra.mxu1 %v7310_v40  ;;  %5089 = vmatmul.msk.bf16.vlgmr.msra.gmra.mxu2 %vm1239_vm0, %v7312_v41  ;;  %v5048_v53 = vor.u32 %v5479_v60, %v5045_v61  ;;  %v5339_v5 = vld [vmem:[%s8098_s7 + $0xb4] sm:$0xf]  ;;  %v4485_v9 = vld [vmem:[%s8098_s7 + $0xcc] sm:$0xf0]  ;;  %v4793_v11 = vld [vmem:[%s8098_s7 + $0x334] sm:$0xf0] }
 0x2da   :  { %3176 = vmatpush.bf16.msra.mxu1 %v4596_v36  ;;  %3189 = vmatpush.bf16.msra.mxu2 %v4820_v37  ;;  %v5440_v36 = vld [vmem:[%s8098_s7 + $0x3d8] sm:$0xf0]  ;;  %v5353_v37 = vld [vmem:[%s8098_s7 + $0x124] sm:$0xf]  ;;  %v5017_v12 = vld [vmem:[%s8098_s7 + $0x4f4] sm:$0xf0]  ;;  %v4488_v14 = vor.u32 %v5339_v5, %v4485_v9 }
 0x2db   :  { %3202 = vmatpush.bf16.msrb.mxu3 %v5044_v43  ;;  %3222 = vmatpush.bf16.msrb.mxu0 %v5072_v47  ;;  %v4428_v43 = vor.u32 %v5328_v29, %v4427_v28  ;;  %v4623_v47 = vld [vmem:[%s8098_s7 + $0x1c8] sm:$0xf]  ;;  %v4876_v48 = vor.u32 %v5440_v36, %v4875_v34  ;;  %v4544_v49 = vor.u32 %v5353_v37, %v4541_v42  ;;  %v5472_v55 = vld [vmem:[%s8098_s7 + $0x4dc] sm:$0xf]  ;;  %v4765_v24 = vld [vmem:[%s8098_s7 + $0x2fc] sm:$0xf0] }
 0x2dc   :  { %v5364_v19 = vld [vmem:[%s8098_s7 + $0x178] sm:$0xf0]  ;;  %v5020_v20 = vor.u32 %v5472_v55, %v5017_v12  ;;  %v5465_v17 = vld [vmem:[%s8098_s7 + $0x4a4] sm:$0xf]  ;;  %v4989_v25 = vld [vmem:[%s8098_s7 + $0x4bc] sm:$0xf0] }
 0x2dd   :  { %v5357_v28 = vld [vmem:[%s8098_s7 + $0x140] sm:$0xf0]  ;;  %v4992_v29 = vor.u32 %v5465_v17, %v4989_v25  ;;  %v4737_v35 = vld [vmem:[%s8098_s7 + $0x2c4] sm:$0xf0]  ;;  %v5458_v33 = vld [vmem:[%s8098_s7 + $0x46c] sm:$0xf] }
 0x2de   :  { %3177 = vmatpush.bf16.msra.mxu1 %v4568_v50  ;;  %3190 = vmatpush.bf16.msra.mxu2 %v4792_v52  ;;  %v5377_v50 = vld [vmem:[%s8098_s7 + $0x1e0] sm:$0xf0]  ;;  %v4847_v52 = vld [vmem:[%s8098_s7 + $0x388] sm:$0xf]  ;;  %v5318_v37 = vld [vmem:[%s8098_s7 + $0xc] sm:$0xf] }
 0x2df   :  { %3203 = vmatpush.bf16.msrb.mxu3 %v5016_v56  ;;  %v5346_v56 = vld [vmem:[%s8098_s7 + $0xec] sm:$0xf]  ;;  %v4848_v2 = vor.u32 %v5433_v54, %v4847_v52  ;;  %v4961_v34 = vld [vmem:[%s8098_s7 + $0x484] sm:$0xf0]  ;;  %v4933_v52 = vld [vmem:[%s8098_s7 + $0x44c] sm:$0xf0] }
 0x2e0   :  { %v4516_v3 = vor.u32 %v5346_v56, %v4513_v58  ;;  %v4827_v54 = vld [vmem:[%s8098_s7 + $0x358] sm:$0xf]  ;;  %v5427_v56 = vld [vmem:[%s8098_s7 + $0x370] sm:$0xf0]  ;;  %v4653_v55 = vld [vmem:[%s8098_s7 + $0x21c] sm:$0xf0] }
 0x2e1   :  { %v4491_v60 = vld [vmem:[%s8098_s7 + $0xb8] sm:$0xf]  ;;  %v5343_v61 = vld [vmem:[%s8098_s7 + $0xd0] sm:$0xf0]  ;;  %v5437_v12 = vld [vmem:[%s8098_s7 + $0x3c4] sm:$0xf] }
 0x2e2   :  { %3178 = vmatpush.bf16.msra.mxu1 %v4540_v62  ;;  %3191 = vmatpush.bf16.msra.mxu2 %v4764_v63  ;;  %v4400_v62 = vor.u32 %v5321_v46, %v4399_v45  ;;  %v4624_v63 = vor.u32 %v5377_v50, %v4623_v47  ;;  %v4519_v45 = vld [vmem:[%s8098_s7 + $0xf0] sm:$0xf]  ;;  %v5350_v46 = vld [vmem:[%s8098_s7 + $0x108] sm:$0xf0]  ;;  %v4964_v47 = vor.u32 %v5458_v33, %v4961_v34  ;;  %v5451_v50 = vld [vmem:[%s8098_s7 + $0x434] sm:$0xf] }
 0x2e3   :  { %3204 = vmatpush.bf16.msrb.mxu3 %v4988_v1  ;;  %v5073_v1 = vld [vmem:[%s8098_s7 + $0x564] sm:$0xf0]  ;;  %v4520_v58 = vor.u32 %v5350_v46, %v4519_v45  ;;  %v4492_v5 = vor.u32 %v5343_v61, %v4491_v60  ;;  %v5430_v25 = vld [vmem:[%s8098_s7 + $0x38c] sm:$0xf]  ;;  %v5399_v46 = vld [vmem:[%s8098_s7 + $0x290] sm:$0xf0] }
 0x2e4   :  { %v5076_v8 = vor.u32 %v5486_v0, %v5073_v1  ;;  %v5388_v0 = vld [vmem:[%s8098_s7 + $0x23c] sm:$0xf]  ;;  %v4681_v1 = vld [vmem:[%s8098_s7 + $0x254] sm:$0xf0]  ;;  %v4625_v17 = vld [vmem:[%s8098_s7 + $0x1e4] sm:$0xf0] }
 0x2e5   :  { %v5322_v33 = vld [vmem:[%s8098_s7 + $0x28] sm:$0xf0]  ;;  %v4801_v60 = vld [vmem:[%s8098_s7 + $0x33c] sm:$0xf0] }
 0x2e6   :  { %3179 = vmatpush.bf16.msra.mxu1 %v4512_v21  ;;  %3192 = vmatpush.bf16.msra.mxu2 %v4736_v6  ;;  %v4603_v21 = vld [vmem:[%s8098_s7 + $0x198] sm:$0xf]  ;;  %v5371_v6 = vld [vmem:[%s8098_s7 + $0x1b0] sm:$0xf0] }
 0x2e7   :  { %3205 = vmatpush.bf16.msrb.mxu3 %v4960_v10  ;;  %v5416_v10 = vld [vmem:[%s8098_s7 + $0x31c] sm:$0xf]  ;;  %v4604_v13 = vor.u32 %v5371_v6, %v4603_v21  ;;  %v4684_v21 = vor.u32 %v5388_v0, %v4681_v1  ;;  %v4463_v6 = vld [vmem:[%s8098_s7 + $0x80] sm:$0xf]  ;;  %v4995_v1 = vld [vmem:[%s8098_s7 + $0x4a8] sm:$0xf] }
 0x2e8   :  { %3145 = vmatmul.bf16.vlgmr.msra.gmra.mxu3 %v7308_v39  ;;  %3158 = vmatmul.bf16.vlgmr.msra.gmra.mxu0 %v7310_v40  ;;  %v4796_v15 = vor.u32 %v5416_v10, %v4793_v11  ;;  %v5381_v11 = vld [vmem:[%s8098_s7 + $0x204] sm:$0xf]  ;;  %v4577_v0 = vld [vmem:[%s8098_s7 + $0x17c] sm:$0xf0] }
 0x2e9   :  { %3132 = vmatmul.bf16.vlgmr.msrb.gmra.mxu2 %v7306_v38  ;;  %5090 = vmatmul.msk.bf16.vlgmr.msrb.gmra.mxu1 %vm1239_vm0, %v7312_v41 }
 0x2ea   :  { %3180 = vmatpush.bf16.msra.mxu1 %v4484_v7  ;;  %3193 = vmatpush.bf16.msra.mxu2 %v4708_v18  ;;  %v5332_v7 = vld [vmem:[%s8098_s7 + $0x7c] sm:$0xf]  ;;  %v4575_v18 = vld [vmem:[%s8098_s7 + $0x160] sm:$0xf] }
 0x2eb   :  { %3206 = vmatpush.bf16.msrb.mxu3 %v4932_v22  ;;  %3228 = vmatpush.bf16.msra.mxu0 %v4600_v23  ;;  %v4457_v22 = vld [vmem:[%s8098_s7 + $0x94] sm:$0xf0]  ;;  %v5409_v23 = vld [vmem:[%s8098_s7 + $0x2e4] sm:$0xf]  ;;  %v4576_v26 = vor.u32 %v5364_v19, %v4575_v18  ;;  %v4656_v18 = vor.u32 %v5381_v11, %v4653_v55  ;;  %v4435_v19 = vld [vmem:[%s8098_s7 + $0x48] sm:$0xf] }
 0x2ec   :  { %v4460_v51 = vor.u32 %v5332_v7, %v4457_v22  ;;  %v4768_v57 = vor.u32 %v5409_v23, %v4765_v24  ;;  %v5374_v22 = vld [vmem:[%s8098_s7 + $0x1cc] sm:$0xf]  ;;  %v4549_v11 = vld [vmem:[%s8098_s7 + $0x144] sm:$0xf0]  ;;  %v4967_v55 = vld [vmem:[%s8098_s7 + $0x470] sm:$0xf] }
 0x2ee   :  { %3181 = vmatpush.bf16.msra.mxu1 %v4456_v27  ;;  %3194 = vmatpush.bf16.msra.mxu2 %v4680_v30  ;;  %v5325_v27 = vld [vmem:[%s8098_s7 + $0x44] sm:$0xf]  ;;  %v4547_v30 = vld [vmem:[%s8098_s7 + $0x128] sm:$0xf] }
 0x2ef   :  { %3207 = vmatpush.bf16.msrb.mxu3 %v4904_v31  ;;  %3229 = vmatpush.bf16.msra.mxu0 %v4572_v32  ;;  %v4429_v31 = vld [vmem:[%s8098_s7 + $0x5c] sm:$0xf0]  ;;  %v5402_v32 = vld [vmem:[%s8098_s7 + $0x2ac] sm:$0xf]  ;;  %v4548_v36 = vor.u32 %v5357_v28, %v4547_v30  ;;  %v5483_v28 = vld [vmem:[%s8098_s7 + $0x530] sm:$0xf0] }
 0x2f0   :  { %v4432_v42 = vor.u32 %v5325_v27, %v4429_v31  ;;  %v5051_v27 = vld [vmem:[%s8098_s7 + $0x518] sm:$0xf]  ;;  %v5490_v31 = vld [vmem:[%s8098_s7 + $0x568] sm:$0xf0] }
 0x2f2   :  { %3182 = vmatpush.bf16.msra.mxu1 %v4428_v43  ;;  %3195 = vmatpush.bf16.msra.mxu2 %v4652_v44  ;;  %v4740_v43 = vor.u32 %v5402_v32, %v4737_v35  ;;  %v4401_v44 = vld [vmem:[%s8098_s7 + $0x24] sm:$0xf0]  ;;  %v4628_v32 = vor.u32 %v5374_v22, %v4625_v17  ;;  %v4407_v35 = vld [vmem:[%s8098_s7 + $0x10] sm:$0xf]  ;;  %v4939_v17 = vld [vmem:[%s8098_s7 + $0x438] sm:$0xf] }
 0x2f3   :  { %3208 = vmatpush.bf16.msrb.mxu3 %v4876_v48  ;;  %3230 = vmatpush.bf16.msra.mxu0 %v4544_v49  ;;  %v5395_v48 = vld [vmem:[%s8098_s7 + $0x274] sm:$0xf]  ;;  %v4709_v49 = vld [vmem:[%s8098_s7 + $0x28c] sm:$0xf0]  ;;  %v4404_v16 = vor.u32 %v5318_v37, %v4401_v44  ;;  %v4715_v37 = vld [vmem:[%s8098_s7 + $0x278] sm:$0xf]  ;;  %v5052_v44 = vor.u32 %v5483_v28, %v5051_v27 }
 0x2f4   :  { %v4712_v59 = vor.u32 %v5395_v48, %v4709_v49  ;;  %v4605_v48 = vld [vmem:[%s8098_s7 + $0x1b4] sm:$0xf0]  ;;  %v4408_v49 = vor.u32 %v5322_v33, %v4407_v35  ;;  %v5340_v28 = vld [vmem:[%s8098_s7 + $0xbc] sm:$0xf] }
 0x2f5   :  { %v5396_v35 = vld [vmem:[%s8098_s7 + $0x27c] sm:$0xf]  ;;  %v4717_v33 = vld [vmem:[%s8098_s7 + $0x294] sm:$0xf0] }
 0x2f6   :  { %3183 = vmatpush.bf16.msra.mxu1 %v4400_v62  ;;  %3196 = vmatpush.bf16.msra.mxu2 %v4624_v63  ;;  %v4936_v62 = vor.u32 %v5451_v50, %v4933_v52  ;;  %v4828_v63 = vor.u32 %v5427_v56, %v4827_v54  ;;  %v5023_v50 = vld [vmem:[%s8098_s7 + $0x4e0] sm:$0xf]  ;;  %v5476_v52 = vld [vmem:[%s8098_s7 + $0x4f8] sm:$0xf0]  ;;  %v4716_v56 = vor.u32 %v5399_v46, %v4715_v37  ;;  %v5473_v37 = vld [vmem:[%s8098_s7 + $0x4e4] sm:$0xf] }
 0x2f7   :  { %3209 = vmatpush.bf16.msrb.mxu3 %v4848_v2  ;;  %3231 = vmatpush.bf16.msra.mxu0 %v4516_v3  ;;  %v5444_v2 = vld [vmem:[%s8098_s7 + $0x3fc] sm:$0xf]  ;;  %v4905_v3 = vld [vmem:[%s8098_s7 + $0x414] sm:$0xf0]  ;;  %v5024_v61 = vor.u32 %v5476_v52, %v5023_v50  ;;  %v4465_v46 = vld [vmem:[%s8098_s7 + $0x9c] sm:$0xf0] }
 0x2f8   :  { %5091 = vmatmul.msk.bf16.vlgmr.msrb.gmra.mxu0 %vm1239_vm0, %v7312_v41  ;;  %v4908_v9 = vor.u32 %v5444_v2, %v4905_v3  ;;  %v5469_v2 = vld [vmem:[%s8098_s7 + $0x4c0] sm:$0xf0]  ;;  %v4689_v50 = vld [vmem:[%s8098_s7 + $0x25c] sm:$0xf0]  ;;  %v4883_v52 = vld [vmem:[%s8098_s7 + $0x3c8] sm:$0xf] }
 0x2f9   :  { %3184 = vmatmul.bf16.vlgmr.msra.gmra.mxu1 %v7306_v38  ;;  %3197 = vmatmul.bf16.vlgmr.msra.gmra.mxu2 %v7308_v39 }
 0x2fa   :  { %3241 = vmatpush.bf16.msrb.mxu1 %v4824_v4  ;;  %3254 = vmatpush.bf16.msrb.mxu2 %v5048_v53  ;;  %v4799_v4 = vld [vmem:[%s8098_s7 + $0x320] sm:$0xf]  ;;  %v5420_v53 = vld [vmem:[%s8098_s7 + $0x338] sm:$0xf0] }
 0x2fb   :  { %3274 = vmatpush.bf16.msra.mxu3 %v5076_v8  ;;  %3232 = vmatpush.bf16.msra.mxu0 %v4488_v14  ;;  %v5336_v8 = vld [vmem:[%s8098_s7 + $0x98] sm:$0xf0]  ;;  %v4800_v10 = vor.u32 %v5420_v53, %v4799_v4  ;;  %v4771_v14 = vld [vmem:[%s8098_s7 + $0x2e8] sm:$0xf] }
 0x2fc   :  { %3210 = vmatmul.bf16.vlgmr.msrb.gmra.mxu3 %v7310_v40  ;;  %v4464_v7 = vor.u32 %v5336_v8, %v4463_v6  ;;  %v4773_v6 = vld [vmem:[%s8098_s7 + $0x304] sm:$0xf0]  ;;  %v4996_v8 = vor.u32 %v5469_v2, %v4995_v1  ;;  %v4855_v2 = vld [vmem:[%s8098_s7 + $0x390] sm:$0xf] }
 0x2fd   :  { %v4661_v1 = vld [vmem:[%s8098_s7 + $0x224] sm:$0xf0] }
 0x2fe   :  { %3242 = vmatpush.bf16.msrb.mxu1 %v4796_v15  ;;  %3255 = vmatpush.bf16.msrb.mxu2 %v5020_v20  ;;  %v5413_v15 = vld [vmem:[%s8098_s7 + $0x300] sm:$0xf0] }
 0x2ff   :  { %3280 = vmatpush.bf16.msrb.mxu3 %v4604_v13  ;;  %3233 = vmatpush.bf16.msra.mxu0 %v4460_v51  ;;  %v4877_v13 = vld [vmem:[%s8098_s7 + $0x3dc] sm:$0xf0]  ;;  %v5329_v20 = vld [vmem:[%s8098_s7 + $0x60] sm:$0xf0]  ;;  %v4772_v24 = vor.u32 %v5413_v15, %v4771_v14  ;;  %v4743_v51 = vld [vmem:[%s8098_s7 + $0x2b0] sm:$0xf] }
 0x300   :  { %v4880_v23 = vor.u32 %v5437_v12, %v4877_v13  ;;  %v4436_v30 = vor.u32 %v5329_v20, %v4435_v19  ;;  %v5462_v12 = vld [vmem:[%s8098_s7 + $0x488] sm:$0xf0]  ;;  %v4631_v14 = vld [vmem:[%s8098_s7 + $0x1d0] sm:$0xf]  ;;  %v5403_v19 = vld [vmem:[%s8098_s7 + $0x2b4] sm:$0xf] }
 0x301   :  { %v4745_v20 = vld [vmem:[%s8098_s7 + $0x2cc] sm:$0xf0]  ;;  %v4968_v22 = vor.u32 %v5462_v12, %v4967_v55  ;;  %v5375_v12 = vld [vmem:[%s8098_s7 + $0x1d4] sm:$0xf] }
 0x302   :  { %3243 = vmatpush.bf16.msrb.mxu1 %v4768_v57  ;;  %3256 = vmatpush.bf16.msrb.mxu2 %v4992_v29  ;;  %v5406_v57 = vld [vmem:[%s8098_s7 + $0x2c8] sm:$0xf0]  ;;  %v5079_v29 = vld [vmem:[%s8098_s7 + $0x550] sm:$0xf] }
 0x303   :  { %3281 = vmatpush.bf16.msrb.mxu3 %v4576_v26  ;;  %3234 = vmatpush.bf16.msra.mxu0 %v4432_v42  ;;  %v4849_v26 = vld [vmem:[%s8098_s7 + $0x3a4] sm:$0xf0]  ;;  %v5424_v42 = vld [vmem:[%s8098_s7 + $0x35c] sm:$0xf]  ;;  %v5080_v45 = vor.u32 %v5490_v31, %v5079_v29  ;;  %v4493_v29 = vld [vmem:[%s8098_s7 + $0xd4] sm:$0xf0] }
 0x304   :  { %v4852_v34 = vor.u32 %v5430_v25, %v4849_v26  ;;  %v5455_v25 = vld [vmem:[%s8098_s7 + $0x450] sm:$0xf0]  ;;  %v5480_v26 = vld [vmem:[%s8098_s7 + $0x51c] sm:$0xf]  ;;  %v4409_v55 = vld [vmem:[%s8098_s7 + $0x2c] sm:$0xf0] }
 0x305   :  { %v4940_v31 = vor.u32 %v5455_v25, %v4939_v17  ;;  %v5484_v17 = vld [vmem:[%s8098_s7 + $0x538] sm:$0xf0] }
 0x306   :  { %3244 = vmatpush.bf16.msrb.mxu1 %v4740_v43  ;;  %3257 = vmatpush.bf16.msrb.mxu2 %v4964_v47  ;;  %v4829_v43 = vld [vmem:[%s8098_s7 + $0x374] sm:$0xf0]  ;;  %v5368_v47 = vld [vmem:[%s8098_s7 + $0x19c] sm:$0xf] }
 0x307   :  { %3282 = vmatpush.bf16.msrb.mxu3 %v4548_v36  ;;  %3235 = vmatpush.bf16.msra.mxu0 %v4404_v16  ;;  %v4744_v36 = vor.u32 %v5406_v57, %v4743_v51  ;;  %v4832_v54 = vor.u32 %v5424_v42, %v4829_v43  ;;  %v4687_v16 = vld [vmem:[%s8098_s7 + $0x240] sm:$0xf]  ;;  %v5053_v51 = vld [vmem:[%s8098_s7 + $0x534] sm:$0xf0]  ;;  %v4748_v57 = vor.u32 %v5403_v19, %v4745_v20  ;;  %v5372_v19 = vld [vmem:[%s8098_s7 + $0x1b8] sm:$0xf0] }
 0x308   :  { %v5025_v42 = vld [vmem:[%s8098_s7 + $0x4fc] sm:$0xf0]  ;;  %v4496_v43 = vor.u32 %v5340_v28, %v4493_v29  ;;  %v4583_v28 = vld [vmem:[%s8098_s7 + $0x168] sm:$0xf] }
 0x309   :  { %v4835_v20 = vld [vmem:[%s8098_s7 + $0x360] sm:$0xf] }
 0x30a   :  { %3245 = vmatpush.bf16.msrb.mxu1 %v4712_v59  ;;  %3258 = vmatpush.bf16.msrb.mxu2 %v4936_v62  ;;  %v5417_v59 = vld [vmem:[%s8098_s7 + $0x324] sm:$0xf]  ;;  %v5392_v62 = vld [vmem:[%s8098_s7 + $0x258] sm:$0xf0] }
 0x30b   :  { %3283 = vmatpush.bf16.msrb.mxu3 %v4520_v58  ;;  %3293 = vmatpush.bf16.msrb.mxu0 %v4828_v63  ;;  %v4608_v58 = vor.u32 %v5368_v47, %v4605_v48  ;;  %v5361_v63 = vld [vmem:[%s8098_s7 + $0x164] sm:$0xf]  ;;  %v4804_v3 = vor.u32 %v5417_v59, %v4801_v60  ;;  %v4688_v4 = vor.u32 %v5392_v62, %v4687_v16  ;;  %v5326_v60 = vld [vmem:[%s8098_s7 + $0x4c] sm:$0xf] }
 0x30c   :  { %5092 = vmatmul.msk.bf16.vlgmr.msra.gmra.mxu3 %vm1239_vm0, %v7312_v41  ;;  %3236 = vmatmul.bf16.vlgmr.msra.gmra.mxu0 %v7306_v38  ;;  %v4580_v53 = vor.u32 %v5361_v63, %v4577_v0  ;;  %v5028_v48 = vor.u32 %v5473_v37, %v5025_v42  ;;  %v5382_v0 = vld [vmem:[%s8098_s7 + $0x20c] sm:$0xf] }
 0x30e   :  { %3246 = vmatpush.bf16.msrb.mxu1 %v4684_v21  ;;  %3259 = vmatpush.bf16.msrb.mxu2 %v4908_v9  ;;  %v5410_v21 = vld [vmem:[%s8098_s7 + $0x2ec] sm:$0xf]  ;;  %v5385_v9 = vld [vmem:[%s8098_s7 + $0x220] sm:$0xf0] }
 0x30f   :  { %3284 = vmatpush.bf16.msrb.mxu3 %v4492_v5  ;;  %3294 = vmatpush.bf16.msrb.mxu0 %v4800_v10  ;;  %v4659_v5 = vld [vmem:[%s8098_s7 + $0x208] sm:$0xf]  ;;  %v5354_v10 = vld [vmem:[%s8098_s7 + $0x12c] sm:$0xf]  ;;  %v4776_v13 = vor.u32 %v5410_v21, %v4773_v6  ;;  %v5081_v21 = vld [vmem:[%s8098_s7 + $0x56c] sm:$0xf0] }
 0x310   :  { %v4660_v15 = vor.u32 %v5385_v9, %v4659_v5  ;;  %v5487_v5 = vld [vmem:[%s8098_s7 + $0x554] sm:$0xf] }
 0x311   :  { %v5319_v9 = vld [vmem:[%s8098_s7 + $0x14] sm:$0xf] }
 0x312   :  { %3247 = vmatpush.bf16.msrb.mxu1 %v4656_v18  ;;  %3260 = vmatpush.bf16.msrb.mxu2 %v4880_v23  ;;  %v5378_v18 = vld [vmem:[%s8098_s7 + $0x1e8] sm:$0xf0]  ;;  %v5347_v23 = vld [vmem:[%s8098_s7 + $0xf4] sm:$0xf] }
 0x313   :  { %3285 = vmatpush.bf16.msrb.mxu3 %v4464_v7  ;;  %3295 = vmatpush.bf16.msrb.mxu0 %v4772_v24  ;;  %v4552_v7 = vor.u32 %v5354_v10, %v4549_v11  ;;  %v4521_v24 = vld [vmem:[%s8098_s7 + $0x10c] sm:$0xf0]  ;;  %v4632_v27 = vor.u32 %v5378_v18, %v4631_v14  ;;  %v5084_v14 = vor.u32 %v5487_v5, %v5081_v21  ;;  %v4611_v18 = vld [vmem:[%s8098_s7 + $0x1a0] sm:$0xf] }
 0x316   :  { %3248 = vmatpush.bf16.msrb.mxu1 %v4628_v32  ;;  %3261 = vmatpush.bf16.msrb.mxu2 %v4852_v34  ;;  %v5056_v32 = vor.u32 %v5480_v26, %v5053_v51  ;;  %v4911_v34 = vld [vmem:[%s8098_s7 + $0x400] sm:$0xf]  ;;  %v4612_v51 = vor.u32 %v5372_v19, %v4611_v18  ;;  %v5337_v19 = vld [vmem:[%s8098_s7 + $0xa0] sm:$0xf0] }
 0x317   :  { %3286 = vmatpush.bf16.msrb.mxu3 %v4436_v30  ;;  %3296 = vmatpush.bf16.msrb.mxu0 %v4744_v36  ;;  %v4524_v30 = vor.u32 %v5347_v23, %v4521_v24  ;;  %v5448_v36 = vld [vmem:[%s8098_s7 + $0x418] sm:$0xf0]  ;;  %v4412_v23 = vor.u32 %v5319_v9, %v4409_v55  ;;  %v5059_v24 = vld [vmem:[%s8098_s7 + $0x520] sm:$0xf] }
 0x318   :  { %v4912_v47 = vor.u32 %v5448_v36, %v4911_v34  ;;  %v5060_v29 = vor.u32 %v5484_v17, %v5059_v24  ;;  %v5477_v34 = vld [vmem:[%s8098_s7 + $0x500] sm:$0xf0]  ;;  %v5344_v9 = vld [vmem:[%s8098_s7 + $0xd8] sm:$0xf0] }
 0x319   :  { %3249 = vmatmul.bf16.vlgmr.msrb.gmra.mxu1 %v7308_v39  ;;  %3262 = vmatmul.bf16.vlgmr.msrb.gmra.mxu2 %v7310_v40  ;;  %v5449_v24 = vld [vmem:[%s8098_s7 + $0x420] sm:$0xf0] }
 0x31a   :  { %3306 = vmatpush.bf16.msra.mxu1 %v5052_v44  ;;  %3326 = vmatpush.bf16.msra.mxu2 %v5080_v45  ;;  %v4720_v44 = vor.u32 %v5396_v35, %v4717_v33  ;;  %v5333_v45 = vld [vmem:[%s8098_s7 + $0x84] sm:$0xf]  ;;  %v5031_v33 = vld [vmem:[%s8098_s7 + $0x4e8] sm:$0xf] }
 0x31b   :  { %3287 = vmatpush.bf16.msrb.mxu3 %v4408_v49  ;;  %3297 = vmatpush.bf16.msrb.mxu0 %v4716_v56  ;;  %v5389_v49 = vld [vmem:[%s8098_s7 + $0x244] sm:$0xf]  ;;  %v5466_v56 = vld [vmem:[%s8098_s7 + $0x4ac] sm:$0xf]  ;;  %v4468_v16 = vor.u32 %v5333_v45, %v4465_v46  ;;  %v4555_v45 = vld [vmem:[%s8098_s7 + $0x130] sm:$0xf]  ;;  %v5032_v46 = vor.u32 %v5477_v34, %v5031_v33 }
 0x31c   :  { %v4692_v59 = vor.u32 %v5389_v49, %v4689_v50  ;;  %v5421_v35 = vld [vmem:[%s8098_s7 + $0x340] sm:$0xf0]  ;;  %v5414_v49 = vld [vmem:[%s8098_s7 + $0x308] sm:$0xf0]  ;;  %v5003_v50 = vld [vmem:[%s8098_s7 + $0x4b0] sm:$0xf] }
 0x31d   :  { %v5323_v34 = vld [vmem:[%s8098_s7 + $0x30] sm:$0xf0] }
 0x31e   :  { %3332 = vmatpush.bf16.msrb.mxu2 %v4608_v58  ;;  %3307 = vmatpush.bf16.msra.mxu1 %v5024_v61  ;;  %v4997_v58 = vld [vmem:[%s8098_s7 + $0x4c4] sm:$0xf0] }
 0x31f   :  { %3345 = vmatpush.bf16.msra.mxu3 %v4832_v54  ;;  %3298 = vmatpush.bf16.msrb.mxu0 %v4688_v4  ;;  %v5441_v54 = vld [vmem:[%s8098_s7 + $0x3e0] sm:$0xf0]  ;;  %v4437_v61 = vld [vmem:[%s8098_s7 + $0x64] sm:$0xf0]  ;;  %v5000_v63 = vor.u32 %v5466_v56, %v4997_v58  ;;  %v5459_v4 = vld [vmem:[%s8098_s7 + $0x474] sm:$0xf] }
 0x320   :  { %3288 = vmatmul.bf16.vlgmr.msrb.gmra.mxu3 %v7306_v38  ;;  %v4884_v62 = vor.u32 %v5441_v54, %v4883_v52  ;;  %v4440_v6 = vor.u32 %v5326_v60, %v4437_v61  ;;  %v5470_v52 = vld [vmem:[%s8098_s7 + $0x4c8] sm:$0xf0]  ;;  %v5431_v56 = vld [vmem:[%s8098_s7 + $0x394] sm:$0xf]  ;;  %v4527_v60 = vld [vmem:[%s8098_s7 + $0xf8] sm:$0xf] }
 0x321   :  { %v5351_v61 = vld [vmem:[%s8098_s7 + $0x110] sm:$0xf0] }
 0x322   :  { %3333 = vmatpush.bf16.msrb.mxu2 %v4580_v53  ;;  %3308 = vmatpush.bf16.msra.mxu1 %v4996_v8  ;;  %v4969_v53 = vld [vmem:[%s8098_s7 + $0x48c] sm:$0xf0]  ;;  %v4664_v8 = vor.u32 %v5382_v0, %v4661_v1  ;;  %v5407_v0 = vld [vmem:[%s8098_s7 + $0x2d0] sm:$0xf0]  ;;  %v4975_v1 = vld [vmem:[%s8098_s7 + $0x478] sm:$0xf]  ;;  %v4528_v5 = vor.u32 %v5351_v61, %v4527_v60 }
 0x323   :  { %3346 = vmatpush.bf16.msra.mxu3 %v4804_v3  ;;  %3299 = vmatpush.bf16.msrb.mxu0 %v4660_v15  ;;  %v5434_v3 = vld [vmem:[%s8098_s7 + $0x3a8] sm:$0xf0]  ;;  %v4972_v11 = vor.u32 %v5459_v4, %v4969_v53  ;;  %v5452_v15 = vld [vmem:[%s8098_s7 + $0x43c] sm:$0xf]  ;;  %v5491_v4 = vld [vmem:[%s8098_s7 + $0x570] sm:$0xf0] }
 0x324   :  { %v4856_v10 = vor.u32 %v5434_v3, %v4855_v2  ;;  %v5463_v2 = vld [vmem:[%s8098_s7 + $0x490] sm:$0xf0]  ;;  %v5087_v3 = vld [vmem:[%s8098_s7 + $0x558] sm:$0xf] }
 0x325   :  { %v5088_v55 = vor.u32 %v5491_v4, %v5087_v3 }
 0x326   :  { %3334 = vmatpush.bf16.msrb.mxu2 %v4552_v7  ;;  %3309 = vmatpush.bf16.msra.mxu1 %v4968_v22  ;;  %v4941_v7 = vld [vmem:[%s8098_s7 + $0x454] sm:$0xf0]  ;;  %v5428_v22 = vld [vmem:[%s8098_s7 + $0x378] sm:$0xf0] }
 0x327   :  { %3347 = vmatpush.bf16.msra.mxu3 %v4776_v13  ;;  %3300 = vmatpush.bf16.msrb.mxu0 %v4632_v27  ;;  %v4633_v13 = vld [vmem:[%s8098_s7 + $0x1ec] sm:$0xf0]  ;;  %v4944_v26 = vor.u32 %v5452_v15, %v4941_v7  ;;  %v5445_v27 = vld [vmem:[%s8098_s7 + $0x404] sm:$0xf]  ;;  %v4471_v7 = vld [vmem:[%s8098_s7 + $0x88] sm:$0xf] }
 0x328   :  { %v4636_v25 = vor.u32 %v5375_v12, %v4633_v13  ;;  %v4947_v12 = vld [vmem:[%s8098_s7 + $0x440] sm:$0xf]  ;;  %v5456_v13 = vld [vmem:[%s8098_s7 + $0x458] sm:$0xf0]  ;;  %v4472_v17 = vor.u32 %v5337_v19, %v4471_v7 }
 0x329   :  { %5093 = vmatmul.msk.bf16.vlgmr.msra.gmra.mxu2 %vm1239_vm0, %v7312_v41  ;;  %v4948_v18 = vor.u32 %v5456_v13, %v4947_v12 }
 0x32a   :  { %3335 = vmatpush.bf16.msrb.mxu2 %v4524_v30  ;;  %3310 = vmatpush.bf16.msra.mxu1 %v4940_v31  ;;  %v4913_v30 = vld [vmem:[%s8098_s7 + $0x41c] sm:$0xf0]  ;;  %v5365_v31 = vld [vmem:[%s8098_s7 + $0x180] sm:$0xf0] }
 0x32b   :  { %3348 = vmatpush.bf16.msra.mxu3 %v4748_v57  ;;  %3358 = vmatpush.bf16.msra.mxu0 %v5056_v32  ;;  %v4836_v57 = vor.u32 %v5428_v22, %v4835_v20  ;;  %v4807_v32 = vld [vmem:[%s8098_s7 + $0x328] sm:$0xf]  ;;  %v4916_v36 = vor.u32 %v5445_v27, %v4913_v30  ;;  %v4584_v37 = vor.u32 %v5365_v31, %v4583_v28  ;;  %v5393_v22 = vld [vmem:[%s8098_s7 + $0x260] sm:$0xf0]  ;;  %v4667_v27 = vld [vmem:[%s8098_s7 + $0x210] sm:$0xf] }
 0x32c   :  { %3301 = vmatmul.bf16.vlgmr.msrb.gmra.mxu0 %v7308_v39  ;;  %v4808_v42 = vor.u32 %v5421_v35, %v4807_v32  ;;  %v4695_v20 = vld [vmem:[%s8098_s7 + $0x248] sm:$0xf]  ;;  %v5386_v30 = vld [vmem:[%s8098_s7 + $0x228] sm:$0xf0]  ;;  %v4891_v28 = vld [vmem:[%s8098_s7 + $0x3d0] sm:$0xf] }
 0x32d   :  { %v4668_v32 = vor.u32 %v5386_v30, %v4667_v27  ;;  %v4415_v35 = vld [vmem:[%s8098_s7 + $0x18] sm:$0xf] }
 0x32e   :  { %3336 = vmatpush.bf16.msrb.mxu2 %v4496_v43  ;;  %3311 = vmatpush.bf16.msra.mxu1 %v4912_v47  ;;  %v5438_v43 = vld [vmem:[%s8098_s7 + $0x3cc] sm:$0xf] }
 0x32f   :  { %3349 = vmatpush.bf16.msra.mxu3 %v4720_v44  ;;  %3359 = vmatpush.bf16.msra.mxu0 %v5028_v48  ;;  %v4885_v44 = vld [vmem:[%s8098_s7 + $0x3e4] sm:$0xf0]  ;;  %v5358_v47 = vld [vmem:[%s8098_s7 + $0x148] sm:$0xf0]  ;;  %v4779_v48 = vld [vmem:[%s8098_s7 + $0x2f0] sm:$0xf] }
 0x330   :  { %v4888_v54 = vor.u32 %v5438_v43, %v4885_v44  ;;  %v4556_v58 = vor.u32 %v5358_v47, %v4555_v45  ;;  %v5435_v43 = vld [vmem:[%s8098_s7 + $0x3b0] sm:$0xf0]  ;;  %v4416_v44 = vor.u32 %v5323_v34, %v4415_v35 }
 0x332   :  { %3337 = vmatpush.bf16.msrb.mxu2 %v4468_v16  ;;  %3312 = vmatpush.bf16.msra.mxu1 %v4884_v62  ;;  %v4780_v16 = vor.u32 %v5414_v49, %v4779_v48  ;;  %v5004_v62 = vor.u32 %v5470_v52, %v5003_v50  ;;  %v8075_v48 = vld [vmem:[%s8099_s8] sm:$0x7f] }
 0x333   :  { %3350 = vmatpush.bf16.msra.mxu3 %v4692_v59  ;;  %3360 = vmatpush.bf16.msra.mxu0 %v5000_v63  ;;  %v4857_v59 = vld [vmem:[%s8098_s7 + $0x3ac] sm:$0xf0]  ;;  %v4751_v63 = vld [vmem:[%s8098_s7 + $0x2b8] sm:$0xf]  ;;  %v2155_v50 = vperm.slane %v8075_v48, 0 }
 0x334   :  { %v4860_v53 = vor.u32 %v5431_v56, %v4857_v59  ;;  %v4752_v21 = vor.u32 %v5407_v0, %v4751_v63 }
 0x336   :  { %3338 = vmatpush.bf16.msrb.mxu2 %v4440_v6  ;;  %3313 = vmatpush.bf16.msra.mxu1 %v4856_v10  ;;  %v4499_v6 = vld [vmem:[%s8098_s7 + $0xc0] sm:$0xf] }
 0x337   :  { %3351 = vmatpush.bf16.msra.mxu3 %v4664_v8  ;;  %3361 = vmatpush.bf16.msra.mxu0 %v4972_v11  ;;  %v4976_v8 = vor.u32 %v5463_v2, %v4975_v1  ;;  %v4723_v10 = vld [vmem:[%s8098_s7 + $0x280] sm:$0xf]  ;;  %v5400_v11 = vld [vmem:[%s8098_s7 + $0x298] sm:$0xf0] }
 0x338   :  { %v4724_v15 = vor.u32 %v5400_v11, %v4723_v10 }
 0x339   :  { %3314 = vmatmul.bf16.vlgmr.msra.gmra.mxu1 %v7310_v40 }
 0x33a   :  { %3378 = vmatpush.bf16.msrb.mxu1 %v5084_v14  ;;  %3339 = vmatpush.bf16.msrb.mxu2 %v4412_v23  ;;  %v4500_v14 = vor.u32 %v5344_v9, %v4499_v6  ;;  %v4919_v23 = vld [vmem:[%s8098_s7 + $0x408] sm:$0xf] }
 0x33b   :  { %3352 = vmatpush.bf16.msra.mxu3 %v4636_v25  ;;  %3362 = vmatpush.bf16.msra.mxu0 %v4944_v26  ;;  %v4696_v25 = vor.u32 %v5393_v22, %v4695_v20  ;;  %v4443_v26 = vld [vmem:[%s8098_s7 + $0x50] sm:$0xf] }
 0x33d   :  { %3340 = vmatmul.bf16.vlgmr.msrb.gmra.mxu2 %v7306_v38 }
 0x33e   :  { %3384 = vmatpush.bf16.msra.mxu1 %v4612_v51  ;;  %3397 = vmatpush.bf16.msra.mxu2 %v4836_v57  ;;  %v4920_v51 = vor.u32 %v5449_v24, %v4919_v23  ;;  %v5330_v57 = vld [vmem:[%s8098_s7 + $0x68] sm:$0xf0] }
 0x33f   :  { %3410 = vmatpush.bf16.msrb.mxu3 %v5060_v29  ;;  %3363 = vmatpush.bf16.msra.mxu0 %v4916_v36  ;;  %v5442_v29 = vld [vmem:[%s8098_s7 + $0x3e8] sm:$0xf0]  ;;  %v4444_v31 = vor.u32 %v5330_v57, %v4443_v26  ;;  %v4639_v36 = vld [vmem:[%s8098_s7 + $0x1d8] sm:$0xf] }
 0x340   :  { %3353 = vmatmul.bf16.vlgmr.msra.gmra.mxu3 %v7308_v39  ;;  %v4892_v33 = vor.u32 %v5442_v29, %v4891_v28 }
 0x342   :  { %3385 = vmatpush.bf16.msra.mxu1 %v4584_v37  ;;  %3398 = vmatpush.bf16.msra.mxu2 %v4808_v42  ;;  %v5379_v37 = vld [vmem:[%s8098_s7 + $0x1f0] sm:$0xf0]  ;;  %v4863_v42 = vld [vmem:[%s8098_s7 + $0x398] sm:$0xf]  ;;  %s5559_s7 = smov [#allocation2]  }
 0x343   :  { %3411 = vmatpush.bf16.msrb.mxu3 %v5032_v46  ;;  %3364 = vmatpush.bf16.msra.mxu0 %v4888_v54  ;;  %v4640_v45 = vor.u32 %v5379_v37, %v4639_v36  ;;  %v4864_v46 = vor.u32 %v5435_v43, %v4863_v42  ;;  %v2158_v36 = vperm.slane %v8075_v48, 3  ;;  %s3485_s8 = sshll.u32 %s5559_s7, 4  ;;  %s3486_s8 = int_to_ptr.vmem [resolvable:$true] %s3485_s8 }
 0x346   :  { %3386 = vmatpush.bf16.msra.mxu1 %v4556_v58  ;;  %3399 = vmatpush.bf16.msra.mxu2 %v4780_v16 }
 0x347   :  { %3412 = vmatpush.bf16.msrb.mxu3 %v5004_v62  ;;  %3365 = vmatpush.bf16.msra.mxu0 %v4860_v53 }
 0x349   :  { %5094 = vmatmul.msk.bf16.vlgmr.msrb.gmra.mxu1 %vm1239_vm0, %v7312_v41 }
 0x34a   :  { %3387 = vmatpush.bf16.msra.mxu1 %v4528_v5  ;;  %3400 = vmatpush.bf16.msra.mxu2 %v4752_v21 }
 0x34b   :  { %3413 = vmatpush.bf16.msrb.mxu3 %v4976_v8  ;;  %3430 = vmatpush.bf16.msrb.mxu0 %v5088_v55 }
 0x34c   :  { %3366 = vmatmul.bf16.vlgmr.msra.gmra.mxu0 %v7310_v40 }
 0x34e   :  { %3388 = vmatpush.bf16.msra.mxu1 %v4500_v14  ;;  %3401 = vmatpush.bf16.msra.mxu2 %v4724_v15  ;;  %v2157_v15 = vperm.slane %v8075_v48, 2 }
 0x34f   :  { %3414 = vmatpush.bf16.msrb.mxu3 %v4948_v18 }
 0x352   :  { %3389 = vmatpush.bf16.msra.mxu1 %v4472_v17  ;;  %3402 = vmatpush.bf16.msra.mxu2 %v4696_v25 }
 0x353   :  { %3415 = vmatpush.bf16.msrb.mxu3 %v4920_v51 }
 0x355   :  { %v3094_v47 = vpop.f32.mrf.mxu0 }
 0x356   :  { %3390 = vmatpush.bf16.msra.mxu1 %v4444_v31  ;;  %3403 = vmatpush.bf16.msra.mxu2 %v4668_v32  ;;  %v3107_v49 = vpop.f32.mrf.mxu1 }
 0x357   :  { %3416 = vmatpush.bf16.msrb.mxu3 %v4892_v33 }
 0x35a   :  { %3391 = vmatpush.bf16.msra.mxu1 %v4416_v44  ;;  %3404 = vmatpush.bf16.msra.mxu2 %v4640_v45 }
 0x35b   :  { %3417 = vmatpush.bf16.msrb.mxu3 %v4864_v46  ;;  %v3081_v52 = vpop.f32.mrf.mxu3 }
 0x35c   :  { %5095 = vmatmul.msk.bf16.vlgmr.msrb.gmra.mxu0 %vm1239_vm0, %v7312_v41  ;;  %v3082_v54 = vadd.f32 %v3081_v52, %v2155_v50  ;;  %v3120_v56 = vpop.f32.mrf.mxu2 }
 0x35d   :  { %3392 = vmatmul.bf16.vlgmr.msra.gmra.mxu1 %v7306_v38  ;;  %3405 = vmatmul.bf16.vlgmr.msra.gmra.mxu2 %v7308_v39  ;;  %v3096_v58 = vpop.f32.mrf.mxu0  ;;  %v2156_v39 = vperm.slane %v8075_v48, 1 }
 0x35e   :  { %3418 = vmatmul.bf16.vlgmr.msrb.gmra.mxu3 %v7310_v40  ;;  %v3095_v41 = vadd.f32 %v3094_v47, %v3082_v54  ;;  %v3109_v16 = vpop.f32.mrf.mxu1 }
 0x360   :  { %v3108_v59 = vadd.f32 %v3107_v49, %v3095_v41 }
 0x362   :  { %v3121_v60 = vadd.f32 %v3120_v56, %v3108_v59 }
 0x363   :  { %v3083_v61 = vpop.f32.mrf.mxu3 }
 0x364   :  { %v3436_v62 = vsub.f32 0.0, %v3121_v60  ;;  %v3122_v63 = vpop.f32.mrf.mxu2  ;;  %v2159_v61 = vperm.slane %v8075_v48, 4 }
 0x365   :  { %v3159_v0 = vpop.f32.mrf.mxu0 }
 0x366   :  { %v3443_v38 = vmul.f32 1.442695, %v3436_v62  ;;  %v3172_v1 = vpop.f32.mrf.mxu1 }
 0x368   :  { %5502 = vpow2.f32 %v3443_v38 }
 0x36b   :  { %v3146_v40 = vpop.f32.mrf.mxu3 }
 0x36c   :  { %v3133_v2 = vpop.f32.mrf.mxu2 }
 0x36d   :  { %v3134_v3 = vadd.f32 %v3133_v2, %v2156_v39  ;;  %v3161_v4 = vpop.f32.mrf.mxu0 }
 0x36e   :  { %v5503_v53 = vpop.eup %5502  ;;  %v3174_v5 = vpop.f32.mrf.mxu1 }
 0x36f   :  { %v3457_v21 = vadd.f32 1.0, %v5503_v53  ;;  %v3147_v6 = vadd.f32 %v3146_v40, %v3134_v3  ;;  %v2160_v5 = vperm.slane %v8075_v48, 5 }
 0x371   :  { %5504 = vrcp.f32 %v3457_v21  ;;  %v3160_v8 = vadd.f32 %v3159_v0, %v3147_v6 }
 0x373   :  { %v3173_v9 = vadd.f32 %v3172_v1, %v3160_v8  ;;  %v3148_v10 = vpop.f32.mrf.mxu3 }
 0x374   :  { %v3135_v11 = vpop.f32.mrf.mxu2 }
 0x375   :  { %v3437_v55 = vsub.f32 0.0, %v3173_v9  ;;  %v3224_v7 = vpop.f32.mrf.mxu0 }
 0x376   :  { %v3185_v12 = vpop.f32.mrf.mxu1 }
 0x377   :  { %v5505_v13 = vpop.eup %5504  ;;  %v3445_v14 = vmul.f32 1.442695, %v3437_v55  ;;  %v3186_v18 = vadd.f32 %v3185_v12, %v2157_v15 }
 0x378   :  { %3471 = vst [vmem:[#allocation2] sm:$0xff] %v5505_v13 }
 0x379   :  { %5506 = vpow2.f32 %v3445_v14 }
 0x37c   :  { %v3198_v19 = vpop.f32.mrf.mxu2 }
 0x37d   :  { %v3199_v22 = vadd.f32 %v3198_v19, %v3186_v18  ;;  %v3226_v26 = vpop.f32.mrf.mxu0 }
 0x37e   :  { %v3187_v23 = vpop.f32.mrf.mxu1 }
 0x37f   :  { %v3211_v20 = vpop.f32.mrf.mxu3  ;;  %v5507_v24 = vpop.eup %5506 }
 0x380   :  { %v3458_v17 = vadd.f32 1.0, %v5507_v24  ;;  %v3212_v25 = vadd.f32 %v3211_v20, %v3199_v22 }
 0x382   :  { %5508 = vrcp.f32 %v3458_v17  ;;  %v3225_v51 = vadd.f32 %v3224_v7, %v3212_v25 }
 0x384   :  { %v3438_v57 = vsub.f32 0.0, %v3225_v51  ;;  %v3200_v27 = vpop.f32.mrf.mxu2 }
 0x386   :  { %v3447_v28 = vmul.f32 1.442695, %v3438_v57  ;;  %v2161_v57 = vperm.slane %v8075_v48, 6 }
 0x387   :  { %v3213_v30 = vpop.f32.mrf.mxu3 }
 0x388   :  { %v5509_v29 = vpop.eup %5508  ;;  %5510 = vpow2.f32 %v3447_v28 }
 0x389   :  { %v3237_v31 = vpop.f32.mrf.mxu0  ;;  %3472 = vst [vmem:[#allocation2 + $0x8] sm:$0xff] %v5509_v29 }
 0x38a   :  { %v3238_v44 = vadd.f32 %v3237_v31, %v2158_v36 }
 0x38e   :  { %v5511_v35 = vpop.eup %5510 }
 0x38f   :  { %v3276_v32 = vpop.f32.mrf.mxu3  ;;  %v3459_v33 = vadd.f32 1.0, %v5511_v35 }
 0x391   :  { %v3239_v34 = vpop.f32.mrf.mxu0  ;;  %5512 = vrcp.f32 %v3459_v33 }
 0x396   :  { %v3250_v37 = vpop.f32.mrf.mxu1 }
 0x397   :  { %v3278_v42 = vpop.f32.mrf.mxu3  ;;  %v5513_v43 = vpop.eup %5512  ;;  %v3251_v45 = vadd.f32 %v3250_v37, %v3238_v44 }
 0x398   :  { %3473 = vst [vmem:[#allocation2 + $0x10] sm:$0xff] %v5513_v43 }
 0x39c   :  { %v3263_v46 = vpop.f32.mrf.mxu2 }
 0x39d   :  { %v3264_v47 = vadd.f32 %v3263_v46, %v3251_v45 }
 0x39e   :  { %v3252_v49 = vpop.f32.mrf.mxu1 }
 0x39f   :  { %v3277_v52 = vadd.f32 %v3276_v32, %v3264_v47 }
 0x3a1   :  { %v3439_v54 = vsub.f32 0.0, %v3277_v52 }
 0x3a3   :  { %v3289_v50 = vpop.f32.mrf.mxu3  ;;  %v3449_v56 = vmul.f32 1.442695, %v3439_v54 }
 0x3a4   :  { %v3265_v58 = vpop.f32.mrf.mxu2  ;;  %v3290_v0 = vadd.f32 %v3289_v50, %v2159_v61 }
 0x3a5   :  { %5514 = vpow2.f32 %v3449_v56 }
 0x3a9   :  { %v3302_v41 = vpop.f32.mrf.mxu0 }
 0x3aa   :  { %v3303_v38 = vadd.f32 %v3302_v41, %v3290_v0 }
 0x3ab   :  { %v3291_v16 = vpop.f32.mrf.mxu3  ;;  %v5515_v59 = vpop.eup %5514 }
 0x3ac   :  { %v3460_v60 = vadd.f32 1.0, %v5515_v59  ;;  %v3328_v62 = vpop.f32.mrf.mxu2 }
 0x3ae   :  { %5516 = vrcp.f32 %v3460_v60 }
 0x3b1   :  { %v3304_v63 = vpop.f32.mrf.mxu0 }
 0x3b4   :  { %v5517_v39 = vpop.eup %5516  ;;  %v3330_v2 = vpop.f32.mrf.mxu2 }
 0x3b5   :  { %3474 = vst [vmem:[#allocation2 + $0x18] sm:$0xff] %v5517_v39 }
 0x3b6   :  { %v3315_v1 = vpop.f32.mrf.mxu1 }
 0x3b7   :  { %v3316_v40 = vadd.f32 %v3315_v1, %v3303_v38 }
 0x3b9   :  { %v3329_v3 = vadd.f32 %v3328_v62, %v3316_v40 }
 0x3bb   :  { %v3440_v4 = vsub.f32 0.0, %v3329_v3 }
 0x3bd   :  { %v3451_v53 = vmul.f32 1.442695, %v3440_v4 }
 0x3be   :  { %v3317_v21 = vpop.f32.mrf.mxu1 }
 0x3bf   :  { %5518 = vpow2.f32 %v3451_v53 }
 0x3c0   :  { %v3341_v6 = vpop.f32.mrf.mxu2 }
 0x3c1   :  { %v3342_v9 = vadd.f32 %v3341_v6, %v2160_v5 }
 0x3c3   :  { %v3354_v8 = vpop.f32.mrf.mxu3 }
 0x3c4   :  { %v3355_v11 = vadd.f32 %v3354_v8, %v3342_v9 }
 0x3c5   :  { %v5519_v10 = vpop.eup %5518 }
 0x3c6   :  { %v3461_v55 = vadd.f32 1.0, %v5519_v10  ;;  %v3380_v13 = vpop.f32.mrf.mxu1 }
 0x3c8   :  { %v3343_v15 = vpop.f32.mrf.mxu2  ;;  %5520 = vrcp.f32 %v3461_v55 }
 0x3c9   :  { %v3367_v12 = vpop.f32.mrf.mxu0 }
 0x3ca   :  { %v3368_v14 = vadd.f32 %v3367_v12, %v3355_v11 }
 0x3cb   :  { %v3356_v7 = vpop.f32.mrf.mxu3 }
 0x3cc   :  { %v3381_v18 = vadd.f32 %v3380_v13, %v3368_v14 }
 0x3ce   :  { %v3441_v19 = vsub.f32 0.0, %v3381_v18  ;;  %v5521_v22 = vpop.eup %5520  ;;  %v3382_v24 = vpop.f32.mrf.mxu1 }
 0x3cf   :  { %3475 = vst [vmem:[#allocation2 + $0x20] sm:$0xff] %v5521_v22 }
 0x3d0   :  { %v3453_v20 = vmul.f32 1.442695, %v3441_v19 }
 0x3d1   :  { %v3369_v23 = vpop.f32.mrf.mxu0 }
 0x3d2   :  { %5522 = vpow2.f32 %v3453_v20 }
 0x3d8   :  { %v5523_v17 = vpop.eup %5522 }
 0x3d9   :  { %v3462_v25 = vadd.f32 1.0, %v5523_v17  ;;  %v3432_v26 = vpop.f32.mrf.mxu0 }
 0x3da   :  { %v3393_v51 = vpop.f32.mrf.mxu1 }
 0x3db   :  { %5524 = vrcp.f32 %v3462_v25  ;;  %v3394_v27 = vadd.f32 %v3393_v51, %v2161_v57 }
 0x3e0   :  { %v3406_v30 = vpop.f32.mrf.mxu2 }
 0x3e1   :  { %v5525_v28 = vpop.eup %5524  ;;  %v3407_v29 = vadd.f32 %v3406_v30, %v3394_v27  ;;  %v3419_v31 = vpop.f32.mrf.mxu3 }
 0x3e2   :  { %v3434_v32 = vpop.f32.mrf.mxu0  ;;  %3476 = vst [vmem:[#allocation2 + $0x28] sm:$0xff] %v5525_v28  ;;  %v3395_v35 = vpop.f32.mrf.mxu1 }
 0x3e3   :  { %v3420_v33 = vadd.f32 %v3419_v31, %v3407_v29 }
 0x3e5   :  { %v3433_v34 = vadd.f32 %v3432_v26, %v3420_v33 }
 0x3e7   :  { %v3442_v36 = vsub.f32 0.0, %v3433_v34 }
 0x3e8   :  { %v3408_v37 = vpop.f32.mrf.mxu2 }
 0x3e9   :  { %v3455_v42 = vmul.f32 1.442695, %v3442_v36  ;;  %v3421_v43 = vpop.f32.mrf.mxu3 }
 0x3eb   :  { %5526 = vpow2.f32 %v3455_v42 }
 0x3f1   :  { %v5527_v44 = vpop.eup %5526 }
 0x3f2   :  { %v3463_v45 = vadd.f32 1.0, %v5527_v44 }
 0x3f4   :  { %5528 = vrcp.f32 %v3463_v45 }
 0x3fa   :  { %v5529_v48 = vpop.eup %5528 }
 0x3fb   :  { %3477 = vst.msk [vmem:[#allocation2 + $0x30] sm:$0xff] %vm1239_vm0, %v5529_v48 }
 0x3fc   :  { %3490 = dma.vmem_to_hbm [thread:$0]  %s3486_s8, 896, %s3488_s6, [#allocation3]  }
 0x3fd   :  { %5554 = dma.done.wait [#allocation3], 896  }
 0x3fe   :  { %5555 = vsyncadd [#allocation3], 4294966400 }
 0x3ff   :  { %3499 = vsyncpa [#allocation3], 1 }

</bundles_post_ra>
